<compile_context>
chip_gen: v7x
topology: tpu7x:2x2x1
jax: 0.10.0
libtpu: 0.0.40
codegen_flags: <defaults>
</compile_context>

<pallas_src>
import functools

import jax
import jax.numpy as jnp
from jax import lax
from jax.experimental import pallas as pl
from jax.experimental.pallas import tpu as pltpu


# ----------------------------------------------------------------------------
# Kernel: one grid step == one batch element, full BasicBlock fused
# ----------------------------------------------------------------------------
def _basic_block_kernel(x_ref, w1_ref, s1_ref, b1_ref, w2_ref, s2_ref, b2_ref,
                        *rest, H, W, Cin, Cout, stride, has_proj):
    """Fused BasicBlock:
         y   = relu(bn1(conv3x3_s(x)))          (conv1, stride s)
         out = bn2(conv3x3_1(y))                 (conv2, stride 1)
         out = relu(out + shortcut(x))           (identity or 1x1 conv + BN)

      x_ref  : (1, H+2, W+2, Cin)  zero-haloed input (bf16)
      w1_ref : (3, 3*Cin, Cout)    kx-fused conv1 weights (bf16)
      w2_ref : (3, 3*Cout, Cout)   kx-fused conv2 weights (bf16)
      s*_ref, b*_ref : (1, Cout)   folded BN scale / bias (f32)
      optional wsc/ssc/bsc         1x1 projection shortcut + folded BN
      o_ref  : (1, Ho, Wo, Cout)   (f32)
      y_ref  : VMEM scratch (Ho+2, Wo+2, Cout) — haloed conv2 input (bf16)
    """
    if has_proj:
        wsc_ref, ssc_ref, bsc_ref, o_ref, y_ref = rest
    else:
        o_ref, y_ref = rest

    Ho, Wo = H // stride, W // stride
    xp = x_ref[0]                                        # (H+2, W+2, Cin) bf16

    # ---- conv1 (3x3, stride) + bn1 + relu ----------------------------------
    acc = jnp.zeros((Ho * Wo, Cout), jnp.float32)
    for ky in range(3):
        # static (optionally strided) slices of the haloed input; kx taps are
        # fused along the contraction dim -> K = 3*Cin (one deep MXU pass).
        taps = [xp[ky:ky + H:stride, kx:kx + W:stride, :] for kx in range(3)]
        lhs = jnp.concatenate(taps, axis=-1).reshape(Ho * Wo, 3 * Cin)
        acc = acc + jnp.dot(lhs, w1_ref[ky], preferred_element_type=jnp.float32)
    y = jnp.maximum(acc * s1_ref[...] + b1_ref[...], 0.0)

    # haloed VMEM scratch: zero border == conv2's padding=1
    y_ref[...] = jnp.zeros(y_ref.shape, y_ref.dtype)
    y_ref[1:Ho + 1, 1:Wo + 1, :] = y.reshape(Ho, Wo, Cout).astype(y_ref.dtype)

    # ---- conv2 (3x3, stride 1) + bn2 ---------------------------------------
    acc2 = jnp.zeros((Ho * Wo, Cout), jnp.float32)
    for ky in range(3):
        band = y_ref[ky:ky + Ho, :, :]                   # (Ho, Wo+2, Cout)
        taps = [band[:, kx:kx + Wo, :] for kx in range(3)]
        lhs = jnp.concatenate(taps, axis=-1).reshape(Ho * Wo, 3 * Cout)
        acc2 = acc2 + jnp.dot(lhs, w2_ref[ky], preferred_element_type=jnp.float32)
    out = acc2 * s2_ref[...] + b2_ref[...]

    # ---- shortcut -----------------------------------------------------------
    scx = xp[1:H + 1:stride, 1:W + 1:stride, :].reshape(Ho * Wo, Cin)
    if has_proj:
        sc = jnp.dot(scx, wsc_ref[...], preferred_element_type=jnp.float32)
        sc = sc * ssc_ref[...] + bsc_ref[...]
    else:
        sc = scx.astype(jnp.float32)

    out = jnp.maximum(out + sc, 0.0)
    o_ref[0] = out.reshape(Ho, Wo, Cout).astype(o_ref.dtype)


# ----------------------------------------------------------------------------
# Wrapper
# ----------------------------------------------------------------------------
def basic_block(x_nchw, q, *, stride):
    """x_nchw: (N, Cin, H, W) f32.  Returns (N, Cout, Ho, Wo) f32."""
    N, Cin, H, W = x_nchw.shape
    Cout = q['w1f'].shape[-1]
    has_proj = 'wsc' in q
    Ho, Wo = H // stride, W // stride

    x = jnp.transpose(x_nchw, (0, 2, 3, 1))                       # NHWC
    xp = jnp.pad(x, ((0, 0), (1, 1), (1, 1), (0, 0))).astype(jnp.bfloat16)

    args = [xp, q['w1f'], q['s1'], q['b1'], q['w2f'], q['s2'], q['b2']]
    in_specs = [
        pl.BlockSpec((1, H + 2, W + 2, Cin), lambda n: (n, 0, 0, 0)),
        pl.BlockSpec((3, 3 * Cin, Cout), lambda n: (0, 0, 0)),
        pl.BlockSpec((1, Cout), lambda n: (0, 0)),
        pl.BlockSpec((1, Cout), lambda n: (0, 0)),
        pl.BlockSpec((3, 3 * Cout, Cout), lambda n: (0, 0, 0)),
        pl.BlockSpec((1, Cout), lambda n: (0, 0)),
        pl.BlockSpec((1, Cout), lambda n: (0, 0)),
    ]
    if has_proj:
        args += [q['wsc'], q['ssc'], q['bsc']]
        in_specs += [
            pl.BlockSpec((Cin, Cout), lambda n: (0, 0)),
            pl.BlockSpec((1, Cout), lambda n: (0, 0)),
            pl.BlockSpec((1, Cout), lambda n: (0, 0)),
        ]

    kern = functools.partial(_basic_block_kernel, H=H, W=W, Cin=Cin, Cout=Cout,
                             stride=stride, has_proj=has_proj)

    out_nhwc = pl.pallas_call(
        kern,
        out_shape=jax.ShapeDtypeStruct((N, Ho, Wo, Cout), jnp.float32),
        grid=(N,),
        in_specs=in_specs,
        out_specs=pl.BlockSpec((1, Ho, Wo, Cout), lambda n: (n, 0, 0, 0)),
        scratch_shapes=[pltpu.VMEM((Ho + 2, Wo + 2, Cout), jnp.bfloat16)],
        compiler_params=pltpu.CompilerParams(
            dimension_semantics=("parallel",)),
    )(*args)
    return jnp.transpose(out_nhwc, (0, 3, 1, 2))                  # back to NCHW


# ----------------------------------------------------------------------------
# Parameters (deterministic synthetic; eval-mode BN folded to scale/bias)
# ----------------------------------------------------------------------------
def init_params(key, cin, cout, stride):
    ks = iter(jax.random.split(key, 16))

    def bn_fold(c, eps=1e-5):
        gamma = jax.random.uniform(next(ks), (c,), jnp.float32, 0.5, 1.5)
        beta = 0.1 * jax.random.normal(next(ks), (c,), jnp.float32)
        mean = 0.1 * jax.random.normal(next(ks), (c,), jnp.float32)
        var = jax.random.uniform(next(ks), (c,), jnp.float32, 0.5, 1.5)
        scale = gamma * jax.lax.rsqrt(var + eps)
        return scale, beta - mean * scale

    p = {'w1': 0.05 * jax.random.normal(next(ks), (3, 3, cin, cout), jnp.float32),
         'bn1': bn_fold(cout),
         'w2': 0.05 * jax.random.normal(next(ks), (3, 3, cout, cout), jnp.float32),
         'bn2': bn_fold(cout)}
    if stride != 1 or cin != cout:
        p['wsc'] = 0.05 * jax.random.normal(next(ks), (cin, cout), jnp.float32)
        p['bnsc'] = bn_fold(cout)
    return p


def prepare_params(p):
    """Kernel-ready: kx-fused 3x3 weights, bf16 matmul operands, f32 BN scale/bias."""
    bf = jnp.bfloat16
    q = {
        'w1f': p['w1'].reshape(3, -1, p['w1'].shape[-1]).astype(bf),
        's1': p['bn1'][0].reshape(1, -1), 'b1': p['bn1'][1].reshape(1, -1),
        'w2f': p['w2'].reshape(3, -1, p['w2'].shape[-1]).astype(bf),
        's2': p['bn2'][0].reshape(1, -1), 'b2': p['bn2'][1].reshape(1, -1),
    }
    if 'wsc' in p:
        q['wsc'] = p['wsc'].astype(bf)
        q['ssc'] = p['bnsc'][0].reshape(1, -1)
        q['bsc'] = p['bnsc'][1].reshape(1, -1)
    return q


# ----------------------------------------------------------------------------
# Pure-JAX reference with matched bf16 operand precision (f32 accumulation)
# ----------------------------------------------------------------------------
def reference_forward(x_nchw, p, *, stride):
    bf = jnp.bfloat16
    dn = ('NHWC', 'HWIO', 'NHWC')

    def conv(x, w, s):
        return lax.conv_general_dilated(
            x.astype(bf), w.astype(bf), (s, s), ((1, 1), (1, 1)),
            dimension_numbers=dn, preferred_element_type=jnp.float32)

    def bn(z, sb):
        s, b = sb
        return z * s.reshape(1, 1, 1, -1) + b.reshape(1, 1, 1, -1)

    x = jnp.transpose(x_nchw, (0, 2, 3, 1))
    y = jax.nn.relu(bn(conv(x, p['w1'], stride), p['bn1'])).astype(bf)
    out = bn(conv(y, p['w2'], 1), p['bn2'])
    if 'wsc' in p:
        sc = jnp.einsum('nhwc,cd->nhwd',
                        x[:, ::stride, ::stride, :].astype(bf),
                        p['wsc'].astype(bf),
                        preferred_element_type=jnp.float32)
        sc = bn(sc, p['bnsc'])
    else:
        sc = x.astype(bf).astype(jnp.float32)
    out = jax.nn.relu(out + sc)
    return jnp.transpose(out, (0, 3, 1, 2))


# ----------------------------------------------------------------------------
if __name__ == "__main__":
    key = jax.random.PRNGKey(0)
    kx1, kx2, kp1, kp2 = jax.random.split(key, 4)

    run = jax.jit(basic_block, static_argnames=('stride',))
    ref = jax.jit(reference_forward, static_argnames=('stride',))

    # Config A: BasicBlock(64, 64, stride=1) -> identity shortcut
    xA = jax.random.normal(kx1, (2, 64, 16, 16), jnp.float32)
    pA = init_params(kp1, 64, 64, 1)
    outA = jax.block_until_ready(run(xA, prepare_params(pA), stride=1))
    refA = jax.block_until_ready(ref(xA, pA, stride=1))
    assert outA.shape == (2, 64, 16, 16), outA.shape
    assert jnp.allclose(outA, refA, atol=2e-2, rtol=2e-2), \
        float(jnp.max(jnp.abs(outA - refA)))

    # Config B: BasicBlock(64, 128, stride=2) -> 1x1 conv + BN shortcut
    xB = jax.random.normal(kx2, (2, 64, 16, 16), jnp.float32)
    pB = init_params(kp2, 64, 128, 2)
    outB = jax.block_until_ready(run(xB, prepare_params(pB), stride=2))
    refB = jax.block_until_ready(ref(xB, pB, stride=2))
    assert outB.shape == (2, 128, 8, 8), outB.shape
    assert jnp.allclose(outB, refB, atol=2e-2, rtol=2e-2), \
        float(jnp.max(jnp.abs(outB - refB)))

    print("KERNEL_OK")
</pallas_src>

<mosaic_0001>
module attributes {stable_mosaic.version = 11 : i64} {
  func.func @_basic_block_kernel(%arg0: i32, %arg1: memref<1x18x18x64xbf16, #tpu.memory_space<vmem>>, %arg2: memref<3x192x64xbf16, #tpu.memory_space<vmem>>, %arg3: memref<1x64xf32, #tpu.memory_space<vmem>>, %arg4: memref<1x64xf32, #tpu.memory_space<vmem>>, %arg5: memref<3x192x64xbf16, #tpu.memory_space<vmem>>, %arg6: memref<1x64xf32, #tpu.memory_space<vmem>>, %arg7: memref<1x64xf32, #tpu.memory_space<vmem>>, %arg8: memref<1x16x16x64xf32, #tpu.memory_space<vmem>>, %arg9: memref<18x18x64xbf16, #tpu.memory_space<vmem>>) attributes {dimension_semantics = [#tpu.dimension_semantics<parallel>], iteration_bounds = array<i64: 2>, scalar_prefetch = 0 : i64, scratch_operands = 1 : i64, tpu.core_type = #tpu.core_type<tc>, window_params = [{transform_indices = @transform_0, window_bounds = array<i64: 1, 18, 18, 64>}, {pipeline_mode = #tpu.pipeline_mode<synchronous>, transform_indices = @transform_1, window_bounds = array<i64: 3, 192, 64>}, {pipeline_mode = #tpu.pipeline_mode<synchronous>, transform_indices = @transform_2, window_bounds = array<i64: 1, 64>}, {pipeline_mode = #tpu.pipeline_mode<synchronous>, transform_indices = @transform_3, window_bounds = array<i64: 1, 64>}, {pipeline_mode = #tpu.pipeline_mode<synchronous>, transform_indices = @transform_4, window_bounds = array<i64: 3, 192, 64>}, {pipeline_mode = #tpu.pipeline_mode<synchronous>, transform_indices = @transform_5, window_bounds = array<i64: 1, 64>}, {pipeline_mode = #tpu.pipeline_mode<synchronous>, transform_indices = @transform_6, window_bounds = array<i64: 1, 64>}, {transform_indices = @transform_7, window_bounds = array<i64: 1, 16, 16, 64>}]} {
    %c0 = arith.constant 0 : index
    %c0_0 = arith.constant 0 : index
    %c0_1 = arith.constant 0 : index
    %c0_2 = arith.constant 0 : index
    %0 = vector.load %arg1[%c0, %c0_0, %c0_1, %c0_2] : memref<1x18x18x64xbf16, #tpu.memory_space<vmem>>, vector<1x18x18x64xbf16>
    %1 = vector.shape_cast %0 : vector<1x18x18x64xbf16> to vector<18x18x64xbf16>
    %cst = arith.constant 0.000000e+00 : f32
    %2 = vector.broadcast %cst : f32 to vector<256x64xf32>
    %3 = vector.extract_strided_slice %1 {offsets = [0, 0, 0], sizes = [16, 16, 64], strides = [1, 1, 1]} : vector<18x18x64xbf16> to vector<16x16x64xbf16>
    %4 = vector.extract_strided_slice %1 {offsets = [0, 1, 0], sizes = [16, 16, 64], strides = [1, 1, 1]} : vector<18x18x64xbf16> to vector<16x16x64xbf16>
    %5 = vector.extract_strided_slice %1 {offsets = [0, 2, 0], sizes = [16, 16, 64], strides = [1, 1, 1]} : vector<18x18x64xbf16> to vector<16x16x64xbf16>
    %6 = tpu.concatenate %3, %4, %5 in 2 : vector<16x16x64xbf16>, vector<16x16x64xbf16>, vector<16x16x64xbf16> -> vector<16x16x192xbf16>
    %7 = vector.shape_cast %6 : vector<16x16x192xbf16> to vector<256x192xbf16>
    %c0_3 = arith.constant 0 : index
    %c0_4 = arith.constant 0 : index
    %c0_5 = arith.constant 0 : index
    %8 = vector.load %arg2[%c0_3, %c0_4, %c0_5] : memref<3x192x64xbf16, #tpu.memory_space<vmem>>, vector<1x192x64xbf16>
    %9 = vector.shape_cast %8 : vector<1x192x64xbf16> to vector<192x64xbf16>
    %cst_6 = arith.constant dense<0.000000e+00> : vector<256x64xf32>
    %10 = tpu.matmul %7, %9, %cst_6 {dimension_numbers = #tpu.dot_dimension_numbers<[1], [0], [0], [1], [0, 0, 1, 1], [], []>} : vector<256x192xbf16>, vector<192x64xbf16>, vector<256x64xf32> -> vector<256x64xf32>
    %11 = arith.addf %2, %10 : vector<256x64xf32>
    %12 = vector.extract_strided_slice %1 {offsets = [1, 0, 0], sizes = [16, 16, 64], strides = [1, 1, 1]} : vector<18x18x64xbf16> to vector<16x16x64xbf16>
    %13 = vector.extract_strided_slice %1 {offsets = [1, 1, 0], sizes = [16, 16, 64], strides = [1, 1, 1]} : vector<18x18x64xbf16> to vector<16x16x64xbf16>
    %14 = vector.extract_strided_slice %1 {offsets = [1, 2, 0], sizes = [16, 16, 64], strides = [1, 1, 1]} : vector<18x18x64xbf16> to vector<16x16x64xbf16>
    %15 = tpu.concatenate %12, %13, %14 in 2 : vector<16x16x64xbf16>, vector<16x16x64xbf16>, vector<16x16x64xbf16> -> vector<16x16x192xbf16>
    %16 = vector.shape_cast %15 : vector<16x16x192xbf16> to vector<256x192xbf16>
    %c1 = arith.constant 1 : index
    %c0_7 = arith.constant 0 : index
    %c0_8 = arith.constant 0 : index
    %17 = vector.load %arg2[%c1, %c0_7, %c0_8] : memref<3x192x64xbf16, #tpu.memory_space<vmem>>, vector<1x192x64xbf16>
    %18 = vector.shape_cast %17 : vector<1x192x64xbf16> to vector<192x64xbf16>
    %cst_9 = arith.constant dense<0.000000e+00> : vector<256x64xf32>
    %19 = tpu.matmul %16, %18, %cst_9 {dimension_numbers = #tpu.dot_dimension_numbers<[1], [0], [0], [1], [0, 0, 1, 1], [], []>} : vector<256x192xbf16>, vector<192x64xbf16>, vector<256x64xf32> -> vector<256x64xf32>
    %20 = arith.addf %11, %19 : vector<256x64xf32>
    %21 = vector.extract_strided_slice %1 {offsets = [2, 0, 0], sizes = [16, 16, 64], strides = [1, 1, 1]} : vector<18x18x64xbf16> to vector<16x16x64xbf16>
    %22 = vector.extract_strided_slice %1 {offsets = [2, 1, 0], sizes = [16, 16, 64], strides = [1, 1, 1]} : vector<18x18x64xbf16> to vector<16x16x64xbf16>
    %23 = vector.extract_strided_slice %1 {offsets = [2, 2, 0], sizes = [16, 16, 64], strides = [1, 1, 1]} : vector<18x18x64xbf16> to vector<16x16x64xbf16>
    %24 = tpu.concatenate %21, %22, %23 in 2 : vector<16x16x64xbf16>, vector<16x16x64xbf16>, vector<16x16x64xbf16> -> vector<16x16x192xbf16>
    %25 = vector.shape_cast %24 : vector<16x16x192xbf16> to vector<256x192xbf16>
    %c2 = arith.constant 2 : index
    %c0_10 = arith.constant 0 : index
    %c0_11 = arith.constant 0 : index
    %26 = vector.load %arg2[%c2, %c0_10, %c0_11] : memref<3x192x64xbf16, #tpu.memory_space<vmem>>, vector<1x192x64xbf16>
    %27 = vector.shape_cast %26 : vector<1x192x64xbf16> to vector<192x64xbf16>
    %cst_12 = arith.constant dense<0.000000e+00> : vector<256x64xf32>
    %28 = tpu.matmul %25, %27, %cst_12 {dimension_numbers = #tpu.dot_dimension_numbers<[1], [0], [0], [1], [0, 0, 1, 1], [], []>} : vector<256x192xbf16>, vector<192x64xbf16>, vector<256x64xf32> -> vector<256x64xf32>
    %29 = arith.addf %20, %28 : vector<256x64xf32>
    %c0_13 = arith.constant 0 : index
    %c0_14 = arith.constant 0 : index
    %30 = vector.load %arg3[%c0_13, %c0_14] : memref<1x64xf32, #tpu.memory_space<vmem>>, vector<1x64xf32>
    %31 = vector.broadcast %30 : vector<1x64xf32> to vector<256x64xf32>
    %32 = arith.mulf %29, %31 : vector<256x64xf32>
    %c0_15 = arith.constant 0 : index
    %c0_16 = arith.constant 0 : index
    %33 = vector.load %arg4[%c0_15, %c0_16] : memref<1x64xf32, #tpu.memory_space<vmem>>, vector<1x64xf32>
    %34 = vector.broadcast %33 : vector<1x64xf32> to vector<256x64xf32>
    %35 = arith.addf %32, %34 : vector<256x64xf32>
    %cst_17 = arith.constant 0.000000e+00 : f32
    %36 = vector.broadcast %cst_17 : f32 to vector<256x64xf32>
    %37 = arith.maximumf %35, %36 : vector<256x64xf32>
    %cst_18 = arith.constant 0.000000e+00 : bf16
    %38 = vector.broadcast %cst_18 : bf16 to vector<18x18x64xbf16>
    %c0_19 = arith.constant 0 : index
    %c0_20 = arith.constant 0 : index
    %c0_21 = arith.constant 0 : index
    %39 = vector.load %arg9[%c0_19, %c0_20, %c0_21] : memref<18x18x64xbf16, #tpu.memory_space<vmem>>, vector<18x18x64xbf16>
    tpu.vector_store %arg9[%c0_19, %c0_20, %c0_21], %38 {strides = array<i32>} : memref<18x18x64xbf16, #tpu.memory_space<vmem>>, vector<18x18x64xbf16>,
    %40 = vector.shape_cast %37 : vector<256x64xf32> to vector<16x16x64xf32>
    %41 = arith.truncf %40 : vector<16x16x64xf32> to vector<16x16x64xbf16>
    %c1_22 = arith.constant 1 : index
    %c1_23 = arith.constant 1 : index
    %c0_24 = arith.constant 0 : index
    %42 = vector.load %arg9[%c1_22, %c1_23, %c0_24] : memref<18x18x64xbf16, #tpu.memory_space<vmem>>, vector<16x16x64xbf16>
    tpu.vector_store %arg9[%c1_22, %c1_23, %c0_24], %41 {strides = array<i32>} : memref<18x18x64xbf16, #tpu.memory_space<vmem>>, vector<16x16x64xbf16>,
    %cst_25 = arith.constant 0.000000e+00 : f32
    %43 = vector.broadcast %cst_25 : f32 to vector<256x64xf32>
    %c0_26 = arith.constant 0 : index
    %c0_27 = arith.constant 0 : index
    %c0_28 = arith.constant 0 : index
    %44 = vector.load %arg9[%c0_26, %c0_27, %c0_28] : memref<18x18x64xbf16, #tpu.memory_space<vmem>>, vector<16x18x64xbf16>
    %45 = vector.extract_strided_slice %44 {offsets = [0, 0, 0], sizes = [16, 16, 64], strides = [1, 1, 1]} : vector<16x18x64xbf16> to vector<16x16x64xbf16>
    %46 = vector.extract_strided_slice %44 {offsets = [0, 1, 0], sizes = [16, 16, 64], strides = [1, 1, 1]} : vector<16x18x64xbf16> to vector<16x16x64xbf16>
    %47 = vector.extract_strided_slice %44 {offsets = [0, 2, 0], sizes = [16, 16, 64], strides = [1, 1, 1]} : vector<16x18x64xbf16> to vector<16x16x64xbf16>
    %48 = tpu.concatenate %45, %46, %47 in 2 : vector<16x16x64xbf16>, vector<16x16x64xbf16>, vector<16x16x64xbf16> -> vector<16x16x192xbf16>
    %49 = vector.shape_cast %48 : vector<16x16x192xbf16> to vector<256x192xbf16>
    %c0_29 = arith.constant 0 : index
    %c0_30 = arith.constant 0 : index
    %c0_31 = arith.constant 0 : index
    %50 = vector.load %arg5[%c0_29, %c0_30, %c0_31] : memref<3x192x64xbf16, #tpu.memory_space<vmem>>, vector<1x192x64xbf16>
    %51 = vector.shape_cast %50 : vector<1x192x64xbf16> to vector<192x64xbf16>
    %cst_32 = arith.constant dense<0.000000e+00> : vector<256x64xf32>
    %52 = tpu.matmul %49, %51, %cst_32 {dimension_numbers = #tpu.dot_dimension_numbers<[1], [0], [0], [1], [0, 0, 1, 1], [], []>} : vector<256x192xbf16>, vector<192x64xbf16>, vector<256x64xf32> -> vector<256x64xf32>
    %53 = arith.addf %43, %52 : vector<256x64xf32>
    %c1_33 = arith.constant 1 : index
    %c0_34 = arith.constant 0 : index
    %c0_35 = arith.constant 0 : index
    %54 = vector.load %arg9[%c1_33, %c0_34, %c0_35] : memref<18x18x64xbf16, #tpu.memory_space<vmem>>, vector<16x18x64xbf16>
    %55 = vector.extract_strided_slice %54 {offsets = [0, 0, 0], sizes = [16, 16, 64], strides = [1, 1, 1]} : vector<16x18x64xbf16> to vector<16x16x64xbf16>
    %56 = vector.extract_strided_slice %54 {offsets = [0, 1, 0], sizes = [16, 16, 64], strides = [1, 1, 1]} : vector<16x18x64xbf16> to vector<16x16x64xbf16>
    %57 = vector.extract_strided_slice %54 {offsets = [0, 2, 0], sizes = [16, 16, 64], strides = [1, 1, 1]} : vector<16x18x64xbf16> to vector<16x16x64xbf16>
    %58 = tpu.concatenate %55, %56, %57 in 2 : vector<16x16x64xbf16>, vector<16x16x64xbf16>, vector<16x16x64xbf16> -> vector<16x16x192xbf16>
    %59 = vector.shape_cast %58 : vector<16x16x192xbf16> to vector<256x192xbf16>
    %c1_36 = arith.constant 1 : index
    %c0_37 = arith.constant 0 : index
    %c0_38 = arith.constant 0 : index
    %60 = vector.load %arg5[%c1_36, %c0_37, %c0_38] : memref<3x192x64xbf16, #tpu.memory_space<vmem>>, vector<1x192x64xbf16>
    %61 = vector.shape_cast %60 : vector<1x192x64xbf16> to vector<192x64xbf16>
    %cst_39 = arith.constant dense<0.000000e+00> : vector<256x64xf32>
    %62 = tpu.matmul %59, %61, %cst_39 {dimension_numbers = #tpu.dot_dimension_numbers<[1], [0], [0], [1], [0, 0, 1, 1], [], []>} : vector<256x192xbf16>, vector<192x64xbf16>, vector<256x64xf32> -> vector<256x64xf32>
    %63 = arith.addf %53, %62 : vector<256x64xf32>
    %c2_40 = arith.constant 2 : index
    %c0_41 = arith.constant 0 : index
    %c0_42 = arith.constant 0 : index
    %64 = vector.load %arg9[%c2_40, %c0_41, %c0_42] : memref<18x18x64xbf16, #tpu.memory_space<vmem>>, vector<16x18x64xbf16>
    %65 = vector.extract_strided_slice %64 {offsets = [0, 0, 0], sizes = [16, 16, 64], strides = [1, 1, 1]} : vector<16x18x64xbf16> to vector<16x16x64xbf16>
    %66 = vector.extract_strided_slice %64 {offsets = [0, 1, 0], sizes = [16, 16, 64], strides = [1, 1, 1]} : vector<16x18x64xbf16> to vector<16x16x64xbf16>
    %67 = vector.extract_strided_slice %64 {offsets = [0, 2, 0], sizes = [16, 16, 64], strides = [1, 1, 1]} : vector<16x18x64xbf16> to vector<16x16x64xbf16>
    %68 = tpu.concatenate %65, %66, %67 in 2 : vector<16x16x64xbf16>, vector<16x16x64xbf16>, vector<16x16x64xbf16> -> vector<16x16x192xbf16>
    %69 = vector.shape_cast %68 : vector<16x16x192xbf16> to vector<256x192xbf16>
    %c2_43 = arith.constant 2 : index
    %c0_44 = arith.constant 0 : index
    %c0_45 = arith.constant 0 : index
    %70 = vector.load %arg5[%c2_43, %c0_44, %c0_45] : memref<3x192x64xbf16, #tpu.memory_space<vmem>>, vector<1x192x64xbf16>
    %71 = vector.shape_cast %70 : vector<1x192x64xbf16> to vector<192x64xbf16>
    %cst_46 = arith.constant dense<0.000000e+00> : vector<256x64xf32>
    %72 = tpu.matmul %69, %71, %cst_46 {dimension_numbers = #tpu.dot_dimension_numbers<[1], [0], [0], [1], [0, 0, 1, 1], [], []>} : vector<256x192xbf16>, vector<192x64xbf16>, vector<256x64xf32> -> vector<256x64xf32>
    %73 = arith.addf %63, %72 : vector<256x64xf32>
    %c0_47 = arith.constant 0 : index
    %c0_48 = arith.constant 0 : index
    %74 = vector.load %arg6[%c0_47, %c0_48] : memref<1x64xf32, #tpu.memory_space<vmem>>, vector<1x64xf32>
    %75 = vector.broadcast %74 : vector<1x64xf32> to vector<256x64xf32>
    %76 = arith.mulf %73, %75 : vector<256x64xf32>
    %c0_49 = arith.constant 0 : index
    %c0_50 = arith.constant 0 : index
    %77 = vector.load %arg7[%c0_49, %c0_50] : memref<1x64xf32, #tpu.memory_space<vmem>>, vector<1x64xf32>
    %78 = vector.broadcast %77 : vector<1x64xf32> to vector<256x64xf32>
    %79 = arith.addf %76, %78 : vector<256x64xf32>
    %80 = vector.extract_strided_slice %1 {offsets = [1, 1, 0], sizes = [16, 16, 64], strides = [1, 1, 1]} : vector<18x18x64xbf16> to vector<16x16x64xbf16>
    %81 = vector.shape_cast %80 : vector<16x16x64xbf16> to vector<256x64xbf16>
    %82 = arith.extf %81 : vector<256x64xbf16> to vector<256x64xf32>
    %83 = arith.addf %79, %82 : vector<256x64xf32>
    %cst_51 = arith.constant 0.000000e+00 : f32
    %84 = vector.broadcast %cst_51 : f32 to vector<256x64xf32>
    %85 = arith.maximumf %83, %84 : vector<256x64xf32>
    %86 = vector.shape_cast %85 : vector<256x64xf32> to vector<16x16x64xf32>
    %c0_52 = arith.constant 0 : index
    %c0_53 = arith.constant 0 : index
    %c0_54 = arith.constant 0 : index
    %c0_55 = arith.constant 0 : index
    %87 = vector.load %arg8[%c0_52, %c0_53, %c0_54, %c0_55] : memref<1x16x16x64xf32, #tpu.memory_space<vmem>>, vector<1x16x16x64xf32>
    %88 = vector.shape_cast %87 : vector<1x16x16x64xf32> to vector<16x16x64xf32>
    %89 = vector.shape_cast %86 : vector<16x16x64xf32> to vector<1x16x16x64xf32>
    tpu.vector_store %arg8[%c0_52, %c0_53, %c0_54, %c0_55], %89 {strides = array<i32>} : memref<1x16x16x64xf32, #tpu.memory_space<vmem>>, vector<1x16x16x64xf32>,
    return
  }
  func.func @transform_0(%arg0: i32) -> (i32, i32, i32, i32) {
    %c0_i32 = arith.constant 0 : i32
    %c0_i32_0 = arith.constant 0 : i32
    %c0_i32_1 = arith.constant 0 : i32
    %c0_i32_2 = arith.constant 0 : i32
    return %arg0, %c0_i32, %c0_i32_0, %c0_i32_1 : i32, i32, i32, i32
  }
  func.func @transform_1(%arg0: i32) -> (i32, i32, i32) {
    %c0_i32 = arith.constant 0 : i32
    %c0_i32_0 = arith.constant 0 : i32
    %c0_i32_1 = arith.constant 0 : i32
    %c0_i32_2 = arith.constant 0 : i32
    return %c0_i32, %c0_i32_0, %c0_i32_1 : i32, i32, i32
  }
  func.func @transform_2(%arg0: i32) -> (i32, i32) {
    %c0_i32 = arith.constant 0 : i32
    %c0_i32_0 = arith.constant 0 : i32
    %c0_i32_1 = arith.constant 0 : i32
    return %c0_i32, %c0_i32_0 : i32, i32
  }
  func.func @transform_3(%arg0: i32) -> (i32, i32) {
    %c0_i32 = arith.constant 0 : i32
    %c0_i32_0 = arith.constant 0 : i32
    %c0_i32_1 = arith.constant 0 : i32
    return %c0_i32, %c0_i32_0 : i32, i32
  }
  func.func @transform_4(%arg0: i32) -> (i32, i32, i32) {
    %c0_i32 = arith.constant 0 : i32
    %c0_i32_0 = arith.constant 0 : i32
    %c0_i32_1 = arith.constant 0 : i32
    %c0_i32_2 = arith.constant 0 : i32
    return %c0_i32, %c0_i32_0, %c0_i32_1 : i32, i32, i32
  }
  func.func @transform_5(%arg0: i32) -> (i32, i32) {
    %c0_i32 = arith.constant 0 : i32
    %c0_i32_0 = arith.constant 0 : i32
    %c0_i32_1 = arith.constant 0 : i32
    return %c0_i32, %c0_i32_0 : i32, i32
  }
  func.func @transform_6(%arg0: i32) -> (i32, i32) {
    %c0_i32 = arith.constant 0 : i32
    %c0_i32_0 = arith.constant 0 : i32
    %c0_i32_1 = arith.constant 0 : i32
    return %c0_i32, %c0_i32_0 : i32, i32
  }
  func.func @transform_7(%arg0: i32) -> (i32, i32, i32, i32) {
    %c0_i32 = arith.constant 0 : i32
    %c0_i32_0 = arith.constant 0 : i32
    %c0_i32_1 = arith.constant 0 : i32
    %c0_i32_2 = arith.constant 0 : i32
    return %arg0, %c0_i32, %c0_i32_0, %c0_i32_1 : i32, i32, i32, i32
  }
}

</mosaic_0001>

<bundles_post_ra>
// kernel: basic_block.1
= control target key start
LH: loop header
LB: loop body
LE: loop exit
PB: predicated region body
PF: predicated region fallthrough
CT: control target
= control target key end

     0   :  { %12 = vsyncpa [#allocation4], 0  ;;  %s8764_s0 = inlined_call_operand.vmem [shape: bf16[2,18,18,64], index: 0, kind: input, shape index: {}]   ;;  %s8765_s1 = inlined_call_operand.vmem [shape: bf16[3,192,64], index: 1, kind: input, shape index: {}]   ;;  %s8766_s2 = inlined_call_operand.vmem [shape: f32[1,64], index: 2, kind: input, shape index: {}]   ;;  %s8767_s3 = inlined_call_operand.vmem [shape: f32[1,64], index: 3, kind: input, shape index: {}]   ;;  %s8768_s4 = inlined_call_operand.vmem [shape: bf16[3,192,64], index: 4, kind: input, shape index: {}]   ;;  %s8769_s5 = inlined_call_operand.vmem [shape: f32[1,64], index: 5, kind: input, shape index: {}]   ;;  %s8770_s6 = inlined_call_operand.vmem [shape: f32[1,64], index: 6, kind: input, shape index: {}]   ;;  %s8771_s7 = inlined_call_operand.hbm [shape: f32[2,16,16,64], index: 7, kind: output, shape index: {}]  }
   0x1   :  { %14 = vsyncpa [#allocation4 + $0x1], 0  ;;  %s6722_s24 = smov 0   ;;  %s6724_s25 = smov 0  }
   0x2   :  { %s6726_s26 = smov 0   ;;  %s6728_s27 = smov 0  }
   0x3 LB: > { %s6743_s28 = sadd.s32 4294967295, %s6675_s27   ;;  %s5540_s29 = sadd.s32 4294967294, %s6675_s27   ;;  %s6675_s27 = sphi %s6728_s27, %s8847_s27   ;;  %s6671_s26 = sphi %s6726_s26, %s8846_s26   ;;  %s6667_s25 = sphi %s6724_s25, %s8845_s25   ;;  %s6663_s24 = sphi %s6722_s24, %s8844_s24  }
   0x4   : > { %s6747_s30 = sadd.s32 1, %s6675_s27   ;;  %s179_s8 = sadd.s32 1, %s6671_s26 }
   0x5   : > { %s176_s9 = ssub.s32 %s6675_s27, %s6747_s30  ;;  %p189_p0 = scmp.ne.s32.totalorder %s6671_s26, %s6667_s25 }
   0x6   : > { %p177_p1 = scmp.eq.s32.totalorder %s176_s9, 0  ;;  %p190_p2 = scmp.eq.s32.totalorder %s6743_s28, 1 }
   0x7   : > { %p195_p3 = scmp.ne.s32.totalorder %s6667_s25, %s6663_s24  ;;  %p196_p4 = scmp.eq.s32.totalorder %s5540_s29, 1 }
   0x8   : > { %s6758_s10 = scalar_select %p177_p1, %s6671_s26, %s179_s8  }
   0x9   : > { %p6760_p5 = por %p190_p2, %p189_p0  ;;  %p6764_p6 = por %p196_p4, %p195_p3 }
   0xa   : > { %p5543_p7 = scmp.ge.s32.totalorder %s6675_s27, 1  ;;  %p240_p8 = scmp.lt.s32.totalorder %s6675_s27, 3 }
   0xc   : > { %p241_p9 = pnand %p5543_p7, %p240_p8 }
   0xe   : > { %244 = sbr.rel (%p241_p9) target bundleno = 1389 (0x56d), region = 48 }
  0x15   : > { %p272_p10 = scmp.lt.s32.totalorder %s6743_s28, 1  ;;  %v6334_v0 = vld [vmem:[%s8765_s1 + $0x60] sm:$0xff]   ;;  %v8775_v1 = vmov 0   ;;  %v6335_v2 = vld [vmem:[%s8765_s1 + $0x68] sm:$0xff]   ;;  %v6338_v3 = vld [vmem:[%s8765_s1 + $0x70] sm:$0xff]   ;;  %s6678_s14 = smov 64  }
  0x16   : > { %980 = vmatprep.subr.bf16.mxu0 %v8775_v1  ;;  %3562 = vmatprep.subr.bf16.mxu1 %v8775_v1  ;;  %v6339_v19 = vld [vmem:[%s8765_s1 + $0x78] sm:$0xff]   ;;  %vm460_vm0 = vsmask.f32 7424  ;;  %v6342_v38 = vld [vmem:[%s8765_s1 + $0x80] sm:$0xff]   ;;  %v6343_v57 = vld [vmem:[%s8765_s1 + $0x88] sm:$0xff]   ;;  %vm685_vm1 = vcmask 1046528  }
  0x17   : > { %s273_s15 = scalar_select %p272_p10, %s6743_s28, 1  ;;  %981 = vmatpush1.bf16.msra.mxu0 %v6334_v0  ;;  %vm734_vm2 = vcmask 523264   ;;  %vm1808_vm3 = vcmask 519168   ;;  %vm1811_vm4 = vcmask 516096   ;;  %vm2285_vm5 = vsmask.f32 7938 }
  0x18   : > { %982 = vmatprep.subr.bf16.mxu0 %v8775_v1  ;;  %1813 = vst.msk [vmem:[#allocation2 + $0xc] sm:$0xf] %vm1808_vm3, %v8775_v1  ;;  %1809 = vst.msk [vmem:[#allocation2] sm:$0xf] %vm1808_vm3, %v8775_v1  ;;  %vm1960_vm6 = vsmask.f32 256 }
  0x19   : > { %s6272_s18 = smul.u32 216, %s273_s15  ;;  %1810 = vst.msk [vmem:[#allocation2 + $0x4] sm:$0xf] %vm1808_vm3, %v8775_v1  ;;  %1814 = vst.msk [vmem:[#allocation2 + $0x10] sm:$0xf] %vm1808_vm3, %v8775_v1  ;;  %s269_s9 = sand.u32 1, %s6667_s25  }
  0x1a   : > { %1816 = vst.msk [vmem:[#allocation2 + $0x18] sm:$0xf] %vm1808_vm3, %v8775_v1  ;;  %1817 = vst.msk [vmem:[#allocation2 + $0x1c] sm:$0xf] %vm1808_vm3, %v8775_v1  ;;  %vm1961_vm7 = vsmask.f32 4368 }
  0x1b   : > { %s6784_s21 = scalar_lea.vmem %s8764_s0, %s6272_s18  ;;  %983 = vmatpush1.bf16.msra.mxu0 %v6335_v2  ;;  %1819 = vst.msk [vmem:[#allocation2 + $0x24] sm:$0xf] %vm1808_vm3, %v8775_v1  ;;  %1820 = vst.msk [vmem:[#allocation2 + $0x28] sm:$0xf] %vm1808_vm3, %v8775_v1  ;;  %vm4917_vm11 = vsmask.f32 3328 }
  0x1c   : > { %v281_v4 = vld [vmem:[%s6784_s21 + $0xc] sm:$0xf]  ;;  %v282_v5 = vld [vmem:[%s6784_s21 + $0x10] sm:$0xf]  ;;  %v283_v6 = vld [vmem:[%s6784_s21 + $0x14] sm:$0x1]  ;;  %984 = vmatprep.subr.bf16.mxu0 %v8775_v1 }
  0x1d   : > { %v6793_v7 = vcombine.low %v281_v4, %v282_v5  ;;  %v6795_v8 = vcombine.low %v283_v6, %v283_v6  ;;  %v284_v9 = vld [vmem:[%s6784_s21 + $0x18] sm:$0xf]  ;;  %v285_v10 = vld [vmem:[%s6784_s21 + $0x1c] sm:$0xf]  ;;  %v286_v11 = vld [vmem:[%s6784_s21 + $0x20] sm:$0x1] }
  0x1e   : > { %v6800_v12 = vcombine.low %v284_v9, %v285_v10  ;;  %v287_v13 = vld [vmem:[%s6784_s21 + $0x24] sm:$0xf]  ;;  %v288_v14 = vld [vmem:[%s6784_s21 + $0x28] sm:$0xf]  ;;  %v289_v18 = vld [vmem:[%s6784_s21 + $0x2c] sm:$0x1]  ;;  %v6811_v20 = vcombine.low %v286_v11, %v286_v11 }
  0x1f   : > { %v474_v15 = vshrl.u32 %v6793_v7, 16  ;;  %v476_v16 = vshll.u32 %v6793_v7, 16  ;;  %v481_v17 = vshll.u32 %v6795_v8, 16  ;;  %985 = vmatpush1.bf16.msra.mxu0 %v6338_v3  ;;  %v290_v23 = vld [vmem:[%s6784_s21 + $0x30] sm:$0xf]  ;;  %v6817_v26 = vcombine.low %v287_v13, %v288_v14  ;;  %vm7590_vm8 = vmand %vm1808_vm3, %vm2285_vm5  ;;  %s5544_s16 = sshll.u32 %s269_s9, 8 }
  0x20   : > { %v486_v21 = vshrl.u32 %v6800_v12, 16  ;;  %v488_v22 = vshll.u32 %v6800_v12, 16  ;;  %986 = vmatprep.subr.bf16.mxu0 %v8775_v1  ;;  %v6819_v27 = vcombine.low %v289_v18, %v289_v18  ;;  %v291_v28 = vld [vmem:[%s6784_s21 + $0x34] sm:$0xf]  ;;  %v292_v29 = vld [vmem:[%s6784_s21 + $0x38] sm:$0x1]  ;;  %vm7599_vm9 = vmor %vm1960_vm6, %vm1961_vm7 }
  0x21   : > { %v478_v24 = vrot.slane %v476_v16, 1  ;;  %v483_v25 = vrot.slane %v481_v17, 1  ;;  %v493_v31 = vshll.u32 %v6811_v20, 16  ;;  %v6824_v32 = vcombine.low %v290_v23, %v291_v28  ;;  %v293_v37 = vld [vmem:[%s6784_s21 + $0x3c] sm:$0xf]  ;;  %v6346_v14 = vld [vmem:[%s8765_s1 + $0x90] sm:$0xff]   ;;  %vm7606_vm10 = vmand %vm1811_vm4, %vm1960_vm6 }
  0x22   : > { %v490_v30 = vrot.slane %v488_v22, 1  ;;  %v498_v34 = vshrl.u32 %v6817_v26, 16  ;;  %v500_v35 = vshll.u32 %v6817_v26, 16  ;;  %v505_v36 = vshll.u32 %v6819_v27, 16  ;;  %v294_v42 = vld [vmem:[%s6784_s21 + $0x40] sm:$0xf] }
  0x23   : > { %v479_v33 = vor.u32 %v478_v24, %v474_v15  ;;  %987 = vmatpush1.bf16.msra.mxu0 %v6339_v19  ;;  %v495_v40 = vrot.slane %v493_v31, 1  ;;  %v6833_v41 = vcombine.low %v292_v29, %v292_v29  ;;  %v295_v43 = vld [vmem:[%s6784_s21 + $0x44] sm:$0x1]  ;;  %v296_v47 = vld [vmem:[%s6784_s21 + $0x48] sm:$0xf]  ;;  %v510_v49 = vshrl.u32 %v6824_v32, 16 }
  0x24   : > { %v491_v39 = vor.u32 %v490_v30, %v486_v21  ;;  %988 = vmatprep.subr.bf16.mxu0 %v8775_v1  ;;  %v502_v45 = vrot.slane %v500_v35, 1  ;;  %v507_v46 = vrot.slane %v505_v36, 1  ;;  %v297_v48 = vld [vmem:[%s6784_s21 + $0x4c] sm:$0xf]  ;;  %v512_v50 = vshll.u32 %v6824_v32, 16  ;;  %s8493_s17 = scalar_lea.vmem [#allocation3], %s5544_s16 }
  0x25   : > { %v484_v44 = vsel %vm460_vm0, %v479_v33, %v483_v25  ;;  %v517_v51 = vshll.u32 %v6833_v41, 16  ;;  %v298_v52 = vld [vmem:[%s6784_s21 + $0x50] sm:$0x1]  ;;  %v6847_v55 = vcombine.low %v293_v37, %v294_v42  ;;  %v6849_v56 = vcombine.low %v295_v43, %v295_v43  ;;  %v299_v62 = vld [vmem:[%s6784_s21 + $0x54] sm:$0xf]  ;;  %s5478_s18 = sshll.u32 %s8493_s17, 4  ;;  %s8715_s18 = int_to_ptr.vmem [resolvable:$true] %s5478_s18 }
  0x26   : > { %655 = vrot.lane.b32.xlu0 %v484_v44, %s6678_s14  ;;  %v496_v53 = vsel %vm460_vm0, %v491_v39, %v495_v40  ;;  %v503_v54 = vor.u32 %v502_v45, %v498_v34  ;;  %v514_v58 = vrot.slane %v512_v50, 1  ;;  %v6854_v60 = vcombine.low %v296_v47, %v297_v48  ;;  %v300_v63 = vld [vmem:[%s6784_s21 + $0x58] sm:$0xf]  ;;  %v301_v5 = vld [vmem:[%s6784_s21 + $0x5c] sm:$0x1]  ;;  %s6613_s23 = scalar_lea.vmem %s8715_s18, 4096 }
  0x27   : > { %989 = vmatpush1.bf16.msra.mxu0 %v6342_v38  ;;  %v519_v59 = vrot.slane %v517_v51, 1  ;;  %v6856_v61 = vcombine.low %v298_v52, %v298_v52  ;;  %v522_v2 = vshrl.u32 %v6847_v55, 16  ;;  %v524_v3 = vshll.u32 %v6847_v55, 16  ;;  %v302_v13 = vld [vmem:[%s6784_s21 + $0x60] sm:$0xf]  ;;  %v6347_v44 = vld [vmem:[%s8765_s1 + $0x98] sm:$0xff]   ;;  %p6614_p11 = scmp.ne.s32.totalorder %s8715_s18, %s6613_s23 }
  0x28   : > { %990 = vmatprep.subr.bf16.mxu0 %v8775_v1  ;;  %v508_v0 = vsel %vm460_vm0, %v503_v54, %v507_v46  ;;  %v529_v4 = vshll.u32 %v6849_v56, 16  ;;  %v515_v6 = vor.u32 %v514_v58, %v510_v49  ;;  %v534_v9 = vshrl.u32 %v6854_v60, 16  ;;  %v303_v18 = vld [vmem:[%s6784_s21 + $0x64] sm:$0xf]  ;;  %v304_v19 = vld [vmem:[%s6784_s21 + $0x68] sm:$0x1] }
  0x29   : > { %659 = vrot.lane.b32.xlu1 %v508_v0, %s6678_s14  ;;  %v536_v10 = vshll.u32 %v6854_v60, 16  ;;  %v541_v11 = vshll.u32 %v6856_v61, 16  ;;  %v526_v15 = vrot.slane %v524_v3, 1  ;;  %v6875_v17 = vcombine.low %v299_v62, %v300_v63  ;;  %v305_v25 = vld [vmem:[%s6784_s21 + $0x6c] sm:$0xf]  ;;  %v6350_v0 = vld [vmem:[%s8765_s1 + $0xa0] sm:$0xff]   ;;  %p6615_p12 = pnand %p6614_p11, %p6760_p5 }
  0x2a   : > { %657 = vrot.lane.b32.xlu0 %v496_v53, %s6678_s14  ;;  %v531_v16 = vrot.slane %v529_v4, 1  ;;  %v520_v21 = vsel %vm460_vm0, %v515_v6, %v519_v59  ;;  %v6880_v24 = vcombine.low %v301_v5, %v301_v5  ;;  %v306_v28 = vld [vmem:[%s6784_s21 + $0x70] sm:$0xf]  ;;  %v6889_v35 = vcombine.low %v302_v13, %v303_v18  ;;  %v307_v37 = vld [vmem:[%s6784_s21 + $0x74] sm:$0x1] }
  0x2b   : > { %991 = vmatpush1.bf16.msra.mxu0 %v6343_v57  ;;  %v538_v22 = vrot.slane %v536_v10, 1  ;;  %v543_v23 = vrot.slane %v541_v11, 1  ;;  %v527_v29 = vor.u32 %v526_v15, %v522_v2  ;;  %v546_v30 = vshrl.u32 %v6875_v17, 16  ;;  %v308_v42 = vld [vmem:[%s6784_s21 + $0x78] sm:$0xf]  ;;  %p6616_p13 = pneg %p6615_p12 }
  0x2c   : > { %992 = vmatprep.subr.bf16.mxu0 %v8775_v1  ;;  %v548_v31 = vshll.u32 %v6875_v17, 16  ;;  %v553_v34 = vshll.u32 %v6880_v24, 16  ;;  %v6891_v36 = vcombine.low %v304_v19, %v304_v19  ;;  %v6895_v40 = vcombine.low %v305_v25, %v306_v28  ;;  %v309_v43 = vld [vmem:[%s6784_s21 + $0x7c] sm:$0xf]  ;;  %v310_v49 = vld [vmem:[%s6784_s21 + $0x80] sm:$0x1] }
  0x2d   : > { %661 = vrot.lane.b32.xlu1 %v520_v21, %s6678_s14  ;;  %v539_v33 = vor.u32 %v538_v22, %v534_v9  ;;  %v532_v38 = vsel %vm460_vm0, %v527_v29, %v531_v16  ;;  %v558_v47 = vshrl.u32 %v6889_v35, 16  ;;  %v560_v48 = vshll.u32 %v6889_v35, 16  ;;  %v311_v53 = vld [vmem:[%s6784_s21 + $0x84] sm:$0xf]  ;;  %v312_v54 = vld [vmem:[%s6784_s21 + $0x88] sm:$0xf] }
  0x2e   : > { %v550_v39 = vrot.slane %v548_v31, 1  ;;  %663 = vrot.lane.b32.xlu0 %v532_v38, %s6678_s14  ;;  %v555_v46 = vrot.slane %v553_v34, 1  ;;  %v565_v51 = vshll.u32 %v6891_v36, 16  ;;  %v6909_v52 = vcombine.low %v307_v37, %v307_v37  ;;  %v313_v63 = vld [vmem:[%s6784_s21 + $0x8c] sm:$0x1] }
  0x2f   : > { %993 = vmatpush1.bf16.msra.mxu0 %v6346_v14  ;;  %v544_v45 = vsel %vm460_vm0, %v539_v33, %v543_v23  ;;  %v562_v57 = vrot.slane %v560_v48, 1  ;;  %v570_v58 = vshrl.u32 %v6895_v40, 16  ;;  %v572_v59 = vshll.u32 %v6895_v40, 16  ;;  %v314_v6 = vld [vmem:[%s6784_s21 + $0x90] sm:$0xf]  ;;  %v6351_v37 = vld [vmem:[%s8765_s1 + $0xa8] sm:$0xff]  }
  0x30   : > { %994 = vmatprep.subr.bf16.mxu0 %v8775_v1  ;;  %v551_v50 = vor.u32 %v550_v39, %v546_v30  ;;  %v6916_v62 = vcombine.low %v308_v42, %v309_v43  ;;  %v567_v3 = vrot.slane %v565_v51, 1  ;;  %v577_v4 = vshll.u32 %v6909_v52, 16  ;;  %v315_v9 = vld [vmem:[%s6784_s21 + $0x94] sm:$0xf]  ;;  %v316_v19 = vld [vmem:[%s6784_s21 + $0x98] sm:$0x1] }
  0x31   : > { %665 = vrot.lane.b32.xlu1 %v544_v45, %s6678_s14  ;;  %v6924_v5 = vcombine.low %v310_v49, %v310_v49  ;;  %v563_v10 = vor.u32 %v562_v57, %v558_v47  ;;  %v574_v11 = vrot.slane %v572_v59, 1  ;;  %v6933_v18 = vcombine.low %v311_v53, %v312_v54  ;;  %v317_v21 = vld [vmem:[%s6784_s21 + $0x9c] sm:$0xf]  ;;  %v318_v29 = vld [vmem:[%s6784_s21 + $0xa0] sm:$0xf] }
  0x32   : > { %v556_v2 = vsel %vm460_vm0, %v551_v50, %v555_v46  ;;  %v582_v13 = vshrl.u32 %v6916_v62, 16  ;;  %v584_v14 = vshll.u32 %v6916_v62, 16  ;;  %v579_v15 = vrot.slane %v577_v4, 1  ;;  %v319_v30 = vld [vmem:[%s6784_s21 + $0xa4] sm:$0x1] }
  0x33   : > { %995 = vmatpush1.bf16.msra.mxu0 %v6347_v44  ;;  %667 = vrot.lane.b32.xlu0 %v556_v2, %s6678_s14  ;;  %v589_v16 = vshll.u32 %v6924_v5, 16  ;;  %v568_v22 = vsel %vm460_vm0, %v563_v10, %v567_v3  ;;  %v575_v23 = vor.u32 %v574_v11, %v570_v58  ;;  %v6938_v28 = vcombine.low %v313_v63, %v313_v63  ;;  %v320_v47 = vld [vmem:[%s6784_s21 + $0xa8] sm:$0xf]  ;;  %v321_v53 = vld [vmem:[%s6784_s21 + $0xac] sm:$0xf]  ;;  %v6354_v63 = vld [vmem:[%s8765_s1 + $0xb0] sm:$0xff]  }
  0x34   : > { %996 = vmatprep.subr.bf16.mxu0 %v8775_v1  ;;  %v586_v25 = vrot.slane %v584_v14, 1  ;;  %v594_v33 = vshrl.u32 %v6933_v18, 16  ;;  %v596_v34 = vshll.u32 %v6933_v18, 16  ;;  %v6950_v43 = vcombine.low %v314_v6, %v315_v9  ;;  %v322_v59 = vld [vmem:[%s6784_s21 + $0xb0] sm:$0x1] }
  0x35   : > { %669 = vrot.lane.b32.xlu1 %v568_v22, %s6678_s14  ;;  %v591_v31 = vrot.slane %v589_v16, 1  ;;  %v580_v38 = vsel %vm460_vm0, %v575_v23, %v579_v15  ;;  %v601_v42 = vshll.u32 %v6938_v28, 16  ;;  %v6954_v45 = vcombine.low %v316_v19, %v316_v19  ;;  %v323_v19 = vld [vmem:[%s6784_s21 + $0xb4] sm:$0xf]  ;;  %v6355_v23 = vld [vmem:[%s8765_s1 + $0xb8] sm:$0xff]  }
  0x36   : > { %v587_v39 = vor.u32 %v586_v25, %v582_v13  ;;  %v598_v44 = vrot.slane %v596_v34, 1  ;;  %v6956_v46 = vcombine.low %v317_v21, %v318_v29  ;;  %v606_v50 = vshrl.u32 %v6950_v43, 16  ;;  %v324_v25 = vld [vmem:[%s6784_s21 + $0xb8] sm:$0xf]  ;;  %v325_v34 = vld [vmem:[%s6784_s21 + $0xbc] sm:$0x1] }
  0x37   : > { %997 = vmatpush1.bf16.msra.mxu0 %v6350_v0  ;;  %671 = vrot.lane.b32.xlu0 %v580_v38, %s6678_s14  ;;  %v603_v49 = vrot.slane %v601_v42, 1  ;;  %v608_v51 = vshll.u32 %v6950_v43, 16  ;;  %v613_v57 = vshll.u32 %v6954_v45, 16  ;;  %v6965_v58 = vcombine.low %v319_v30, %v319_v30  ;;  %1822 = vst.msk [vmem:[#allocation2 + $0x30] sm:$0xf] %vm1808_vm3, %v8775_v1 }
  0x38   : > { %998 = vmatprep.subr.bf16.mxu0 %v8775_v1  ;;  %v592_v48 = vsel %vm460_vm0, %v587_v39, %v591_v31  ;;  %v599_v54 = vor.u32 %v598_v44, %v594_v33  ;;  %v618_v2 = vshrl.u32 %v6956_v46, 16  ;;  %v620_v3 = vshll.u32 %v6956_v46, 16  ;;  %1823 = vst.msk [vmem:[#allocation2 + $0x34] sm:$0xf] %vm1808_vm3, %v8775_v1  ;;  %1825 = vst.msk [vmem:[#allocation2 + $0x3c] sm:$0xf] %vm1808_vm3, %v8775_v1 }
  0x39   : > { %673 = vrot.lane.b32.xlu1 %v592_v48, %s6678_s14  ;;  %v610_v0 = vrot.slane %v608_v51, 1  ;;  %v6973_v4 = vcombine.low %v320_v47, %v321_v53  ;;  %v615_v9 = vrot.slane %v613_v57, 1  ;;  %v625_v10 = vshll.u32 %v6965_v58, 16  ;;  %v327_v51 = vld [vmem:[%s6784_s21 + $0xc4] sm:$0xf] }
  0x3a   : > { %v604_v6 = vsel %vm460_vm0, %v599_v54, %v603_v49  ;;  %v6978_v11 = vcombine.low %v322_v59, %v322_v59  ;;  %v622_v14 = vrot.slane %v620_v3, 1  ;;  %v689_v29 = vrot.slane %v6793_v7, 1  ;;  %v7013_v59 = vld [vmem:[%s6784_s21] sm:$0xff]   ;;  %1826 = vst.msk [vmem:[#allocation2 + $0x40] sm:$0xf] %vm1808_vm3, %v8775_v1 }
  0x3b   : > { %999 = vmatpush1.bf16.msra.mxu0 %v6351_v37  ;;  %675 = vrot.lane.b32.xlu0 %v604_v6, %s6678_s14  ;;  %v611_v13 = vor.u32 %v610_v0, %v606_v50  ;;  %v630_v15 = vshrl.u32 %v6973_v4, 16  ;;  %v632_v16 = vshll.u32 %v6973_v4, 16  ;;  %v627_v21 = vrot.slane %v625_v10, 1  ;;  %v326_v50 = vld [vmem:[%s6784_s21 + $0xc0] sm:$0xf] }
  0x3c   : > { %1000 = vmatprep.subr.bf16.mxu0 %v8775_v1  ;;  %v637_v22 = vshll.u32 %v6978_v11, 16  ;;  %v623_v31 = vor.u32 %v622_v14, %v618_v2  ;;  %v6993_v37 = vcombine.low %v323_v19, %v324_v25  ;;  %v6996_v39 = vcombine.low %v325_v34, %v325_v34  ;;  %v7026_v14 = vld [vmem:[%s6784_s21 + $0x8] ss:$0 sps:$4 sm:$0x11]   ;;  %1828 = vst.msk [vmem:[#allocation2 + $0x48] sm:$0xf] %vm1808_vm3, %v8775_v1 }
  0x3d   : > { %v616_v30 = vsel %vm460_vm0, %v611_v13, %v615_v9  ;;  %v634_v33 = vrot.slane %v632_v16, 1  ;;  %v690_v42 = vrot.slane %v6795_v8, 1  ;;  %v328_v8 = vld [vmem:[%s6784_s21 + $0xc8] sm:$0x1]  ;;  %v7010_v57 = vcombine.low %v326_v50, %v327_v51  ;;  %1829 = vst.msk [vmem:[#allocation2 + $0x4c] sm:$0xf] %vm1808_vm3, %v8775_v1 }
  0x3e   : > { %677 = vrot.lane.b32.xlu1 %v616_v30, %s6678_s14  ;;  %v639_v38 = vrot.slane %v637_v22, 1  ;;  %v628_v44 = vsel %vm460_vm0, %v623_v31, %v627_v21  ;;  %v642_v48 = vshrl.u32 %v6993_v37, 16  ;;  %v644_v49 = vshll.u32 %v6993_v37, 16  ;;  %1831 = vst.msk [vmem:[#allocation2 + $0x54] sm:$0xf] %vm1808_vm3, %v8775_v1 }
  0x3f   : > { %1001 = vmatpush1.bf16.msra.mxu0 %v6354_v63  ;;  %v635_v47 = vor.u32 %v634_v33, %v630_v15  ;;  %679 = vrot.lane.b32.xlu0 %v628_v44, %s6678_s14  ;;  %v649_v53 = vshll.u32 %v6996_v39, 16  ;;  %v7007_v54 = vsel %vm685_vm1, %v689_v29, %v690_v42  ;;  %v7019_v2 = vcombine.low %v328_v8, %v328_v8  ;;  %v6358_v44 = vld [vmem:[%s8765_s1] sm:$0xff]   ;;  %v6364_v8 = vld [vmem:[%s8765_s1 + $0x10] sm:$0xff]  }
  0x40   : > { %1002 = vmatprep.subr.bf16.mxu0 %v8775_v1  ;;  %v646_v0 = vrot.slane %v644_v49, 1  ;;  %5616 = vmatprep.mubr.msk.bf16.mxu0 %vm734_vm2, %v7007_v54  ;;  %v816_v6 = vshrl.u32 %v7010_v57, 16  ;;  %v818_v9 = vshll.u32 %v7010_v57, 16  ;;  %v462_v16 = vshrl.u32 %v7013_v59, 16  ;;  %1832 = vst.msk [vmem:[#allocation2 + $0x58] sm:$0xf] %vm1808_vm3, %v8775_v1 }
  0x41   : > { %v640_v63 = vsel %vm460_vm0, %v635_v47, %v639_v38  ;;  %v651_v3 = vrot.slane %v649_v53, 1  ;;  %v823_v13 = vshll.u32 %v7019_v2, 16  ;;  %v464_v19 = vshll.u32 %v7013_v59, 16  ;;  %1834 = vst.msk [vmem:[#allocation2 + $0x60] sm:$0xf] %vm1808_vm3, %v8775_v1 }
  0x42   : > { %681 = vrot.lane.b32.xlu1 %v640_v63, %s6678_s14  ;;  %v647_v10 = vor.u32 %v646_v0, %v642_v48  ;;  %v820_v15 = vrot.slane %v818_v9, 1  ;;  %v692_v38 = vrot.slane %v6800_v12, 1  ;;  %v693_v42 = vrot.slane %v6811_v20, 1  ;;  %v6361_v20 = vld [vmem:[%s8765_s1 + $0x8] sm:$0xff]   ;;  %v6366_v9 = vld [vmem:[%s8765_s1 + $0x20] sm:$0xff]  }
  0x43   : > { %1003 = vmatpush1.bf16.msra.mxu0 %v6355_v23  ;;  %v825_v22 = vrot.slane %v823_v13, 1  ;;  %v469_v23 = vshll.u32 %v7026_v14, 16  ;;  %v466_v29 = vrot.slane %v464_v19, 1  ;;  %v695_v51 = vrot.slane %v6817_v26, 1  ;;  %v6368_v19 = vld [vmem:[%s8765_s1 + $0x30] sm:$0xff]  }
  0x44   : > { %1216 = vmatprep.subr.bf16.mxu0 %v8775_v1  ;;  %v652_v21 = vsel %vm460_vm0, %v647_v10, %v651_v3  ;;  %v821_v25 = vor.u32 %v820_v15, %v816_v6  ;;  %v7043_v48 = vsel %vm685_vm1, %v692_v38, %v693_v42  ;;  %v696_v53 = vrot.slane %v6819_v27, 1  ;;  %v6372_v38 = vld [vmem:[%s8765_s1 + $0x50] sm:$0xff]   ;;  %1835 = vst.msk [vmem:[#allocation2 + $0x64] sm:$0xf] %vm1808_vm3, %v8775_v1 }
  0x45   : > { %683 = vrot.lane.b32.xlu0 %v652_v21, %s6678_s14  ;;  %v471_v30 = vrot.slane %v469_v23, 1  ;;  %v467_v33 = vor.u32 %v466_v29, %v462_v16  ;;  %v698_v0 = vrot.slane %v6824_v32, 1  ;;  %v699_v3 = vrot.slane %v6833_v41, 1  ;;  %v6370_v29 = vld [vmem:[%s8765_s1 + $0x40] sm:$0xff]   ;;  %1837 = vst.msk [vmem:[#allocation2 + $0x6c] sm:$0xf] %vm1808_vm3, %v8775_v1 }
  0x46   : > { %v826_v31 = vsel %vm460_vm0, %v821_v25, %v825_v22  ;;  %v7066_v63 = vsel %vm685_vm1, %v695_v51, %v696_v53  ;;  %v701_v13 = vrot.slane %v6847_v55, 1  ;;  %v702_v15 = vrot.slane %v6849_v56, 1  ;;  %1838 = vst.msk [vmem:[#allocation2 + $0x70] sm:$0xf] %vm1808_vm3, %v8775_v1  ;;  %1840 = vst.msk [vmem:[#allocation2 + $0x78] sm:$0xf] %vm1808_vm3, %v8775_v1 }
  0x47   : > { %827 = vrot.lane.b32.xlu1 %v826_v31, %s6678_s14  ;;  %v472_v34 = vsel %vm460_vm0, %v467_v33, %v471_v30  ;;  %v7086_v10 = vsel %vm685_vm1, %v698_v0, %v699_v3  ;;  %v704_v22 = vrot.slane %v6854_v60, 1  ;;  %v705_v23 = vrot.slane %v6856_v61, 1  ;;  %1841 = vst.msk [vmem:[#allocation2 + $0x7c] sm:$0xf] %vm1808_vm3, %v8775_v1  ;;  %1843 = vst.msk [vmem:[#allocation2 + $0x84] sm:$0xf] %vm1808_vm3, %v8775_v1 }
  0x48   : > { %v7106_v21 = vsel %vm685_vm1, %v701_v13, %v702_v15  ;;  %v707_v31 = vrot.slane %v6875_v17, 1  ;;  %v708_v33 = vrot.slane %v6880_v24, 1  ;;  %v714_v53 = vrot.slane %v6909_v52, 1  ;;  %1844 = vst.msk [vmem:[#allocation2 + $0x88] sm:$0xf] %vm1808_vm3, %v8775_v1 }
  0x49   : > { %653 = vrot.lane.b32.xlu0 %v472_v34, %s6678_s14  ;;  %v7126_v30 = vsel %vm685_vm1, %v704_v22, %v705_v23  ;;  %v717_v0 = vrot.slane %v6924_v5, 1  ;;  %v722_v13 = vrot.slane %v6950_v43, 1  ;;  %v723_v15 = vrot.slane %v6954_v45, 1  ;;  %1846 = vst.msk [vmem:[#allocation2 + $0x90] sm:$0xf] %vm1808_vm3, %v8775_v1 }
  0x4a   : > { %v7146_v42 = vsel %vm685_vm1, %v707_v31, %v708_v33  ;;  %v728_v23 = vrot.slane %v6973_v4, 1  ;;  %v732_v31 = vrot.slane %v6996_v39, 1  ;;  %1847 = vst.msk [vmem:[#allocation2 + $0x94] sm:$0xf] %vm1808_vm3, %v8775_v1  ;;  %1849 = vst.msk [vmem:[#allocation2 + $0x9c] sm:$0xf] %vm1808_vm3, %v8775_v1 }
  0x4b   : > { %1850 = vst.msk [vmem:[#allocation2 + $0xa0] sm:$0xf] %vm1808_vm3, %v8775_v1  ;;  %1852 = vst.msk [vmem:[#allocation2 + $0xa8] sm:$0xf] %vm1808_vm3, %v8775_v1  ;;  %vm4918_vm12 = vsmask.f32 7440 }
  0x4c   : > { %1853 = vst.msk [vmem:[#allocation2 + $0xac] sm:$0xf] %vm1808_vm3, %v8775_v1  ;;  %1855 = vst.msk [vmem:[#allocation2 + $0xb4] sm:$0xf] %vm1808_vm3, %v8775_v1 }
  0x4d   : > { %1856 = vst.msk [vmem:[#allocation2 + $0xb8] sm:$0xf] %vm1808_vm3, %v8775_v1  ;;  %1858 = vst.msk [vmem:[#allocation2 + $0xc0] sm:$0xf] %vm1808_vm3, %v8775_v1 }
  0x4e   : > { %1859 = vst.msk [vmem:[#allocation2 + $0xc4] sm:$0xf] %vm1808_vm3, %v8775_v1  ;;  %1861 = vst.msk [vmem:[#allocation2 + $0xcc] sm:$0xf] %vm1808_vm3, %v8775_v1 }
  0x4f   : > { %1862 = vst.msk [vmem:[#allocation2 + $0xd0] sm:$0xf] %vm1808_vm3, %v8775_v1  ;;  %vm8458_vm13 = vmor %vm4917_vm11, %vm4918_vm12 }
  0x50   : > { %1815 = vst.msk [vmem:[#allocation2 + $0x14] sm:$0x1] %vm1811_vm4, %v8775_v1  ;;  %1812 = vst.msk [vmem:[#allocation2 + $0x8] sm:$0x1] %vm1811_vm4, %v8775_v1 }
  0x51   : > { %1818 = vst.msk [vmem:[#allocation2 + $0x20] sm:$0x1] %vm1811_vm4, %v8775_v1  ;;  %1821 = vst.msk [vmem:[#allocation2 + $0x2c] sm:$0x1] %vm1811_vm4, %v8775_v1 }
  0x52   : > { %1824 = vst.msk [vmem:[#allocation2 + $0x38] sm:$0x1] %vm1811_vm4, %v8775_v1  ;;  %1827 = vst.msk [vmem:[#allocation2 + $0x44] sm:$0x1] %vm1811_vm4, %v8775_v1 }
  0x53   : > { %1830 = vst.msk [vmem:[#allocation2 + $0x50] sm:$0x1] %vm1811_vm4, %v8775_v1  ;;  %1833 = vst.msk [vmem:[#allocation2 + $0x5c] sm:$0x1] %vm1811_vm4, %v8775_v1 }
  0x54   : > { %1836 = vst.msk [vmem:[#allocation2 + $0x68] sm:$0x1] %vm1811_vm4, %v8775_v1  ;;  %1839 = vst.msk [vmem:[#allocation2 + $0x74] sm:$0x1] %vm1811_vm4, %v8775_v1 }
  0x55   : > { %1842 = vst.msk [vmem:[#allocation2 + $0x80] sm:$0x1] %vm1811_vm4, %v8775_v1  ;;  %1845 = vst.msk [vmem:[#allocation2 + $0x8c] sm:$0x1] %vm1811_vm4, %v8775_v1 }
  0x56   : > { %1848 = vst.msk [vmem:[#allocation2 + $0x98] sm:$0x1] %vm1811_vm4, %v8775_v1  ;;  %1851 = vst.msk [vmem:[#allocation2 + $0xa4] sm:$0x1] %vm1811_vm4, %v8775_v1 }
  0x57   : > { %1854 = vst.msk [vmem:[#allocation2 + $0xb0] sm:$0x1] %vm1811_vm4, %v8775_v1  ;;  %1857 = vst.msk [vmem:[#allocation2 + $0xbc] sm:$0x1] %vm1811_vm4, %v8775_v1 }
  0x58   : > { %1860 = vst.msk [vmem:[#allocation2 + $0xc8] sm:$0x1] %vm1811_vm4, %v8775_v1  ;;  %1863 = vst.msk [vmem:[#allocation2 + $0xd4] sm:$0x1] %vm1811_vm4, %v8775_v1 }
  0x98   : > { %v656_v47 = vpop.permute.xlu0 %655 }
  0x99   : > { %v7047_v49 = vsel %vm734_vm2, %v6793_v7, %v656_v47  ;;  %v711_v47 = vrot.slane %v6891_v36, 1  ;;  %v713_v36 = vrot.slane %v6895_v40, 1 }
  0x9a   : > { %1013 = vmatmul.mubr.bf16.vlgmr.msra.gmra.mrb[0].mxu0 %v7047_v49 }
  0x9b   : > { %1217 = vmatpush1.bf16.msra.mxu0 %v6358_v44  ;;  %5617 = vmatprep.mubr.msk.bf16.mxu0 %vm734_vm2, %v7043_v48  ;;  %v660_v27 = vpop.permute.xlu1 %659  ;;  %v710_v44 = vrot.slane %v6889_v35, 1 }
  0x9c   : > { %v658_v50 = vpop.permute.xlu0 %657  ;;  %1218 = vmatprep.subr.bf16.mxu0 %v8775_v1  ;;  %v7080_v6 = vsel %vm734_vm2, %v6817_v26, %v660_v27  ;;  %v6367_v26 = vld [vmem:[%s8765_s1 + $0x28] sm:$0xff]   ;;  %v716_v27 = vrot.slane %v6916_v62, 1 }
  0x9d   : > { %v7060_v7 = vsel %vm734_vm2, %v6800_v12, %v658_v50  ;;  %v6365_v12 = vld [vmem:[%s8765_s1 + $0x18] sm:$0xff]   ;;  %v7163_v50 = vsel %vm685_vm1, %v710_v44, %v711_v47  ;;  %v686_v44 = vrot.slane %v7013_v59, 1  ;;  %v687_v47 = vrot.slane %v7026_v14, 1  ;;  %v6374_v14 = vld [vmem:[%s8765_s1 + $0xc0] sm:$0xff]  }
  0x9f   : > { %1219 = vmatpush1.bf16.msra.mxu0 %v6361_v20  ;;  %v662_v41 = vpop.permute.xlu1 %661 }
  0xa0   : > { %1220 = vmatprep.subr.bf16.mxu0 %v8775_v1  ;;  %v7100_v16 = vsel %vm734_vm2, %v6824_v32, %v662_v41  ;;  %v6369_v32 = vld [vmem:[%s8765_s1 + $0x38] sm:$0xff]   ;;  %v664_v56 = vpop.permute.xlu0 %663 }
  0xa1   : > { %v7120_v25 = vsel %vm734_vm2, %v6847_v55, %v664_v56  ;;  %v6371_v55 = vld [vmem:[%s8765_s1 + $0x48] sm:$0xff]   ;;  %v726_v56 = vrot.slane %v6965_v58, 1 }
  0xa2   : > { %1021 = vmatmul.mubr.bf16.gmra.mrb[4].mxu0 %v7060_v7 }
  0xa3   : > { %5618 = vmatprep.mubr.msk.bf16.mxu0 %vm734_vm2, %v7066_v63  ;;  %1221 = vmatpush1.bf16.msra.mxu0 %v6364_v8  ;;  %v666_v61 = vpop.permute.xlu1 %665  ;;  %v7176_v8 = vsel %vm685_vm1, %v713_v36, %v714_v53  ;;  %v7275_v36 = vld [vmem:[%s6784_s21 + $0xcc] sm:$0xff]  }
  0xa4   : > { %1222 = vmatprep.subr.bf16.mxu0 %v8775_v1  ;;  %v7140_v34 = vsel %vm734_vm2, %v6854_v60, %v666_v61  ;;  %v6373_v60 = vld [vmem:[%s8765_s1 + $0x58] sm:$0xff]   ;;  %v731_v61 = vrot.slane %v6993_v37, 1 }
  0xa5   : > { %v668_v24 = vpop.permute.xlu0 %667 }
  0xa6   : > { %v7160_v20 = vsel %vm734_vm2, %v6875_v17, %v668_v24 }
  0xa7   : > { %1223 = vmatpush1.bf16.msra.mxu0 %v6365_v12  ;;  %v670_v51 = vpop.permute.xlu1 %669 }
  0xa8   : > { %1224 = vmatprep.subr.bf16.mxu0 %v8775_v1  ;;  %v7173_v17 = vsel %vm734_vm2, %v6889_v35, %v670_v51  ;;  %v7188_v35 = vsel %vm685_vm1, %v716_v27, %v717_v0  ;;  %v1386_v27 = vshrl.u32 %v7275_v36, 16 }
  0xa9   : > { %v672_v12 = vpop.permute.xlu0 %671 }
  0xaa   : > { %1029 = vmatmul.mubr.bf16.gmra.mrb[8].mxu0 %v7080_v6  ;;  %v7185_v52 = vsel %vm734_vm2, %v6895_v40, %v672_v12  ;;  %v7283_v12 = vld [vmem:[%s6784_s21 + $0xd4] ss:$0 sps:$4 sm:$0x11]  }
  0xab   : > { %5619 = vmatprep.mubr.msk.bf16.mxu0 %vm734_vm2, %v7086_v10  ;;  %1225 = vmatpush1.bf16.msra.mxu0 %v6366_v9  ;;  %v674_v3 = vpop.permute.xlu1 %673  ;;  %v719_v9 = vrot.slane %v6933_v18, 1 }
  0xac   : > { %1226 = vmatprep.subr.bf16.mxu0 %v8775_v1  ;;  %v7197_v5 = vsel %vm734_vm2, %v6916_v62, %v674_v3  ;;  %v7212_v62 = vsel %vm685_vm1, %v722_v13, %v723_v15  ;;  %v1393_v3 = vshll.u32 %v7283_v12, 16  ;;  %v6376_v13 = vld [vmem:[%s8765_s1 + $0xd0] sm:$0xff]   ;;  %v6378_v15 = vld [vmem:[%s8765_s1 + $0xe0] sm:$0xff]  }
  0xad   : > { %v676_v41 = vpop.permute.xlu0 %675 }
  0xaf   : > { %1227 = vmatpush1.bf16.msra.mxu0 %v6367_v26  ;;  %v720_v26 = vrot.slane %v6938_v28, 1  ;;  %v7209_v28 = vsel %vm734_vm2, %v6933_v18, %v676_v41 }
  0xb0   : > { %1228 = vmatprep.subr.bf16.mxu0 %v8775_v1 }
  0xb1   : > { %v7200_v40 = vsel %vm685_vm1, %v719_v9, %v720_v26  ;;  %v680_v22 = vpop.permute.xlu0 %679  ;;  %v1395_v26 = vrot.slane %v1393_v3, 1 }
  0xb2   : > { %1037 = vmatmul.mubr.bf16.gmra.mrb[12].mxu0 %v7100_v16  ;;  %v7233_v58 = vsel %vm734_vm2, %v6956_v46, %v680_v22  ;;  %v6383_v22 = vld [vmem:[%s8765_s1 + $0x108] sm:$0xff]  }
  0xb3   : > { %5620 = vmatprep.mubr.msk.bf16.mxu0 %vm734_vm2, %v7106_v21  ;;  %1229 = vmatpush1.bf16.msra.mxu0 %v6368_v19  ;;  %v678_v19 = vpop.permute.xlu1 %677 }
  0xb4   : > { %1230 = vmatprep.subr.bf16.mxu0 %v8775_v1  ;;  %v7221_v45 = vsel %vm734_vm2, %v6950_v43, %v678_v19  ;;  %v6380_v19 = vld [vmem:[%s8765_s1 + $0xf0] sm:$0xff]  }
  0xb7   : > { %1231 = vmatpush1.bf16.msra.mxu0 %v6369_v32  ;;  %v725_v32 = vrot.slane %v6956_v46, 1  ;;  %v7248_v46 = vsel %vm685_vm1, %v731_v61, %v732_v31  ;;  %v684_v33 = vpop.permute.xlu0 %683 }
  0xb8   : > { %1232 = vmatprep.subr.bf16.mxu0 %v8775_v1  ;;  %v7257_v39 = vsel %vm734_vm2, %v6993_v37, %v684_v33  ;;  %v688_v37 = vsel %vm685_vm1, %v686_v44, %v687_v47 }
  0xb9   : > { %v7224_v18 = vsel %vm685_vm1, %v725_v32, %v726_v56  ;;  %v6381_v32 = vld [vmem:[%s8765_s1 + $0xf8] sm:$0xff]   ;;  %v6382_v56 = vld [vmem:[%s8765_s1 + $0x100] sm:$0xff]  }
  0xba   : > { %1045 = vmatmul.mubr.bf16.gmra.mrb[16].mxu0 %v7120_v25 }
  0xbb   : > { %5621 = vmatprep.mubr.msk.bf16.mxu0 %vm734_vm2, %v7126_v30  ;;  %1233 = vmatpush1.bf16.msra.mxu0 %v6370_v29  ;;  %v729_v29 = vrot.slane %v6978_v11, 1  ;;  %v654_v51 = vpop.permute.xlu0 %653 }
  0xbc   : > { %1234 = vmatprep.subr.bf16.mxu0 %v8775_v1  ;;  %v736_v53 = vsel %vm734_vm2, %v7013_v59, %v654_v51  ;;  %v6375_v59 = vld [vmem:[%s8765_s1 + $0xc8] sm:$0xff]  }
  0xbd   : > { %v7236_v43 = vsel %vm685_vm1, %v728_v23, %v729_v29  ;;  %v6384_v23 = vld [vmem:[%s8765_s1 + $0x110] sm:$0xff]   ;;  %v6385_v29 = vld [vmem:[%s8765_s1 + $0x118] sm:$0xff]  }
  0xbf   : > { %1235 = vmatpush1.bf16.msra.mxu0 %v6371_v55  ;;  %v682_v55 = vpop.permute.xlu1 %681 }
  0xc0   : > { %1236 = vmatprep.subr.bf16.mxu0 %v8775_v1  ;;  %v7245_v11 = vsel %vm734_vm2, %v6973_v4, %v682_v55 }
  0xc2   : > { %1053 = vmatmul.mubr.bf16.gmra.mrb[20].mxu0 %v7140_v34 }
  0xc3   : > { %5622 = vmatprep.mubr.msk.bf16.mxu0 %vm734_vm2, %v7146_v42  ;;  %1237 = vmatpush1.bf16.msra.mxu0 %v6372_v38  ;;  %v829_v38 = vrot.slane %v7010_v57, 1  ;;  %v828_v24 = vpop.permute.xlu1 %827 }
  0xc4   : > { %1238 = vmatprep.subr.bf16.mxu0 %v8775_v1 }
  0xc7   : > { %1239 = vmatpush1.bf16.msra.mxu0 %v6373_v60  ;;  %v830_v60 = vrot.slane %v7019_v2, 1  ;;  %v7269_v2 = vsel %vm734_vm2, %v7010_v57, %v828_v24  ;;  %v1388_v57 = vshll.u32 %v7275_v36, 16 }
  0xc8   : > { %1505 = vmatprep.subr.bf16.mxu0 %v8775_v1 }
  0xc9   : > { %v7260_v4 = vsel %vm685_vm1, %v829_v38, %v830_v60  ;;  %v1390_v0 = vrot.slane %v1388_v57, 1  ;;  %v6422_v60 = vld [vmem:[%s8768_s4 + $0xa0] sm:$0xff]  }
  0xca   : > { %1061 = vmatmul.mubr.bf16.gmra.mrb[24].mxu0 %v7160_v20 }
  0xcb   : > { %5623 = vmatprep.mubr.msk.bf16.mxu0 %vm734_vm2, %v7163_v50  ;;  %v1391_v9 = vor.u32 %v1390_v0, %v1386_v27 }
  0xcd   : > { %v1396_v41 = vsel %vm460_vm0, %v1391_v9, %v1395_v26 }
  0xce   : > { %1397 = vrot.lane.b32.xlu1 %v1396_v41, %s6678_s14 }
  0xd2   : > { %1069 = vmatmul.mubr.bf16.gmra.mrb[28].mxu0 %v7173_v17 }
  0xd3   : > { %5624 = vmatprep.mubr.msk.bf16.mxu0 %vm734_vm2, %v7176_v8 }
  0xda   : > { %1077 = vmatmul.mubr.bf16.gmra.mrb[32].mxu0 %v7185_v52 }
  0xdb   : > { %5625 = vmatprep.mubr.msk.bf16.mxu0 %vm734_vm2, %v7188_v35 }
  0xe2   : > { %1085 = vmatmul.mubr.bf16.gmra.mrb[36].mxu0 %v7197_v5 }
  0xe3   : > { %5626 = vmatprep.mubr.msk.bf16.mxu0 %vm734_vm2, %v7200_v40 }
  0xea   : > { %1093 = vmatmul.mubr.bf16.gmra.mrb[40].mxu0 %v7209_v28 }
  0xeb   : > { %5627 = vmatprep.mubr.msk.bf16.mxu0 %vm734_vm2, %v7212_v62 }
  0xf2   : > { %1101 = vmatmul.mubr.bf16.gmra.mrb[44].mxu0 %v7221_v45 }
  0xf3   : > { %5628 = vmatprep.mubr.msk.bf16.mxu0 %vm734_vm2, %v7224_v18 }
  0xfa   : > { %1109 = vmatmul.mubr.bf16.gmra.mrb[48].mxu0 %v7233_v58 }
  0xfb   : > { %5629 = vmatprep.mubr.msk.bf16.mxu0 %vm734_vm2, %v7236_v43 }
 0x102   : > { %1117 = vmatmul.mubr.bf16.gmra.mrb[52].mxu0 %v7245_v11 }
 0x103   : > { %5630 = vmatprep.mubr.msk.bf16.mxu0 %vm734_vm2, %v7248_v46 }
 0x10a   : > { %1125 = vmatmul.mubr.bf16.gmra.mrb[56].mxu0 %v7257_v39 }
 0x10b   : > { %5631 = vmatprep.mubr.msk.bf16.mxu0 %vm734_vm2, %v7260_v4 }
 0x112   : > { %1133 = vmatmul.mubr.bf16.gmra.mrb[60].mxu0 %v7269_v2 }
 0x113   : > { %5644 = vmatprep.mubr.msk.bf16.mxu0 %vm734_vm2, %v688_v37  ;;  %v2287_v37 = vld [vmem:[#allocation2 + $0xc] sm:$0xf] }
 0x11a   : > { %1249 = vmatmul.mubr.bf16.vlgmr.msra.gmra.mrb[0].mxu0 %v736_v53 }
 0x11b   : > { %1506 = vmatpush1.bf16.msra.mxu0 %v6374_v14  ;;  %5645 = vmatprep.mubr.msk.bf16.mxu0 %vm734_vm2, %v7007_v54  ;;  %v6377_v54 = vld [vmem:[%s8765_s1 + $0xd8] sm:$0xff]  }
 0x11c   : > { %1507 = vmatprep.subr.bf16.mxu0 %v8775_v1 }
 0x11f   : > { %1508 = vmatpush1.bf16.msra.mxu0 %v6375_v59  ;;  %v2293_v59 = vld [vmem:[#allocation2 + $0x14] sm:$0x1] }
 0x120   : > { %1509 = vmatprep.subr.bf16.mxu0 %v8775_v1 }
 0x122   : > { %1257 = vmatmul.mubr.bf16.gmra.mrb[4].mxu0 %v7047_v49  ;;  %v6379_v49 = vld [vmem:[%s8765_s1 + $0xe8] sm:$0xff]  }
 0x123   : > { %5646 = vmatprep.mubr.msk.bf16.mxu0 %vm734_vm2, %v7043_v48  ;;  %1510 = vmatpush1.bf16.msra.mxu0 %v6376_v13 }
 0x124   : > { %1511 = vmatprep.subr.bf16.mxu0 %v8775_v1 }
 0x127   : > { %1512 = vmatpush1.bf16.msra.mxu0 %v6377_v54 }
 0x128   : > { %1513 = vmatprep.subr.bf16.mxu0 %v8775_v1 }
 0x12a   : > { %1265 = vmatmul.mubr.bf16.gmra.mrb[8].mxu0 %v7060_v7 }
 0x12b   : > { %5647 = vmatprep.mubr.msk.bf16.mxu0 %vm734_vm2, %v7066_v63  ;;  %1514 = vmatpush1.bf16.msra.mxu0 %v6378_v15 }
 0x12c   : > { %1515 = vmatprep.subr.bf16.mxu0 %v8775_v1 }
 0x12f   : > { %1516 = vmatpush1.bf16.msra.mxu0 %v6379_v49 }
 0x130   : > { %1517 = vmatprep.subr.bf16.mxu0 %v8775_v1 }
 0x132   : > { %1273 = vmatmul.mubr.bf16.gmra.mrb[12].mxu0 %v7080_v6 }
 0x133   : > { %5648 = vmatprep.mubr.msk.bf16.mxu0 %vm734_vm2, %v7086_v10  ;;  %1518 = vmatpush1.bf16.msra.mxu0 %v6380_v19  ;;  %v6426_v19 = vld [vmem:[%s8768_s4 + $0xb0] sm:$0xff]  }
 0x134   : > { %1519 = vmatprep.subr.bf16.mxu0 %v8775_v1 }
 0x137   : > { %1520 = vmatpush1.bf16.msra.mxu0 %v6381_v32 }
 0x138   : > { %1521 = vmatprep.subr.bf16.mxu0 %v8775_v1 }
 0x13a   : > { %1281 = vmatmul.mubr.bf16.gmra.mrb[16].mxu0 %v7100_v16 }
 0x13b   : > { %5649 = vmatprep.mubr.msk.bf16.mxu0 %vm734_vm2, %v7106_v21  ;;  %1522 = vmatpush1.bf16.msra.mxu0 %v6382_v56 }
 0x13c   : > { %1523 = vmatprep.subr.bf16.mxu0 %v8775_v1 }
 0x13f   : > { %1524 = vmatpush1.bf16.msra.mxu0 %v6383_v22 }
 0x140   : > { %1525 = vmatprep.subr.bf16.mxu0 %v8775_v1 }
 0x142   : > { %1289 = vmatmul.mubr.bf16.gmra.mrb[20].mxu0 %v7120_v25 }
 0x143   : > { %5650 = vmatprep.mubr.msk.bf16.mxu0 %vm734_vm2, %v7126_v30  ;;  %1526 = vmatpush1.bf16.msra.mxu0 %v6384_v23 }
 0x144   : > { %1527 = vmatprep.subr.bf16.mxu0 %v8775_v1 }
 0x147   : > { %1528 = vmatpush1.bf16.msra.mxu0 %v6385_v29 }
 0x14a   : > { %1297 = vmatmul.mubr.bf16.gmra.mrb[24].mxu0 %v7140_v34 }
 0x14b   : > { %5651 = vmatprep.mubr.msk.bf16.mxu0 %vm734_vm2, %v7146_v42 }
 0x152   : > { %1305 = vmatmul.mubr.bf16.gmra.mrb[28].mxu0 %v7160_v20 }
 0x153   : > { %5652 = vmatprep.mubr.msk.bf16.mxu0 %vm734_vm2, %v7163_v50 }
 0x15a   : > { %1313 = vmatmul.mubr.bf16.gmra.mrb[32].mxu0 %v7173_v17 }
 0x15b   : > { %5653 = vmatprep.mubr.msk.bf16.mxu0 %vm734_vm2, %v7176_v8 }
 0x162   : > { %1321 = vmatmul.mubr.bf16.gmra.mrb[36].mxu0 %v7185_v52 }
 0x163   : > { %5654 = vmatprep.mubr.msk.bf16.mxu0 %vm734_vm2, %v7188_v35 }
 0x16a   : > { %1329 = vmatmul.mubr.bf16.gmra.mrb[40].mxu0 %v7197_v5 }
 0x16b   : > { %5655 = vmatprep.mubr.msk.bf16.mxu0 %vm734_vm2, %v7200_v40 }
 0x172   : > { %1337 = vmatmul.mubr.bf16.gmra.mrb[44].mxu0 %v7209_v28 }
 0x173   : > { %5656 = vmatprep.mubr.msk.bf16.mxu0 %vm734_vm2, %v7212_v62 }
 0x17a   : > { %1345 = vmatmul.mubr.bf16.gmra.mrb[48].mxu0 %v7221_v45 }
 0x17b   : > { %5657 = vmatprep.mubr.msk.bf16.mxu0 %vm734_vm2, %v7224_v18 }
 0x182   : > { %1353 = vmatmul.mubr.bf16.gmra.mrb[52].mxu0 %v7233_v58 }
 0x183   : > { %5658 = vmatprep.mubr.msk.bf16.mxu0 %vm734_vm2, %v7236_v43 }
 0x18a   : > { %1361 = vmatmul.mubr.bf16.gmra.mrb[56].mxu0 %v7245_v11 }
 0x18b   : > { %5659 = vmatprep.mubr.msk.bf16.mxu0 %vm734_vm2, %v7248_v46 }
 0x192   : > { %1369 = vmatmul.mubr.bf16.gmra.mrb[60].mxu0 %v7257_v39 }
 0x193   : > { %5698 = vmatprep.mubr.msk.bf16.mxu0 %vm734_vm2, %v7043_v48  ;;  %v1399_v48 = vrot.slane %v7275_v36, 1 }
 0x19a   : > { %1538 = vmatmul.mubr.bf16.vlgmr.msra.gmra.mrb[0].mxu0 %v7060_v7  ;;  %v1400_v7 = vrot.slane %v7283_v12, 1 }
 0x19b   : > { %5699 = vmatprep.mubr.msk.bf16.mxu0 %vm734_vm2, %v7066_v63 }
 0x19c   : > { %v1401_v63 = vsel %vm685_vm1, %v1399_v48, %v1400_v7 }
 0x1a2   : > { %1546 = vmatmul.mubr.bf16.gmra.mrb[4].mxu0 %v7080_v6  ;;  %v1398_v6 = vpop.permute.xlu1 %1397 }
 0x1a3   : > { %5700 = vmatprep.mubr.msk.bf16.mxu0 %vm734_vm2, %v7086_v10  ;;  %v1403_v10 = vsel %vm734_vm2, %v7275_v36, %v1398_v6  ;;  %v6423_v36 = vld [vmem:[%s8768_s4 + $0xa8] sm:$0xff]  }
 0x1aa   : > { %1554 = vmatmul.mubr.bf16.gmra.mrb[8].mxu0 %v7100_v16  ;;  %v6406_v16 = vld [vmem:[%s8768_s4 + $0x60] sm:$0xff]  }
 0x1ab   : > { %5701 = vmatprep.mubr.msk.bf16.mxu0 %vm734_vm2, %v7106_v21  ;;  %3563 = vmatpush1.bf16.msra.mxu1 %v6406_v16  ;;  %v6407_v21 = vld [vmem:[%s8768_s4 + $0x68] sm:$0xff]  }
 0x1ac   : > { %3564 = vmatprep.subr.bf16.mxu1 %v8775_v1 }
 0x1af   : > { %3565 = vmatpush1.bf16.msra.mxu1 %v6407_v21  ;;  %v2296_v21 = vld [vmem:[#allocation2 + $0x18] sm:$0xf] }
 0x1b0   : > { %3566 = vmatprep.subr.bf16.mxu1 %v8775_v1 }
 0x1b2   : > { %1562 = vmatmul.mubr.bf16.gmra.mrb[12].mxu0 %v7120_v25  ;;  %v6410_v25 = vld [vmem:[%s8768_s4 + $0x70] sm:$0xff]  }
 0x1b3   : > { %5702 = vmatprep.mubr.msk.bf16.mxu0 %vm734_vm2, %v7126_v30  ;;  %3567 = vmatpush1.bf16.msra.mxu1 %v6410_v25  ;;  %v6411_v30 = vld [vmem:[%s8768_s4 + $0x78] sm:$0xff]  }
 0x1b4   : > { %3568 = vmatprep.subr.bf16.mxu1 %v8775_v1 }
 0x1b7   : > { %3569 = vmatpush1.bf16.msra.mxu1 %v6411_v30 }
 0x1b8   : > { %3570 = vmatprep.subr.bf16.mxu1 %v8775_v1 }
 0x1ba   : > { %1570 = vmatmul.mubr.bf16.gmra.mrb[16].mxu0 %v7140_v34  ;;  %v6414_v34 = vld [vmem:[%s8768_s4 + $0x80] sm:$0xff]  }
 0x1bb   : > { %5703 = vmatprep.mubr.msk.bf16.mxu0 %vm734_vm2, %v7146_v42  ;;  %3571 = vmatpush1.bf16.msra.mxu1 %v6414_v34  ;;  %v7561_v42 = vld [vmem:[%s8766_s2] ss:$0 sm:$0xff]  ;;  %v6427_v34 = vld [vmem:[%s8768_s4 + $0xb8] sm:$0xff]  }
 0x1bc   : > { %3572 = vmatprep.subr.bf16.mxu1 %v8775_v1 }
 0x1c2   : > { %1578 = vmatmul.mubr.bf16.gmra.mrb[20].mxu0 %v7160_v20  ;;  %v6415_v20 = vld [vmem:[%s8768_s4 + $0x88] sm:$0xff]  }
 0x1c3   : > { %5704 = vmatprep.mubr.msk.bf16.mxu0 %vm734_vm2, %v7163_v50  ;;  %3573 = vmatpush1.bf16.msra.mxu1 %v6415_v20 }
 0x1c4   : > { %3574 = vmatprep.subr.bf16.mxu1 %v8775_v1 }
 0x1ca   : > { %1586 = vmatmul.mubr.bf16.gmra.mrb[24].mxu0 %v7173_v17  ;;  %v7569_v17 = vld [vmem:[%s8767_s3] ss:$0 sm:$0xff] }
 0x1cb   : > { %5705 = vmatprep.mubr.msk.bf16.mxu0 %vm734_vm2, %v7176_v8 }
 0x1d2   : > { %1594 = vmatmul.mubr.bf16.gmra.mrb[28].mxu0 %v7185_v52 }
 0x1d3   : > { %5706 = vmatprep.mubr.msk.bf16.mxu0 %vm734_vm2, %v7188_v35 }
 0x1da   : > { %1602 = vmatmul.mubr.bf16.gmra.mrb[32].mxu0 %v7197_v5  ;;  %v6418_v5 = vld [vmem:[%s8768_s4 + $0x90] sm:$0xff]  }
 0x1db   : > { %5707 = vmatprep.mubr.msk.bf16.mxu0 %vm734_vm2, %v7200_v40  ;;  %3575 = vmatpush1.bf16.msra.mxu1 %v6418_v5 }
 0x1dc   : > { %3576 = vmatprep.subr.bf16.mxu1 %v8775_v1 }
 0x1e2   : > { %1610 = vmatmul.mubr.bf16.gmra.mrb[36].mxu0 %v7209_v28 }
 0x1e3   : > { %5708 = vmatprep.mubr.msk.bf16.mxu0 %vm734_vm2, %v7212_v62 }
 0x1ea   : > { %1618 = vmatmul.mubr.bf16.gmra.mrb[40].mxu0 %v7221_v45 }
 0x1eb   : > { %5709 = vmatprep.mubr.msk.bf16.mxu0 %vm734_vm2, %v7224_v18 }
 0x1f2   : > { %1626 = vmatmul.mubr.bf16.gmra.mrb[44].mxu0 %v7233_v58  ;;  %v6419_v58 = vld [vmem:[%s8768_s4 + $0x98] sm:$0xff]  }
 0x1f3   : > { %5710 = vmatprep.mubr.msk.bf16.mxu0 %vm734_vm2, %v7236_v43  ;;  %3577 = vmatpush1.bf16.msra.mxu1 %v6419_v58 }
 0x1f4   : > { %3578 = vmatprep.subr.bf16.mxu1 %v8775_v1 }
 0x1f7   : > { %3579 = vmatpush1.bf16.msra.mxu1 %v6422_v60 }
 0x1f8   : > { %3580 = vmatprep.subr.bf16.mxu1 %v8775_v1 }
 0x1fa   : > { %1634 = vmatmul.mubr.bf16.gmra.mrb[48].mxu0 %v7245_v11 }
 0x1fb   : > { %5711 = vmatprep.mubr.msk.bf16.mxu0 %vm734_vm2, %v7248_v46  ;;  %3581 = vmatpush1.bf16.msra.mxu1 %v6423_v36 }
 0x1fc   : > { %3582 = vmatprep.subr.bf16.mxu1 %v8775_v1 }
 0x1ff   : > { %3583 = vmatpush1.bf16.msra.mxu1 %v6426_v19 }
 0x200   : > { %3584 = vmatprep.subr.bf16.mxu1 %v8775_v1 }
 0x202   : > { %1642 = vmatmul.mubr.bf16.gmra.mrb[52].mxu0 %v7257_v39 }
 0x203   : > { %5712 = vmatprep.mubr.msk.bf16.mxu0 %vm734_vm2, %v7260_v4  ;;  %3585 = vmatpush1.bf16.msra.mxu1 %v6427_v34 }
 0x204   : > { %3843 = vmatprep.subr.bf16.mxu1 %v8775_v1 }
 0x20a   : > { %1650 = vmatmul.mubr.bf16.gmra.mrb[56].mxu0 %v7269_v2 }
 0x20b   : > { %5713 = vmatprep.mubr.msk.bf16.mxu0 %vm734_vm2, %v1401_v63 }
 0x212   : > { %1658 = vmatmul.mubr.bf16.gmra.mrb[60].mxu0 %v1403_v10 }
 0x26d   : > { %v1539_v50 = vpop.f32.mrb[0].mxu0 }
 0x26e   : > { %v1705_v8 = vmul.f32 %v7561_v42, %v1539_v50  ;;  %v1541_v52 = vpop.f32.mrb[1].mxu0 }
 0x26f   : > { %v1542_v35 = vpop.f32.mrb[2].mxu0 }
 0x270   : > { %v1744_v40 = vadd.f32 %v7569_v17, %v1705_v8  ;;  %v1706_v28 = vmul.f32 %v7561_v42, %v1542_v35  ;;  %v1544_v62 = vpop.f32.mrb[3].mxu0  ;;  %v2300_v35 = vld [vmem:[#allocation2 + $0x20] sm:$0x1] }
 0x272   : > { %v1776_v45 = vmax.f32 %v1744_v40, 0.0  ;;  %v1745_v18 = vadd.f32 %v7569_v17, %v1706_v28 }
 0x274   : > { %v5983_v43 = vpack.c.bf16 %v1776_v45, %v1776_v45  ;;  %v1777_v55 = vmax.f32 %v1745_v18, 0.0 }
 0x275   : > { %v1547_v61 = vpop.f32.mrb[4].mxu0 }
 0x276   : > { %v1964_v31 = vshrl.u32 %v5983_v43, 16  ;;  %v5984_v11 = vpack.c.bf16 %v1777_v55, %v1777_v55  ;;  %v1707_v46 = vmul.f32 %v7561_v42, %v1547_v61  ;;  %v1549_v33 = vpop.f32.mrb[5].mxu0  ;;  %v1967_v4 = vshll.u32 %v5983_v43, 16 }
 0x277   : > { %v1550_v38 = vpop.f32.mrb[6].mxu0 }
 0x278   : > { %v1966_v39 = vrot.slane %v1964_v31, 7  ;;  %v1972_v24 = vshrl.u32 %v5984_v11, 16  ;;  %v1746_v44 = vadd.f32 %v7569_v17, %v1707_v46  ;;  %v1552_v47 = vpop.f32.mrb[7].mxu0  ;;  %v1708_v51 = vmul.f32 %v7561_v42, %v1550_v38 }
 0x279   : > { %v1975_v57 = vshll.u32 %v5984_v11, 16 }
 0x27a   : > { %v1969_v53 = vor.u32 %v1967_v4, %v1966_v39  ;;  %v1974_v12 = vrot.slane %v1972_v24, 7  ;;  %v1778_v27 = vmax.f32 %v1746_v44, 0.0  ;;  %v1970_v0 = vrot.slane %v1966_v39, 4 }
 0x27b   : > { %v1747_v9 = vadd.f32 %v7569_v17, %v1708_v51 }
 0x27c   : > { %v2288_v26 = vsel %vm7590_vm8, %v1969_v53, %v2287_v37  ;;  %v1977_v41 = vor.u32 %v1975_v57, %v1974_v12  ;;  %v1979_v13 = vrot.slane %v1974_v12, 4  ;;  %v5985_v54 = vpack.c.bf16 %v1778_v27, %v1778_v27  ;;  %v2303_v57 = vld [vmem:[#allocation2 + $0x24] sm:$0xf] }
 0x27d   : > { %2289 = vst [vmem:[#allocation2 + $0xc] sm:$0xf] %v2288_v26  ;;  %v1779_v15 = vmax.f32 %v1747_v9, 0.0  ;;  %v1555_v49 = vpop.f32.mrb[8].mxu0 }
 0x27e   : > { %v1978_v32 = vsel %vm7599_vm9, %v1970_v0, %v1977_v41  ;;  %v2294_v56 = vsel %vm7606_vm10, %v1979_v13, %v2293_v59  ;;  %v1981_v22 = vshrl.u32 %v5985_v54, 16  ;;  %v1557_v23 = vpop.f32.mrb[9].mxu0  ;;  %v1709_v48 = vmul.f32 %v7561_v42, %v1555_v49  ;;  %v2307_v13 = vld [vmem:[#allocation2 + $0x2c] sm:$0x1] }
 0x27f   : > { %2290 = vst.msk [vmem:[#allocation2 + $0x10] sm:$0xf] %vm1808_vm3, %v1978_v32  ;;  %2295 = vst [vmem:[#allocation2 + $0x14] sm:$0x1] %v2294_v56  ;;  %v5986_v29 = vpack.c.bf16 %v1779_v15, %v1779_v15  ;;  %v1558_v7 = vpop.f32.mrb[10].mxu0  ;;  %v1984_v6 = vshll.u32 %v5985_v54, 16 }
 0x280   : > { %v1983_v63 = vrot.slane %v1981_v22, 7  ;;  %v1710_v10 = vmul.f32 %v7561_v42, %v1558_v7  ;;  %v1560_v16 = vpop.f32.mrb[11].mxu0  ;;  %v1748_v30 = vadd.f32 %v7569_v17, %v1709_v48 }
 0x281   : > { %v1989_v25 = vshrl.u32 %v5986_v29, 16  ;;  %v1992_v52 = vshll.u32 %v5986_v29, 16 }
 0x282   : > { %v1986_v20 = vor.u32 %v1984_v6, %v1983_v63  ;;  %v1749_v50 = vadd.f32 %v7569_v17, %v1710_v10  ;;  %v1780_v5 = vmax.f32 %v1748_v30, 0.0  ;;  %v1987_v62 = vrot.slane %v1983_v63, 4 }
 0x283   : > { %v1991_v8 = vrot.slane %v1989_v25, 7 }
 0x284   : > { %v2297_v40 = vsel %vm7590_vm8, %v1986_v20, %v2296_v21  ;;  %v1781_v28 = vmax.f32 %v1749_v50, 0.0  ;;  %v5987_v58 = vpack.c.bf16 %v1780_v5, %v1780_v5  ;;  %v2310_v21 = vld [vmem:[#allocation2 + $0x30] sm:$0xf] }
 0x285   : > { %2298 = vst [vmem:[#allocation2 + $0x18] sm:$0xf] %v2297_v40  ;;  %v1994_v45 = vor.u32 %v1992_v52, %v1991_v8  ;;  %v1996_v18 = vrot.slane %v1991_v8, 4  ;;  %v1563_v43 = vpop.f32.mrb[12].mxu0 }
 0x286   : > { %v5988_v55 = vpack.c.bf16 %v1781_v28, %v1781_v28  ;;  %v1711_v61 = vmul.f32 %v7561_v42, %v1563_v43  ;;  %v1565_v31 = vpop.f32.mrb[13].mxu0  ;;  %v6388_v11 = vld [vmem:[#allocation2 + $0xc] sm:$0xff]   ;;  %v1998_v38 = vshrl.u32 %v5987_v58, 16  ;;  %v6389_v39 = vld [vmem:[#allocation2 + $0x14] ss:$0 sps:$4 sm:$0x11]  }
 0x287   : > { %v1995_v46 = vsel %vm7599_vm9, %v1987_v62, %v1994_v45  ;;  %v2301_v33 = vsel %vm7606_vm10, %v1996_v18, %v2300_v35  ;;  %v1566_v60 = vpop.f32.mrb[14].mxu0  ;;  %v2001_v4 = vshll.u32 %v5987_v58, 16  ;;  %v3321_v53 = vrot.slane %v6388_v11, 1  ;;  %v2314_v43 = vld [vmem:[#allocation2 + $0x38] sm:$0x1] }
 0x288   : > { %2299 = vst.msk [vmem:[#allocation2 + $0x1c] sm:$0xf] %vm1808_vm3, %v1995_v46  ;;  %2302 = vst [vmem:[#allocation2 + $0x20] sm:$0x1] %v2301_v33  ;;  %v2006_v24 = vshrl.u32 %v5988_v55, 16  ;;  %v1750_v44 = vadd.f32 %v7569_v17, %v1711_v61  ;;  %v1712_v47 = vmul.f32 %v7561_v42, %v1566_v60  ;;  %v1568_v37 = vpop.f32.mrb[15].mxu0 }
 0x289   : > { %v2000_v51 = vrot.slane %v1998_v38, 7  ;;  %v2009_v36 = vshll.u32 %v5988_v55, 16  ;;  %v3322_v12 = vrot.slane %v6389_v39, 1  ;;  %v3100_v9 = vshll.u32 %v6388_v11, 16 }
 0x28a   : > { %v2008_v27 = vrot.slane %v2006_v24, 7  ;;  %v1782_v0 = vmax.f32 %v1750_v44, 0.0  ;;  %v1751_v59 = vadd.f32 %v7569_v17, %v1712_v47  ;;  %v3105_v15 = vshll.u32 %v6389_v39, 16 }
 0x28b   : > { %v2003_v26 = vor.u32 %v2001_v4, %v2000_v51  ;;  %v2004_v41 = vrot.slane %v2000_v51, 4  ;;  %v3323_v54 = vsel %vm685_vm1, %v3321_v53, %v3322_v12  ;;  %v3098_v29 = vshrl.u32 %v6388_v11, 16 }
 0x28c   : > { %v2011_v49 = vor.u32 %v2009_v36, %v2008_v27  ;;  %v2013_v19 = vrot.slane %v2008_v27, 4  ;;  %v5989_v32 = vpack.c.bf16 %v1782_v0, %v1782_v0  ;;  %v1783_v56 = vmax.f32 %v1751_v59, 0.0  ;;  %5848 = vmatprep.mubr.msk.bf16.mxu1 %vm734_vm2, %v3323_v54 }
 0x28d   : > { %v2304_v22 = vsel %vm7590_vm8, %v2003_v26, %v2303_v57  ;;  %v1571_v23 = vpop.f32.mrb[16].mxu0  ;;  %v3102_v48 = vrot.slane %v3100_v9, 1  ;;  %v3107_v16 = vrot.slane %v3105_v15, 1 }
 0x28e   : > { %2305 = vst [vmem:[#allocation2 + $0x24] sm:$0xf] %v2304_v22  ;;  %v2012_v7 = vsel %vm7599_vm9, %v2004_v41, %v2011_v49  ;;  %v2308_v63 = vsel %vm7606_vm10, %v2013_v19, %v2307_v13  ;;  %v2015_v6 = vshrl.u32 %v5989_v32, 16  ;;  %v1573_v10 = vpop.f32.mrb[17].mxu0  ;;  %v5990_v25 = vpack.c.bf16 %v1783_v56, %v1783_v56  ;;  %v2317_v41 = vld [vmem:[#allocation2 + $0x3c] sm:$0xf] }
 0x28f   : > { %2306 = vst.msk [vmem:[#allocation2 + $0x28] sm:$0xf] %vm1808_vm3, %v2012_v7  ;;  %2309 = vst [vmem:[#allocation2 + $0x2c] sm:$0x1] %v2308_v63  ;;  %v1713_v30 = vmul.f32 %v7561_v42, %v1571_v23  ;;  %v1574_v34 = vpop.f32.mrb[18].mxu0  ;;  %v3103_v20 = vor.u32 %v3102_v48, %v3098_v29  ;;  %v6390_v50 = vld [vmem:[#allocation2 + $0x18] sm:$0xff]  }
 0x290   : > { %v2017_v8 = vrot.slane %v2015_v6, 7  ;;  %v2018_v52 = vshll.u32 %v5989_v32, 16  ;;  %v1714_v35 = vmul.f32 %v7561_v42, %v1574_v34  ;;  %v1576_v5 = vpop.f32.mrb[19].mxu0  ;;  %v6391_v40 = vld [vmem:[#allocation2 + $0x20] ss:$0 sps:$4 sm:$0x11]  }
 0x291   : > { %v2023_v28 = vshrl.u32 %v5990_v25, 16  ;;  %v1752_v62 = vadd.f32 %v7569_v17, %v1713_v30  ;;  %v3108_v45 = vsel %vm460_vm0, %v3103_v20, %v3107_v16  ;;  %v2026_v58 = vshll.u32 %v5990_v25, 16 }
 0x292   : > { %v2020_v18 = vor.u32 %v2018_v52, %v2017_v8  ;;  %v1753_v55 = vadd.f32 %v7569_v17, %v1714_v35  ;;  %3289 = vrot.lane.b32.xlu0 %v3108_v45, %s6678_s14  ;;  %v3112_v11 = vshll.u32 %v6390_v50, 16  ;;  %v3117_v46 = vshll.u32 %v6391_v40, 16 }
 0x293   : > { %v2025_v61 = vrot.slane %v2023_v28, 7  ;;  %v1784_v31 = vmax.f32 %v1752_v62, 0.0  ;;  %v2021_v33 = vrot.slane %v2017_v8, 4  ;;  %v3110_v39 = vshrl.u32 %v6390_v50, 16 }
 0x294   : > { %v2311_v38 = vsel %vm7590_vm8, %v2020_v18, %v2310_v21  ;;  %v1785_v60 = vmax.f32 %v1753_v55, 0.0  ;;  %v3114_v37 = vrot.slane %v3112_v11, 1  ;;  %v3119_v12 = vrot.slane %v3117_v46, 1  ;;  %v2321_v21 = vld [vmem:[#allocation2 + $0x44] sm:$0x1] }
 0x295   : > { %2312 = vst [vmem:[#allocation2 + $0x30] sm:$0xf] %v2311_v38  ;;  %v2028_v4 = vor.u32 %v2026_v58, %v2025_v61  ;;  %v2030_v24 = vrot.slane %v2025_v61, 4  ;;  %v5991_v44 = vpack.c.bf16 %v1784_v31, %v1784_v31  ;;  %v1579_v47 = vpop.f32.mrb[20].mxu0 }
 0x296   : > { %v5992_v51 = vpack.c.bf16 %v1785_v60, %v1785_v60  ;;  %v1715_v36 = vmul.f32 %v7561_v42, %v1579_v47  ;;  %v1581_v53 = vpop.f32.mrb[21].mxu0  ;;  %v6392_v26 = vld [vmem:[#allocation2 + $0x24] sm:$0xff]   ;;  %v6393_v32 = vld [vmem:[#allocation2 + $0x2c] ss:$0 sps:$4 sm:$0x11]   ;;  %v3115_v22 = vor.u32 %v3114_v37, %v3110_v39 }
 0x297   : > { %v2029_v57 = vsel %vm7599_vm9, %v2021_v33, %v2028_v4  ;;  %v2315_v27 = vsel %vm7606_vm10, %v2030_v24, %v2314_v43  ;;  %v2032_v0 = vshrl.u32 %v5991_v44, 16  ;;  %v2035_v59 = vshll.u32 %v5991_v44, 16  ;;  %v1582_v9 = vpop.f32.mrb[22].mxu0  ;;  %v2324_v39 = vld [vmem:[#allocation2 + $0x48] sm:$0xf] }
 0x298   : > { %2313 = vst.msk [vmem:[#allocation2 + $0x34] sm:$0xf] %vm1808_vm3, %v2029_v57  ;;  %2316 = vst [vmem:[#allocation2 + $0x38] sm:$0x1] %v2315_v27  ;;  %v2040_v13 = vshrl.u32 %v5992_v51, 16  ;;  %v2043_v54 = vshll.u32 %v5992_v51, 16  ;;  %v1754_v15 = vadd.f32 %v7569_v17, %v1715_v36  ;;  %v1716_v49 = vmul.f32 %v7561_v42, %v1582_v9 }
 0x299   : > { %v1584_v19 = vpop.f32.mrb[23].mxu0  ;;  %v2034_v56 = vrot.slane %v2032_v0, 7  ;;  %v3122_v23 = vshrl.u32 %v6392_v26, 16  ;;  %v3124_v29 = vshll.u32 %v6392_v26, 16  ;;  %v3129_v6 = vshll.u32 %v6393_v32, 16 }
 0x29a   : > { %v2042_v48 = vrot.slane %v2040_v13, 7  ;;  %v1786_v7 = vmax.f32 %v1754_v15, 0.0  ;;  %v1755_v63 = vadd.f32 %v7569_v17, %v1716_v49  ;;  %v3120_v25 = vsel %vm460_vm0, %v3115_v22, %v3119_v12  ;;  %v2328_v27 = vld [vmem:[#allocation2 + $0x50] sm:$0x1] }
 0x29b   : > { %v2037_v10 = vor.u32 %v2035_v59, %v2034_v56  ;;  %v2038_v16 = vrot.slane %v2034_v56, 4  ;;  %v3126_v30 = vrot.slane %v3124_v29, 1  ;;  %3291 = vrot.lane.b32.xlu1 %v3120_v25, %s6678_s14  ;;  %v3131_v40 = vrot.slane %v3129_v6, 1 }
 0x29c   : > { %v2045_v34 = vor.u32 %v2043_v54, %v2042_v48  ;;  %v2047_v20 = vrot.slane %v2042_v48, 4  ;;  %v5993_v50 = vpack.c.bf16 %v1786_v7, %v1786_v7  ;;  %v1787_v8 = vmax.f32 %v1755_v63, 0.0 }
 0x29d   : > { %v2318_v52 = vsel %vm7590_vm8, %v2037_v10, %v2317_v41  ;;  %v1587_v35 = vpop.f32.mrb[24].mxu0  ;;  %v3127_v5 = vor.u32 %v3126_v30, %v3122_v23 }
 0x29e   : > { %2319 = vst [vmem:[#allocation2 + $0x3c] sm:$0xf] %v2318_v52  ;;  %v2046_v28 = vsel %vm7599_vm9, %v2038_v16, %v2045_v34  ;;  %v2322_v62 = vsel %vm7606_vm10, %v2047_v20, %v2321_v21  ;;  %v2049_v45 = vshrl.u32 %v5993_v50, 16  ;;  %v1589_v18 = vpop.f32.mrb[25].mxu0  ;;  %v5994_v58 = vpack.c.bf16 %v1787_v8, %v1787_v8  ;;  %v2331_v16 = vld [vmem:[#allocation2 + $0x54] sm:$0xf] }
 0x29f   : > { %2320 = vst.msk [vmem:[#allocation2 + $0x40] sm:$0xf] %vm1808_vm3, %v2046_v28  ;;  %2323 = vst [vmem:[#allocation2 + $0x44] sm:$0x1] %v2322_v62  ;;  %v1717_v43 = vmul.f32 %v7561_v42, %v1587_v35  ;;  %v1590_v55 = vpop.f32.mrb[26].mxu0  ;;  %v3132_v61 = vsel %vm460_vm0, %v3127_v5, %v3131_v40  ;;  %v6394_v31 = vld [vmem:[#allocation2 + $0x30] sm:$0xff]  }
 0x2a0   : > { %v2051_v11 = vrot.slane %v2049_v45, 7  ;;  %v2052_v46 = vshll.u32 %v5993_v50, 16  ;;  %v1718_v33 = vmul.f32 %v7561_v42, %v1590_v55  ;;  %3293 = vrot.lane.b32.xlu0 %v3132_v61, %s6678_s14  ;;  %v1592_v38 = vpop.f32.mrb[27].mxu0  ;;  %v6395_v60 = vld [vmem:[#allocation2 + $0x38] ss:$0 sps:$4 sm:$0x11]  }
 0x2a1   : > { %v2057_v4 = vshrl.u32 %v5994_v58, 16  ;;  %v1756_v24 = vadd.f32 %v7569_v17, %v1717_v43  ;;  %v3136_v37 = vshll.u32 %v6394_v31, 16  ;;  %v2060_v36 = vshll.u32 %v5994_v58, 16  ;;  %v2335_v18 = vld [vmem:[#allocation2 + $0x5c] sm:$0x1] }
 0x2a2   : > { %v2054_v44 = vor.u32 %v2052_v46, %v2051_v11  ;;  %v1757_v47 = vadd.f32 %v7569_v17, %v1718_v33  ;;  %v3141_v12 = vshll.u32 %v6395_v60, 16  ;;  %v3134_v59 = vshrl.u32 %v6394_v31, 16 }
 0x2a3   : > { %v2059_v51 = vrot.slane %v2057_v4, 7  ;;  %v1788_v53 = vmax.f32 %v1756_v24, 0.0  ;;  %v3138_v9 = vrot.slane %v3136_v37, 1  ;;  %v2055_v26 = vrot.slane %v2051_v11, 4 }
 0x2a4   : > { %v2325_v57 = vsel %vm7590_vm8, %v2054_v44, %v2324_v39  ;;  %v1789_v0 = vmax.f32 %v1757_v47, 0.0  ;;  %v3143_v63 = vrot.slane %v3141_v12, 1 }
 0x2a5   : > { %2326 = vst [vmem:[#allocation2 + $0x48] sm:$0xf] %v2325_v57  ;;  %v2062_v41 = vor.u32 %v2060_v36, %v2059_v51  ;;  %v2064_v13 = vrot.slane %v2059_v51, 4  ;;  %v5995_v54 = vpack.c.bf16 %v1788_v53, %v1788_v53  ;;  %v1595_v15 = vpop.f32.mrb[28].mxu0  ;;  %v3139_v56 = vor.u32 %v3138_v9, %v3134_v59  ;;  %v2338_v9 = vld [vmem:[#allocation2 + $0x60] sm:$0xf] }
 0x2a6   : > { %v5996_v49 = vpack.c.bf16 %v1789_v0, %v1789_v0  ;;  %v1719_v19 = vmul.f32 %v7561_v42, %v1595_v15  ;;  %v1597_v32 = vpop.f32.mrb[29].mxu0  ;;  %v6396_v22 = vld [vmem:[#allocation2 + $0x3c] sm:$0xff]   ;;  %v6397_v6 = vld [vmem:[#allocation2 + $0x44] ss:$0 sps:$4 sm:$0x11]  }
 0x2a7   : > { %v2063_v23 = vsel %vm7599_vm9, %v2055_v26, %v2062_v41  ;;  %v2329_v29 = vsel %vm7606_vm10, %v2064_v13, %v2328_v27  ;;  %v2066_v48 = vshrl.u32 %v5995_v54, 16  ;;  %v1598_v7 = vpop.f32.mrb[30].mxu0  ;;  %v2069_v10 = vshll.u32 %v5995_v54, 16 }
 0x2a8   : > { %2327 = vst.msk [vmem:[#allocation2 + $0x4c] sm:$0xf] %vm1808_vm3, %v2063_v23  ;;  %2330 = vst [vmem:[#allocation2 + $0x50] sm:$0x1] %v2329_v29  ;;  %v2074_v21 = vshrl.u32 %v5996_v49, 16  ;;  %v1758_v25 = vadd.f32 %v7569_v17, %v1719_v19  ;;  %v1720_v30 = vmul.f32 %v7561_v42, %v1598_v7  ;;  %v1600_v34 = vpop.f32.mrb[31].mxu0  ;;  %v3144_v8 = vsel %vm460_vm0, %v3139_v56, %v3143_v63 }
 0x2a9   : > { %v2068_v20 = vrot.slane %v2066_v48, 7  ;;  %v2077_v50 = vshll.u32 %v5996_v49, 16  ;;  %v3148_v52 = vshll.u32 %v6396_v22, 16  ;;  %3295 = vrot.lane.b32.xlu1 %v3144_v8, %s6678_s14  ;;  %v3153_v28 = vshll.u32 %v6397_v6, 16  ;;  %v2342_v23 = vld [vmem:[#allocation2 + $0x68] sm:$0x1] }
 0x2aa   : > { %v2076_v35 = vrot.slane %v2074_v21, 7  ;;  %v1790_v5 = vmax.f32 %v1758_v25, 0.0  ;;  %v1759_v40 = vadd.f32 %v7569_v17, %v1720_v30  ;;  %v3146_v58 = vshrl.u32 %v6396_v22, 16 }
 0x2ab   : > { %v2071_v62 = vor.u32 %v2069_v10, %v2068_v20  ;;  %v2072_v45 = vrot.slane %v2068_v20, 4  ;;  %v3150_v43 = vrot.slane %v3148_v52, 1  ;;  %v3155_v60 = vrot.slane %v3153_v28, 1 }
 0x2ac   : > { %v2079_v55 = vor.u32 %v2077_v50, %v2076_v35  ;;  %v2081_v61 = vrot.slane %v2076_v35, 4  ;;  %v5997_v31 = vpack.c.bf16 %v1790_v5, %v1790_v5  ;;  %v1791_v11 = vmax.f32 %v1759_v40, 0.0 }
 0x2ad   : > { %v2332_v46 = vsel %vm7590_vm8, %v2071_v62, %v2331_v16  ;;  %v1603_v33 = vpop.f32.mrb[32].mxu0  ;;  %v3151_v38 = vor.u32 %v3150_v43, %v3146_v58 }
 0x2ae   : > { %2333 = vst [vmem:[#allocation2 + $0x54] sm:$0xf] %v2332_v46  ;;  %v2080_v39 = vsel %vm7599_vm9, %v2072_v45, %v2079_v55  ;;  %v2336_v4 = vsel %vm7606_vm10, %v2081_v61, %v2335_v18  ;;  %v2083_v24 = vshrl.u32 %v5997_v31, 16  ;;  %v1605_v44 = vpop.f32.mrb[33].mxu0  ;;  %v5998_v47 = vpack.c.bf16 %v1791_v11, %v1791_v11  ;;  %v2345_v45 = vld [vmem:[#allocation2 + $0x6c] sm:$0xf] }
 0x2af   : > { %2334 = vst.msk [vmem:[#allocation2 + $0x58] sm:$0xf] %vm1808_vm3, %v2080_v39  ;;  %2337 = vst [vmem:[#allocation2 + $0x5c] sm:$0x1] %v2336_v4  ;;  %v1721_v37 = vmul.f32 %v7561_v42, %v1603_v33  ;;  %v1606_v51 = vpop.f32.mrb[34].mxu0  ;;  %v3156_v36 = vsel %vm460_vm0, %v3151_v38, %v3155_v60  ;;  %v6398_v53 = vld [vmem:[#allocation2 + $0x48] sm:$0xff]  }
 0x2b0   : > { %v2085_v12 = vrot.slane %v2083_v24, 7  ;;  %v2086_v57 = vshll.u32 %v5997_v31, 16  ;;  %v1722_v27 = vmul.f32 %v7561_v42, %v1606_v51  ;;  %3297 = vrot.lane.b32.xlu0 %v3156_v36, %s6678_s14  ;;  %v1608_v0 = vpop.f32.mrb[35].mxu0  ;;  %v6399_v59 = vld [vmem:[#allocation2 + $0x50] ss:$0 sps:$4 sm:$0x11]  }
 0x2b1   : > { %v2091_v26 = vshrl.u32 %v5998_v47, 16  ;;  %v1760_v41 = vadd.f32 %v7569_v17, %v1721_v37  ;;  %v3160_v15 = vshll.u32 %v6398_v53, 16  ;;  %v2094_v19 = vshll.u32 %v5998_v47, 16  ;;  %v2349_v44 = vld [vmem:[#allocation2 + $0x74] sm:$0x1] }
 0x2b2   : > { %v2088_v13 = vor.u32 %v2086_v57, %v2085_v12  ;;  %v1761_v54 = vadd.f32 %v7569_v17, %v1722_v27  ;;  %v3165_v56 = vshll.u32 %v6399_v59, 16  ;;  %v3158_v48 = vshrl.u32 %v6398_v53, 16 }
 0x2b3   : > { %v2093_v49 = vrot.slane %v2091_v26, 7  ;;  %v1792_v32 = vmax.f32 %v1760_v41, 0.0  ;;  %v3162_v7 = vrot.slane %v3160_v15, 1  ;;  %v2089_v63 = vrot.slane %v2085_v12, 4 }
 0x2b4   : > { %v2339_v22 = vsel %vm7590_vm8, %v2088_v13, %v2338_v9  ;;  %v1793_v29 = vmax.f32 %v1761_v54, 0.0  ;;  %v3167_v40 = vrot.slane %v3165_v56, 1 }
 0x2b5   : > { %2340 = vst [vmem:[#allocation2 + $0x60] sm:$0xf] %v2339_v22  ;;  %v2096_v6 = vor.u32 %v2094_v19, %v2093_v49  ;;  %v2098_v10 = vrot.slane %v2093_v49, 4  ;;  %v5999_v16 = vpack.c.bf16 %v1792_v32, %v1792_v32  ;;  %v1611_v21 = vpop.f32.mrb[36].mxu0  ;;  %v3163_v20 = vor.u32 %v3162_v7, %v3158_v48  ;;  %v2352_v7 = vld [vmem:[#allocation2 + $0x78] sm:$0xf] }
 0x2b6   : > { %v6000_v25 = vpack.c.bf16 %v1793_v29, %v1793_v29  ;;  %v1723_v30 = vmul.f32 %v7561_v42, %v1611_v21  ;;  %v1613_v34 = vpop.f32.mrb[37].mxu0  ;;  %v6400_v50 = vld [vmem:[#allocation2 + $0x54] sm:$0xff]   ;;  %v6401_v28 = vld [vmem:[#allocation2 + $0x5c] ss:$0 sps:$4 sm:$0x11]  }
 0x2b7   : > { %v2097_v8 = vsel %vm7599_vm9, %v2089_v63, %v2096_v6  ;;  %v2343_v52 = vsel %vm7606_vm10, %v2098_v10, %v2342_v23  ;;  %v2100_v35 = vshrl.u32 %v5999_v16, 16  ;;  %v1614_v5 = vpop.f32.mrb[38].mxu0  ;;  %v2103_v62 = vshll.u32 %v5999_v16, 16  ;;  %v2356_v34 = vld [vmem:[#allocation2 + $0x80] sm:$0x1] }
 0x2b8   : > { %2341 = vst.msk [vmem:[#allocation2 + $0x64] sm:$0xf] %vm1808_vm3, %v2097_v8  ;;  %2344 = vst [vmem:[#allocation2 + $0x68] sm:$0x1] %v2343_v52  ;;  %v2108_v18 = vshrl.u32 %v6000_v25, 16  ;;  %v1762_v58 = vadd.f32 %v7569_v17, %v1723_v30  ;;  %v1724_v43 = vmul.f32 %v7561_v42, %v1614_v5  ;;  %v1616_v55 = vpop.f32.mrb[39].mxu0  ;;  %v3168_v11 = vsel %vm460_vm0, %v3163_v20, %v3167_v40 }
 0x2b9   : > { %v2102_v61 = vrot.slane %v2100_v35, 7  ;;  %v2111_v31 = vshll.u32 %v6000_v25, 16  ;;  %v3172_v46 = vshll.u32 %v6400_v50, 16  ;;  %3299 = vrot.lane.b32.xlu1 %v3168_v11, %s6678_s14  ;;  %v3177_v39 = vshll.u32 %v6401_v28, 16 }
 0x2ba   : > { %v2110_v33 = vrot.slane %v2108_v18, 7  ;;  %v1794_v38 = vmax.f32 %v1762_v58, 0.0  ;;  %v1763_v60 = vadd.f32 %v7569_v17, %v1724_v43  ;;  %v3170_v47 = vshrl.u32 %v6400_v50, 16 }
 0x2bb   : > { %v2105_v4 = vor.u32 %v2103_v62, %v2102_v61  ;;  %v2106_v24 = vrot.slane %v2102_v61, 4  ;;  %v3174_v37 = vrot.slane %v3172_v46, 1  ;;  %v3179_v59 = vrot.slane %v3177_v39, 1 }
 0x2bc   : > { %v2113_v51 = vor.u32 %v2111_v31, %v2110_v33  ;;  %v2115_v36 = vrot.slane %v2110_v33, 4  ;;  %v6001_v53 = vpack.c.bf16 %v1794_v38, %v1794_v38  ;;  %v1795_v12 = vmax.f32 %v1763_v60, 0.0 }
 0x2bd   : > { %v2346_v57 = vsel %vm7590_vm8, %v2105_v4, %v2345_v45  ;;  %v1619_v27 = vpop.f32.mrb[40].mxu0  ;;  %v3175_v0 = vor.u32 %v3174_v37, %v3170_v47 }
 0x2be   : > { %2347 = vst [vmem:[#allocation2 + $0x6c] sm:$0xf] %v2346_v57  ;;  %v2114_v9 = vsel %vm7599_vm9, %v2106_v24, %v2113_v51  ;;  %v2350_v26 = vsel %vm7606_vm10, %v2115_v36, %v2349_v44  ;;  %v2117_v41 = vshrl.u32 %v6001_v53, 16  ;;  %v1621_v13 = vpop.f32.mrb[41].mxu0  ;;  %v6002_v54 = vpack.c.bf16 %v1795_v12, %v1795_v12  ;;  %v2359_v24 = vld [vmem:[#allocation2 + $0x84] sm:$0xf] }
 0x2bf   : > { %2348 = vst.msk [vmem:[#allocation2 + $0x70] sm:$0xf] %vm1808_vm3, %v2114_v9  ;;  %2351 = vst [vmem:[#allocation2 + $0x74] sm:$0x1] %v2350_v26  ;;  %v1725_v15 = vmul.f32 %v7561_v42, %v1619_v27  ;;  %v1622_v49 = vpop.f32.mrb[42].mxu0  ;;  %v3180_v19 = vsel %vm460_vm0, %v3175_v0, %v3179_v59  ;;  %v6402_v32 = vld [vmem:[#allocation2 + $0x60] sm:$0xff]  }
 0x2c0   : > { %v2119_v56 = vrot.slane %v2117_v41, 7  ;;  %v2120_v22 = vshll.u32 %v6001_v53, 16  ;;  %v1726_v23 = vmul.f32 %v7561_v42, %v1622_v49  ;;  %3301 = vrot.lane.b32.xlu0 %v3180_v19, %s6678_s14  ;;  %v1624_v29 = vpop.f32.mrb[43].mxu0  ;;  %v6403_v48 = vld [vmem:[#allocation2 + $0x68] ss:$0 sps:$4 sm:$0x11]  }
 0x2c1   : > { %v2125_v63 = vshrl.u32 %v6002_v54, 16  ;;  %v1764_v6 = vadd.f32 %v7569_v17, %v1725_v15  ;;  %v3184_v21 = vshll.u32 %v6402_v32, 16  ;;  %v2128_v30 = vshll.u32 %v6002_v54, 16  ;;  %v2363_v13 = vld [vmem:[#allocation2 + $0x8c] sm:$0x1] }
 0x2c2   : > { %v2122_v10 = vor.u32 %v2120_v22, %v2119_v56  ;;  %v1765_v16 = vadd.f32 %v7569_v17, %v1726_v23  ;;  %v3189_v50 = vshll.u32 %v6403_v48, 16  ;;  %v3182_v35 = vshrl.u32 %v6402_v32, 16 }
 0x2c3   : > { %v2127_v25 = vrot.slane %v2125_v63, 7  ;;  %v1796_v20 = vmax.f32 %v1764_v6, 0.0  ;;  %v3186_v5 = vrot.slane %v3184_v21, 1  ;;  %v2123_v40 = vrot.slane %v2119_v56, 4 }
 0x2c4   : > { %v2353_v8 = vsel %vm7590_vm8, %v2122_v10, %v2352_v7  ;;  %v1797_v52 = vmax.f32 %v1765_v16, 0.0  ;;  %v3191_v60 = vrot.slane %v3189_v50, 1  ;;  %v7758_v10 = vld [vmem:[%s8766_s2] ss:$0 sm:$0xff] }
 0x2c5   : > { %2354 = vst [vmem:[#allocation2 + $0x78] sm:$0xf] %v2353_v8  ;;  %v2130_v28 = vor.u32 %v2128_v30, %v2127_v25  ;;  %v2132_v62 = vrot.slane %v2127_v25, 4  ;;  %v6003_v45 = vpack.c.bf16 %v1796_v20, %v1796_v20  ;;  %v1627_v18 = vpop.f32.mrb[44].mxu0  ;;  %v3187_v61 = vor.u32 %v3186_v5, %v3182_v35  ;;  %v2366_v35 = vld [vmem:[#allocation2 + $0x90] sm:$0xf] }
 0x2c6   : > { %v6004_v58 = vpack.c.bf16 %v1797_v52, %v1797_v52  ;;  %v1727_v43 = vmul.f32 %v7561_v42, %v1627_v18  ;;  %v1629_v55 = vpop.f32.mrb[45].mxu0  ;;  %v6404_v31 = vld [vmem:[#allocation2 + $0x6c] sm:$0xff]   ;;  %v6405_v39 = vld [vmem:[#allocation2 + $0x74] ss:$0 sps:$4 sm:$0x11]  }
 0x2c7   : > { %v2131_v11 = vsel %vm7599_vm9, %v2123_v40, %v2130_v28  ;;  %v2357_v46 = vsel %vm7606_vm10, %v2132_v62, %v2356_v34  ;;  %v2134_v33 = vshrl.u32 %v6003_v45, 16  ;;  %v1630_v38 = vpop.f32.mrb[46].mxu0  ;;  %v2137_v4 = vshll.u32 %v6003_v45, 16  ;;  %v7767_v40 = vld [vmem:[%s8767_s3] ss:$0 sm:$0xff] }
 0x2c8   : > { %2355 = vst.msk [vmem:[#allocation2 + $0x7c] sm:$0xf] %vm1808_vm3, %v2131_v11  ;;  %2358 = vst [vmem:[#allocation2 + $0x80] sm:$0x1] %v2357_v46  ;;  %v2142_v44 = vshrl.u32 %v6004_v58, 16  ;;  %v1766_v47 = vadd.f32 %v7569_v17, %v1727_v43  ;;  %v1728_v37 = vmul.f32 %v7561_v42, %v1630_v38  ;;  %v1632_v51 = vpop.f32.mrb[47].mxu0  ;;  %v3192_v12 = vsel %vm460_vm0, %v3187_v61, %v3191_v60 }
 0x2c9   : > { %v2136_v36 = vrot.slane %v2134_v33, 7  ;;  %v2145_v53 = vshll.u32 %v6004_v58, 16  ;;  %v3196_v57 = vshll.u32 %v6404_v31, 16  ;;  %3303 = vrot.lane.b32.xlu1 %v3192_v12, %s6678_s14  ;;  %v3201_v9 = vshll.u32 %v6405_v39, 16  ;;  %v2370_v11 = vld [vmem:[#allocation2 + $0x98] sm:$0x1] }
 0x2ca   : > { %v2144_v27 = vrot.slane %v2142_v44, 7  ;;  %v1798_v0 = vmax.f32 %v1766_v47, 0.0  ;;  %v1767_v59 = vadd.f32 %v7569_v17, %v1728_v37  ;;  %v3194_v54 = vshrl.u32 %v6404_v31, 16 }
 0x2cb   : > { %v2139_v26 = vor.u32 %v2137_v4, %v2136_v36  ;;  %v2140_v41 = vrot.slane %v2136_v36, 4  ;;  %v3198_v15 = vrot.slane %v3196_v57, 1  ;;  %v3203_v29 = vrot.slane %v3201_v9, 1 }
 0x2cc   : > { %v2147_v49 = vor.u32 %v2145_v53, %v2144_v27  ;;  %v2149_v42 = vrot.slane %v2144_v27, 4  ;;  %v6005_v19 = vpack.c.bf16 %v1798_v0, %v1798_v0  ;;  %v1799_v32 = vmax.f32 %v1767_v59, 0.0 }
 0x2cd   : > { %v2360_v56 = vsel %vm7590_vm8, %v2139_v26, %v2359_v24  ;;  %v1635_v22 = vpop.f32.mrb[48].mxu0  ;;  %v3199_v23 = vor.u32 %v3198_v15, %v3194_v54 }
 0x2ce   : > { %2361 = vst [vmem:[#allocation2 + $0x84] sm:$0xf] %v2360_v56  ;;  %v2148_v17 = vsel %vm7599_vm9, %v2140_v41, %v2147_v49  ;;  %v2364_v48 = vsel %vm7606_vm10, %v2149_v42, %v2363_v13  ;;  %v2151_v7 = vshrl.u32 %v6005_v19, 16  ;;  %v1637_v63 = vpop.f32.mrb[49].mxu0  ;;  %v6006_v6 = vpack.c.bf16 %v1799_v32, %v1799_v32  ;;  %v2373_v41 = vld [vmem:[#allocation2 + $0x9c] sm:$0xf] }
 0x2cf   : > { %2362 = vst.msk [vmem:[#allocation2 + $0x88] sm:$0xf] %vm1808_vm3, %v2148_v17  ;;  %2365 = vst [vmem:[#allocation2 + $0x8c] sm:$0x1] %v2364_v48  ;;  %v1729_v16 = vmul.f32 %v7758_v10, %v1635_v22  ;;  %v1638_v21 = vpop.f32.mrb[50].mxu0  ;;  %v3204_v25 = vsel %vm460_vm0, %v3199_v23, %v3203_v29  ;;  %v6408_v30 = vld [vmem:[#allocation2 + $0x78] sm:$0xff]  }
 0x2d0   : > { %v2153_v34 = vrot.slane %v2151_v7, 7  ;;  %v2154_v20 = vshll.u32 %v6005_v19, 16  ;;  %v1730_v50 = vmul.f32 %v7758_v10, %v1638_v21  ;;  %3305 = vrot.lane.b32.xlu0 %v3204_v25, %s6678_s14  ;;  %v1640_v8 = vpop.f32.mrb[51].mxu0  ;;  %v6409_v52 = vld [vmem:[#allocation2 + $0x80] ss:$0 sps:$4 sm:$0x11]  }
 0x2d1   : > { %v2159_v5 = vshrl.u32 %v6006_v6, 16  ;;  %v1768_v28 = vadd.f32 %v7767_v40, %v1729_v16  ;;  %v3208_v18 = vshll.u32 %v6408_v30, 16  ;;  %v2162_v43 = vshll.u32 %v6006_v6, 16  ;;  %v2377_v63 = vld [vmem:[#allocation2 + $0xa4] sm:$0x1] }
 0x2d2   : > { %v2156_v62 = vor.u32 %v2154_v20, %v2153_v34  ;;  %v1769_v45 = vadd.f32 %v7767_v40, %v1730_v50  ;;  %v3213_v61 = vshll.u32 %v6409_v52, 16  ;;  %v3206_v33 = vshrl.u32 %v6408_v30, 16 }
 0x2d3   : > { %v2161_v58 = vrot.slane %v2159_v5, 7  ;;  %v1800_v55 = vmax.f32 %v1768_v28, 0.0  ;;  %v3210_v38 = vrot.slane %v3208_v18, 1  ;;  %v2157_v60 = vrot.slane %v2153_v34, 4 }
 0x2d4   : > { %v2367_v31 = vsel %vm7590_vm8, %v2156_v62, %v2366_v35  ;;  %v1801_v46 = vmax.f32 %v1769_v45, 0.0  ;;  %v3215_v59 = vrot.slane %v3213_v61, 1 }
 0x2d5   : > { %2368 = vst [vmem:[#allocation2 + $0x90] sm:$0xf] %v2367_v31  ;;  %v2164_v39 = vor.u32 %v2162_v43, %v2161_v58  ;;  %v2166_v4 = vrot.slane %v2161_v58, 4  ;;  %v6007_v24 = vpack.c.bf16 %v1800_v55, %v1800_v55  ;;  %v1643_v44 = vpop.f32.mrb[52].mxu0  ;;  %v3211_v36 = vor.u32 %v3210_v38, %v3206_v33  ;;  %v2380_v38 = vld [vmem:[#allocation2 + $0xa8] sm:$0xf] }
 0x2d6   : > { %v6008_v47 = vpack.c.bf16 %v1801_v46, %v1801_v46  ;;  %v1731_v37 = vmul.f32 %v7758_v10, %v1643_v44  ;;  %v1645_v51 = vpop.f32.mrb[53].mxu0  ;;  %v6412_v53 = vld [vmem:[#allocation2 + $0x84] sm:$0xff]   ;;  %v6413_v9 = vld [vmem:[#allocation2 + $0x8c] ss:$0 sps:$4 sm:$0x11]  }
 0x2d7   : > { %v2165_v12 = vsel %vm7599_vm9, %v2157_v60, %v2164_v39  ;;  %v2371_v57 = vsel %vm7606_vm10, %v2166_v4, %v2370_v11  ;;  %v2168_v27 = vshrl.u32 %v6007_v24, 16  ;;  %v1646_v0 = vpop.f32.mrb[54].mxu0  ;;  %v2171_v26 = vshll.u32 %v6007_v24, 16 }
 0x2d8   : > { %2369 = vst.msk [vmem:[#allocation2 + $0x94] sm:$0xf] %vm1808_vm3, %v2165_v12  ;;  %2372 = vst [vmem:[#allocation2 + $0x98] sm:$0x1] %v2371_v57  ;;  %v2176_v13 = vshrl.u32 %v6008_v47, 16  ;;  %v1770_v54 = vadd.f32 %v7767_v40, %v1731_v37  ;;  %v1732_v15 = vmul.f32 %v7758_v10, %v1646_v0  ;;  %v1648_v49 = vpop.f32.mrb[55].mxu0  ;;  %v3216_v32 = vsel %vm460_vm0, %v3211_v36, %v3215_v59 }
 0x2d9   : > { %v2170_v42 = vrot.slane %v2168_v27, 7  ;;  %v2179_v19 = vshll.u32 %v6008_v47, 16  ;;  %v3220_v56 = vshll.u32 %v6412_v53, 16  ;;  %3307 = vrot.lane.b32.xlu1 %v3216_v32, %s6678_s14  ;;  %v3225_v17 = vshll.u32 %v6413_v9, 16  ;;  %v2384_v12 = vld [vmem:[#allocation2 + $0xb0] sm:$0x1] }
 0x2da   : > { %v2178_v22 = vrot.slane %v2176_v13, 7  ;;  %v1802_v23 = vmax.f32 %v1770_v54, 0.0  ;;  %v1771_v29 = vadd.f32 %v7767_v40, %v1732_v15  ;;  %v3218_v6 = vshrl.u32 %v6412_v53, 16 }
 0x2db   : > { %v2173_v48 = vor.u32 %v2171_v26, %v2170_v42  ;;  %v2174_v7 = vrot.slane %v2170_v42, 4  ;;  %v3222_v16 = vrot.slane %v3220_v56, 1  ;;  %v3227_v52 = vrot.slane %v3225_v17, 1 }
 0x2dc   : > { %v2181_v21 = vor.u32 %v2179_v19, %v2178_v22  ;;  %v2183_v25 = vrot.slane %v2178_v22, 4  ;;  %v6009_v30 = vpack.c.bf16 %v1802_v23, %v1802_v23  ;;  %v1803_v34 = vmax.f32 %v1771_v29, 0.0 }
 0x2dd   : > { %v2374_v20 = vsel %vm7590_vm8, %v2173_v48, %v2373_v41  ;;  %v1651_v50 = vpop.f32.mrb[56].mxu0  ;;  %v3223_v8 = vor.u32 %v3222_v16, %v3218_v6 }
 0x2de   : > { %2375 = vst [vmem:[#allocation2 + $0x9c] sm:$0xf] %v2374_v20  ;;  %v2182_v35 = vsel %vm7599_vm9, %v2174_v7, %v2181_v21  ;;  %v2378_v5 = vsel %vm7606_vm10, %v2183_v25, %v2377_v63  ;;  %v2185_v28 = vshrl.u32 %v6009_v30, 16  ;;  %v1653_v62 = vpop.f32.mrb[57].mxu0  ;;  %v6010_v45 = vpack.c.bf16 %v1803_v34, %v1803_v34  ;;  %v2387_v7 = vld [vmem:[#allocation2 + $0xb4] sm:$0xf] }
 0x2df   : > { %2376 = vst.msk [vmem:[#allocation2 + $0xa0] sm:$0xf] %vm1808_vm3, %v2182_v35  ;;  %2379 = vst [vmem:[#allocation2 + $0xa4] sm:$0x1] %v2378_v5  ;;  %v1733_v18 = vmul.f32 %v7758_v10, %v1651_v50  ;;  %v1654_v58 = vpop.f32.mrb[58].mxu0  ;;  %v3228_v43 = vsel %vm460_vm0, %v3223_v8, %v3227_v52  ;;  %v6416_v55 = vld [vmem:[#allocation2 + $0x90] sm:$0xff]  }
 0x2e0   : > { %v2187_v61 = vrot.slane %v2185_v28, 7  ;;  %v2188_v31 = vshll.u32 %v6009_v30, 16  ;;  %v1734_v11 = vmul.f32 %v7758_v10, %v1654_v58  ;;  %3309 = vrot.lane.b32.xlu0 %v3228_v43, %s6678_s14  ;;  %v1656_v46 = vpop.f32.mrb[59].mxu0  ;;  %v6417_v33 = vld [vmem:[#allocation2 + $0x98] ss:$0 sps:$4 sm:$0x11]  }
 0x2e1   : > { %v2193_v60 = vshrl.u32 %v6010_v45, 16  ;;  %v1772_v39 = vadd.f32 %v7767_v40, %v1733_v18  ;;  %v3232_v44 = vshll.u32 %v6416_v55, 16  ;;  %v2196_v37 = vshll.u32 %v6010_v45, 16  ;;  %v2391_v62 = vld [vmem:[#allocation2 + $0xbc] sm:$0x1] }
 0x2e2   : > { %v2190_v4 = vor.u32 %v2188_v31, %v2187_v61  ;;  %v1773_v24 = vadd.f32 %v7767_v40, %v1734_v11  ;;  %v3237_v36 = vshll.u32 %v6417_v33, 16  ;;  %v3230_v27 = vshrl.u32 %v6416_v55, 16 }
 0x2e3   : > { %v2195_v47 = vrot.slane %v2193_v60, 7  ;;  %v1804_v51 = vmax.f32 %v1772_v39, 0.0  ;;  %v3234_v0 = vrot.slane %v3232_v44, 1  ;;  %v2191_v59 = vrot.slane %v2187_v61, 4 }
 0x2e4   : > { %v2381_v53 = vsel %vm7590_vm8, %v2190_v4, %v2380_v38  ;;  %v1805_v57 = vmax.f32 %v1773_v24, 0.0  ;;  %v3239_v29 = vrot.slane %v3237_v36, 1 }
 0x2e5   : > { %2382 = vst [vmem:[#allocation2 + $0xa8] sm:$0xf] %v2381_v53  ;;  %v2198_v9 = vor.u32 %v2196_v37, %v2195_v47  ;;  %v2200_v26 = vrot.slane %v2195_v47, 4  ;;  %v6011_v41 = vpack.c.bf16 %v1804_v51, %v1804_v51  ;;  %v1659_v13 = vpop.f32.mrb[60].mxu0  ;;  %v3235_v42 = vor.u32 %v3234_v0, %v3230_v27  ;;  %v6431_v47 = vld [vmem:[#allocation2] sm:$0xff]  }
 0x2e6   : > { %v6012_v54 = vpack.c.bf16 %v1805_v57, %v1805_v57  ;;  %v1735_v15 = vmul.f32 %v7758_v10, %v1659_v13  ;;  %v1661_v49 = vpop.f32.mrb[61].mxu0  ;;  %v6420_v19 = vld [vmem:[#allocation2 + $0x9c] sm:$0xff]   ;;  %v6421_v17 = vld [vmem:[#allocation2 + $0xa4] ss:$0 sps:$4 sm:$0x11]  }
 0x2e7   : > { %v2199_v32 = vsel %vm7599_vm9, %v2191_v59, %v2198_v9  ;;  %v2385_v56 = vsel %vm7606_vm10, %v2200_v26, %v2384_v12  ;;  %v2202_v22 = vshrl.u32 %v6011_v41, 16  ;;  %v1662_v23 = vpop.f32.mrb[62].mxu0  ;;  %v2205_v48 = vshll.u32 %v6011_v41, 16  ;;  %v2394_v37 = vld [vmem:[#allocation2 + $0xc0] sm:$0xf] }
 0x2e8   : > { %2383 = vst.msk [vmem:[#allocation2 + $0xac] sm:$0xf] %vm1808_vm3, %v2199_v32  ;;  %2386 = vst [vmem:[#allocation2 + $0xb0] sm:$0x1] %v2385_v56  ;;  %v2210_v63 = vshrl.u32 %v6012_v54, 16  ;;  %v1774_v6 = vadd.f32 %v7767_v40, %v1735_v15  ;;  %v1736_v16 = vmul.f32 %v7758_v10, %v1662_v23  ;;  %v1664_v21 = vpop.f32.mrb[63].mxu0  ;;  %v3240_v34 = vsel %vm460_vm0, %v3235_v42, %v3239_v29 }
 0x2e9   : > { %v2204_v25 = vrot.slane %v2202_v22, 7  ;;  %v2213_v30 = vshll.u32 %v6012_v54, 16  ;;  %v3244_v20 = vshll.u32 %v6420_v19, 16  ;;  %3311 = vrot.lane.b32.xlu1 %v3240_v34, %s6678_s14  ;;  %v3249_v35 = vshll.u32 %v6421_v17, 16  ;;  %v2398_v13 = vld [vmem:[#allocation2 + $0xc8] sm:$0x1] }
 0x2ea   : > { %v2212_v50 = vrot.slane %v2210_v63, 7  ;;  %v1806_v8 = vmax.f32 %v1774_v6, 0.0  ;;  %v1775_v52 = vadd.f32 %v7767_v40, %v1736_v16  ;;  %v3242_v45 = vshrl.u32 %v6420_v19, 16  ;;  %v6432_v57 = vld [vmem:[#allocation2 + $0x8] ss:$0 sps:$4 sm:$0x11]  }
 0x2eb   : > { %v2207_v5 = vor.u32 %v2205_v48, %v2204_v25  ;;  %v2208_v28 = vrot.slane %v2204_v25, 4  ;;  %v3246_v18 = vrot.slane %v3244_v20, 1  ;;  %v3251_v11 = vrot.slane %v3249_v35, 1  ;;  %v6433_v15 = vld [vmem:[#allocation2 + $0x18] sm:$0xff]   ;;  %v6437_v6 = vld [vmem:[#allocation2 + $0x30] sm:$0xff]  }
 0x2ec   : > { %v2215_v58 = vor.u32 %v2213_v30, %v2212_v50  ;;  %v2217_v10 = vrot.slane %v2212_v50, 4  ;;  %v6013_v43 = vpack.c.bf16 %v1806_v8, %v1806_v8  ;;  %v1807_v55 = vmax.f32 %v1775_v52, 0.0  ;;  %v7837_v16 = vld [vmem:[#allocation2 + $0xc] sm:$0xff]   ;;  %v7840_v34 = vld [vmem:[#allocation2 + $0x20] ss:$0 sps:$4 sm:$0x11]  }
 0x2ed   : > { %v2388_v61 = vsel %vm7590_vm8, %v2207_v5, %v2387_v7  ;;  %v3247_v31 = vor.u32 %v3246_v18, %v3242_v45  ;;  %v2580_v54 = vshll.u32 %v6431_v47, 16  ;;  %v2585_v17 = vshll.u32 %v6432_v57, 16  ;;  %v6438_v35 = vld [vmem:[#allocation2 + $0x38] ss:$0 sps:$4 sm:$0x11]  }
 0x2ee   : > { %2389 = vst [vmem:[#allocation2 + $0xb4] sm:$0xf] %v2388_v61  ;;  %v2216_v40 = vsel %vm7599_vm9, %v2208_v28, %v2215_v58  ;;  %v2392_v46 = vsel %vm7606_vm10, %v2217_v10, %v2391_v62  ;;  %v2219_v33 = vshrl.u32 %v6013_v43, 16  ;;  %v6014_v38 = vpack.c.bf16 %v1807_v55, %v1807_v55  ;;  %v7842_v5 = vld [vmem:[#allocation2 + $0x14] ss:$0 sps:$4 sm:$0x11]  }
 0x2ef   : > { %2390 = vst.msk [vmem:[#allocation2 + $0xb8] sm:$0xf] %vm1808_vm3, %v2216_v40  ;;  %2393 = vst [vmem:[#allocation2 + $0xbc] sm:$0x1] %v2392_v46  ;;  %v3252_v60 = vsel %vm460_vm0, %v3247_v31, %v3251_v11  ;;  %v6424_v39 = vld [vmem:[#allocation2 + $0xa8] sm:$0xff]   ;;  %v2222_v24 = vshll.u32 %v6013_v43, 16 }
 0x2f0   : > { %v2221_v4 = vrot.slane %v2219_v33, 7  ;;  %3313 = vrot.lane.b32.xlu0 %v3252_v60, %s6678_s14  ;;  %v7819_v44 = vld [vmem:[#allocation2 + $0xb0] ss:$0 sps:$4 sm:$0x11]   ;;  %v2227_v51 = vshrl.u32 %v6014_v38, 16  ;;  %v3256_v36 = vshll.u32 %v6424_v39, 16 }
 0x2f1   : > { %v3261_v12 = vshll.u32 %v7819_v44, 16  ;;  %v2230_v0 = vshll.u32 %v6014_v38, 16  ;;  %v3254_v59 = vshrl.u32 %v6424_v39, 16  ;;  %v2578_v7 = vshrl.u32 %v6431_v47, 16  ;;  %v7846_v45 = vld [vmem:[#allocation2 + $0x18] sm:$0xff]   ;;  %v7849_v55 = vld [vmem:[#allocation2 + $0x48] sm:$0xff]  }
 0x2f2   : > { %v2224_v53 = vor.u32 %v2222_v24, %v2221_v4  ;;  %v2229_v27 = vrot.slane %v2227_v51, 7  ;;  %v3258_v9 = vrot.slane %v3256_v36, 1  ;;  %v2225_v26 = vrot.slane %v2221_v4, 4  ;;  %v6523_v58 = vld [vmem:[#allocation2 + $0x20] ss:$0 sps:$4 sm:$0x11]  }
 0x2f3   : > { %v3263_v32 = vrot.slane %v3261_v12, 1  ;;  %v2582_v63 = vrot.slane %v2580_v54, 1  ;;  %v2604_v25 = vshll.u32 %v6433_v15, 16  ;;  %v2587_v30 = vrot.slane %v2585_v17, 1  ;;  %v7851_v61 = vld [vmem:[#allocation2 + $0x24] sm:$0xff]   ;;  %v6430_v39 = vld [vmem:[%s8768_s4] sm:$0xff]  }
 0x2f4   : > { %v2395_v41 = vsel %vm7590_vm8, %v2224_v53, %v2394_v37  ;;  %v2232_v49 = vor.u32 %v2230_v0, %v2229_v27  ;;  %v2234_v42 = vrot.slane %v2229_v27, 4  ;;  %v3259_v19 = vor.u32 %v3258_v9, %v3254_v59  ;;  %v7864_v37 = vld [vmem:[#allocation2 + $0x60] sm:$0xff]   ;;  %v7868_v12 = vld [vmem:[#allocation2 + $0x2c] ss:$0 sps:$4 sm:$0x11]  }
 0x2f5   : > { %2396 = vst [vmem:[#allocation2 + $0xc0] sm:$0xf] %v2395_v41  ;;  %v2583_v8 = vor.u32 %v2582_v63, %v2578_v7  ;;  %v2628_v52 = vshll.u32 %v6437_v6, 16  ;;  %v2592_v28 = vshll.u32 %v7837_v16, 16  ;;  %v3324_v18 = vrot.slane %v7846_v45, 1 }
 0x2f6   : > { %v7824_v56 = vld [vmem:[#allocation2 + $0xb4] sm:$0xff]   ;;  %v2233_v22 = vsel %vm7599_vm9, %v2225_v26, %v2232_v49  ;;  %v2399_v23 = vsel %vm7606_vm10, %v2234_v42, %v2398_v13  ;;  %v3264_v29 = vsel %vm460_vm0, %v3259_v19, %v3263_v32  ;;  %v7831_v2 = vld [vmem:[#allocation2 + $0xbc] ss:$0 sps:$4 sm:$0x11]   ;;  %v3325_v10 = vrot.slane %v6523_v58, 1  ;;  %v6524_v49 = vld [vmem:[#allocation2 + $0xc] sm:$0xff]  }
 0x2f7   : > { %2397 = vst.msk [vmem:[#allocation2 + $0xc4] sm:$0xf] %vm1808_vm3, %v2233_v22  ;;  %2400 = vst [vmem:[#allocation2 + $0xc8] sm:$0x1] %v2399_v23  ;;  %3315 = vrot.lane.b32.xlu1 %v3264_v29, %s6678_s14  ;;  %v3268_v48 = vshll.u32 %v7824_v56, 16  ;;  %v3273_v14 = vshll.u32 %v7831_v2, 16  ;;  %v2588_v40 = vsel %vm460_vm0, %v2583_v8, %v2587_v30 }
 0x2f8   : > { %v3266_v3 = vshrl.u32 %v7824_v56, 16  ;;  %v2606_v43 = vrot.slane %v2604_v25, 1  ;;  %v2602_v31 = vshrl.u32 %v6433_v15, 16  ;;  %v2609_v46 = vshll.u32 %v7840_v34, 16  ;;  %v7875_v15 = vld [vmem:[#allocation2 + $0x3c] sm:$0xff]  }
 0x2f9   : > { %v3270_v21 = vrot.slane %v3268_v48, 1  ;;  %v3275_v50 = vrot.slane %v3273_v14, 1  ;;  %v2626_v38 = vshrl.u32 %v6437_v6, 16  ;;  %v2630_v60 = vrot.slane %v2628_v52, 1  ;;  %v6441_v22 = vld [vmem:[%s8768_s4 + $0x8] sm:$0xff]  }
 0x2fa   : > { %v2633_v24 = vshll.u32 %v6438_v35, 16  ;;  %v2594_v47 = vrot.slane %v2592_v28, 1  ;;  %v2607_v51 = vor.u32 %v2606_v43, %v2602_v31  ;;  %v2652_v53 = vshll.u32 %v7849_v55, 16  ;;  %v6443_v54 = vld [vmem:[#allocation2 + $0x50] ss:$0 sps:$4 sm:$0x11]  }
 0x2fb   : > { %v3271_v20 = vor.u32 %v3270_v21, %v3266_v3  ;;  %v2597_v0 = vshll.u32 %v7842_v5, 16  ;;  %v2616_v59 = vshll.u32 %v7851_v61, 16  ;;  %v2611_v26 = vrot.slane %v2609_v46, 1  ;;  %v6447_v23 = vld [vmem:[#allocation2 + $0x68] ss:$0 sps:$4 sm:$0x11]  }
 0x2fc   : > { %v2631_v41 = vor.u32 %v2630_v60, %v2626_v38  ;;  %v2590_v13 = vshrl.u32 %v7837_v16, 16  ;;  %v2676_v29 = vshll.u32 %v7864_v37, 16  ;;  %v3326_v17 = vsel %vm685_vm1, %v3324_v18, %v3325_v10  ;;  %v7883_v6 = vld [vmem:[#allocation2 + $0x78] sm:$0xff]   ;;  %v7900_v18 = vld [vmem:[#allocation2 + $0x24] sm:$0xff]   ;;  %v7907_v60 = vld [vmem:[#allocation2 + $0x90] sm:$0xff]  }
 0x2fd   : > { %v3276_v62 = vsel %vm460_vm0, %v3271_v20, %v3275_v50  ;;  %v2635_v48 = vrot.slane %v2633_v24, 1  ;;  %v2654_v63 = vrot.slane %v2652_v53, 1  ;;  %v7885_v14 = vld [vmem:[#allocation2 + $0x54] sm:$0xff]   ;;  %v2612_v3 = vsel %vm460_vm0, %v2607_v51, %v2611_v26  ;;  %v7890_v20 = vld [vmem:[#allocation2 + $0x44] ss:$0 sps:$4 sm:$0x11]  }
 0x2fe   : > { %3317 = vrot.lane.b32.xlu0 %v3276_v62, %s6678_s14  ;;  %v7854_v11 = vld [vmem:[#allocation2 + $0xc0] sm:$0xff]   ;;  %v7858_v33 = vld [vmem:[#allocation2 + $0xc8] ss:$0 sps:$4 sm:$0x11]   ;;  %v2595_v7 = vor.u32 %v2594_v47, %v2590_v13  ;;  %v2599_v25 = vrot.slane %v2597_v0, 1  ;;  %v2618_v30 = vrot.slane %v2616_v59, 1 }
 0x2ff   : > { %v3280_v4 = vshll.u32 %v7854_v11, 16  ;;  %v3285_v36 = vshll.u32 %v7858_v33, 16  ;;  %v3278_v57 = vshrl.u32 %v7854_v11, 16  ;;  %v7892_v50 = vld [vmem:[#allocation2 + $0x80] ss:$0 sps:$4 sm:$0x11]   ;;  %v2636_v62 = vsel %vm460_vm0, %v2631_v41, %v2635_v48 }
 0x300   : > { %v2650_v8 = vshrl.u32 %v7849_v55, 16  ;;  %v2657_v52 = vshll.u32 %v6443_v54, 16  ;;  %v2621_v35 = vshll.u32 %v7868_v12, 16  ;;  %v2640_v28 = vshll.u32 %v7875_v15, 16  ;;  %v7918_v0 = vld [vmem:[#allocation2 + $0x6c] sm:$0xff]  }
 0x301   : > { %v3282_v27 = vrot.slane %v3280_v4, 1  ;;  %v3287_v32 = vrot.slane %v3285_v36, 1  ;;  %v3327_v58 = vrot.slane %v7900_v18, 1  ;;  %v2614_v10 = vshrl.u32 %v7851_v61, 16  ;;  %v6454_v36 = vld [vmem:[%s8768_s4 + $0x10] sm:$0xff]   ;;  %v7934_v48 = vld [vmem:[#allocation2 + $0xa8] sm:$0xff]  }
 0x302   : > { %2769 = vrot.lane.b32.xlu0 %v2588_v40, %s6678_s14  ;;  %v2678_v43 = vrot.slane %v2676_v29, 1  ;;  %v2600_v31 = vsel %vm460_vm0, %v2595_v7, %v2599_v25  ;;  %v6526_v40 = vld [vmem:[#allocation2 + $0x2c] ss:$0 sps:$4 sm:$0x11]   ;;  %v2655_v46 = vor.u32 %v2654_v63, %v2650_v8  ;;  %v2700_v38 = vshll.u32 %v7883_v6, 16  ;;  %v7939_v63 = vld [vmem:[#allocation2 + $0x18] sm:$0xff]  }
 0x303   : > { %v3283_v19 = vor.u32 %v3282_v27, %v3278_v57  ;;  %v3328_v55 = vrot.slane %v6526_v40, 1  ;;  %v2674_v4 = vshrl.u32 %v7864_v37, 16  ;;  %v2681_v24 = vshll.u32 %v6447_v23, 16  ;;  %v7910_v47 = vld [vmem:[#allocation2 + $0x5c] ss:$0 sps:$4 sm:$0x11]  }
 0x304   : > { %v3290_v9 = vpop.permute.xlu0 %3289  ;;  %v2664_v51 = vshll.u32 %v7885_v14, 16  ;;  %v2659_v53 = vrot.slane %v2657_v52, 1  ;;  %v2623_v57 = vrot.slane %v2621_v35, 1  ;;  %v2642_v27 = vrot.slane %v2640_v28, 1  ;;  %v6463_v7 = vld [vmem:[%s8768_s4 + $0x18] sm:$0xff]  }
 0x305   : > { %v3370_v42 = vsel %vm734_vm2, %v6524_v49, %v3290_v9  ;;  %v3288_v21 = vsel %vm460_vm0, %v3283_v19, %v3287_v32  ;;  %v2679_v59 = vor.u32 %v2678_v43, %v2674_v4  ;;  %v2638_v37 = vshrl.u32 %v7875_v15, 16  ;;  %v7924_v41 = vld [vmem:[#allocation2 + $0x98] ss:$0 sps:$4 sm:$0x11]  }
 0x306   : > { %3595 = vmatmul.mubr.bf16.vlgmr.msra.gmra.mrb[0].mxu1 %v3370_v42  ;;  %2773 = vrot.lane.b32.xlu0 %v2612_v3, %s6678_s14  ;;  %v2645_v9 = vshll.u32 %v7890_v20, 16  ;;  %v2705_v26 = vshll.u32 %v7892_v50, 16  ;;  %v3329_v54 = vsel %vm685_vm1, %v3327_v58, %v3328_v55  ;;  %v2660_v49 = vsel %vm460_vm0, %v2655_v46, %v2659_v53  ;;  %v7947_v50 = vld [vmem:[#allocation2 + $0x84] sm:$0xff]   ;;  %v6528_v52 = vld [vmem:[#allocation2 + $0x38] ss:$0 sps:$4 sm:$0x11]  }
 0x307   : > { %3844 = vmatpush1.bf16.msra.mxu1 %v6430_v39  ;;  %5849 = vmatprep.mubr.msk.bf16.mxu1 %vm734_vm2, %v3326_v17  ;;  %v2619_v39 = vor.u32 %v2618_v30, %v2614_v10  ;;  %v2702_v42 = vrot.slane %v2700_v38, 1  ;;  %v2724_v19 = vshll.u32 %v7907_v60, 16  ;;  %v2683_v23 = vrot.slane %v2681_v24, 1  ;;  %v7932_v17 = vld [vmem:[#allocation2 + $0x74] ss:$0 sps:$4 sm:$0x11]  }
 0x308   : > { %3319 = vrot.lane.b32.xlu1 %v3288_v21, %s6678_s14  ;;  %3845 = vmatprep.subr.bf16.mxu1 %v8775_v1  ;;  %v2666_v29 = vrot.slane %v2664_v51, 1  ;;  %v2643_v3 = vor.u32 %v2642_v27, %v2638_v37  ;;  %v2698_v25 = vshrl.u32 %v7883_v6, 16  ;;  %v2688_v30 = vshll.u32 %v7918_v0, 16  ;;  %v6476_v6 = vld [vmem:[%s8768_s4 + $0x20] sm:$0xff]   ;;  %v7963_v24 = vld [vmem:[#allocation2 + $0x9c] sm:$0xff]  }
 0x309   : > { %v2684_v8 = vsel %vm460_vm0, %v2679_v59, %v2683_v23  ;;  %v3331_v35 = vrot.slane %v6528_v52, 1  ;;  %v2662_v28 = vshrl.u32 %v7885_v14, 16  ;;  %v2647_v10 = vrot.slane %v2645_v9, 1  ;;  %v7957_v55 = vld [vmem:[#allocation2 + $0xb0] ss:$0 sps:$4 sm:$0x11]  }
 0x30a   : > { %2777 = vrot.lane.b32.xlu0 %v2636_v62, %s6678_s14  ;;  %v2669_v62 = vshll.u32 %v7910_v47, 16  ;;  %v2703_v43 = vor.u32 %v2702_v42, %v2698_v25  ;;  %v2726_v40 = vrot.slane %v2724_v19, 1  ;;  %v2722_v38 = vshrl.u32 %v7907_v60, 16  ;;  %v7973_v59 = vld [vmem:[#allocation2 + $0x20] ss:$0 sps:$4 sm:$0x11]  }
 0x30b   : > { %3846 = vmatpush1.bf16.msra.mxu1 %v6441_v22  ;;  %v2624_v22 = vsel %vm460_vm0, %v2619_v39, %v2623_v57  ;;  %v2667_v46 = vor.u32 %v2666_v29, %v2662_v28  ;;  %v2729_v39 = vshll.u32 %v7924_v41, 16  ;;  %v2748_v4 = vshll.u32 %v7934_v48, 16  ;;  %v7981_v42 = vld [vmem:[#allocation2 + $0x30] sm:$0xff]   ;;  %v7987_v23 = vld [vmem:[#allocation2 + $0xa4] ss:$0 sps:$4 sm:$0x11]  }
 0x30c   : > { %2771 = vrot.lane.b32.xlu1 %v2600_v31, %s6678_s14  ;;  %3847 = vmatprep.subr.bf16.mxu1 %v8775_v1  ;;  %v2707_v31 = vrot.slane %v2705_v26, 1  ;;  %v2648_v51 = vsel %vm460_vm0, %v2643_v3, %v2647_v10  ;;  %v2712_v53 = vshll.u32 %v7947_v50, 16  ;;  %v2671_v60 = vrot.slane %v2669_v62, 1  ;;  %8807 = vst [vmem:[#allocation6_spill] sm:$0xff] %v7981_v42  ;;  %v7991_v3 = vld [vmem:[#allocation2 + $0x3c] sm:$0xff]  }
 0x30d   : > { %v3292_v13 = vpop.permute.xlu1 %3291  ;;  %v2693_v27 = vshll.u32 %v7932_v17, 16  ;;  %v4184_v37 = vshll.u32 %v7939_v63, 16  ;;  %v2736_v29 = vshll.u32 %v7963_v24, 16  ;;  %v2753_v25 = vshll.u32 %v7957_v55, 16 }
 0x30e   : > { %v3373_v32 = vsel %vm734_vm2, %v7846_v45, %v3292_v13  ;;  %2781 = vrot.lane.b32.xlu0 %v2660_v49, %s6678_s14  ;;  %v7942_v45 = vld [vmem:[#allocation2 + $0x30] sm:$0xff]   ;;  %v2708_v26 = vsel %vm460_vm0, %v2703_v43, %v2707_v31  ;;  %v2727_v13 = vor.u32 %v2726_v40, %v2722_v38  ;;  %v7979_v49 = vld [vmem:[#allocation2 + $0x8c] ss:$0 sps:$4 sm:$0x11]   ;;  %v2672_v19 = vsel %vm460_vm0, %v2667_v46, %v2671_v60 }
 0x30f   : > { %3848 = vmatpush1.bf16.msra.mxu1 %v6454_v36  ;;  %v3330_v21 = vrot.slane %v7942_v45, 1  ;;  %v2690_v36 = vrot.slane %v2688_v30, 1  ;;  %v2714_v30 = vrot.slane %v2712_v53, 1  ;;  %v2695_v52 = vrot.slane %v2693_v27, 1  ;;  %v8004_v40 = vld [vmem:[#allocation2 + $0x48] sm:$0xff]  }
 0x310   : > { %3603 = vmatmul.mubr.bf16.gmra.mrb[4].mxu1 %v3373_v32  ;;  %2775 = vrot.lane.b32.xlu1 %v2624_v22, %s6678_s14  ;;  %v2731_v32 = vrot.slane %v2729_v39, 1  ;;  %v2750_v22 = vrot.slane %v2748_v4, 1  ;;  %v2746_v62 = vshrl.u32 %v7934_v48, 16  ;;  %v2710_v10 = vshrl.u32 %v7947_v50, 16  ;;  %8808 = vst [vmem:[#allocation7_spill] sm:$0xff] %v8004_v40 }
 0x311   : > { %5850 = vmatprep.mubr.msk.bf16.mxu1 %vm734_vm2, %v3329_v54  ;;  %3849 = vmatprep.subr.bf16.mxu1 %v8775_v1  ;;  %v3332_v9 = vsel %vm685_vm1, %v3330_v21, %v3331_v35  ;;  %v2686_v54 = vshrl.u32 %v7918_v0, 16  ;;  %v3333_v21 = vrot.slane %v7991_v3, 1  ;;  %v6530_v35 = vld [vmem:[#allocation2 + $0x44] ss:$0 sps:$4 sm:$0x11]   ;;  %v2717_v43 = vshll.u32 %v7979_v49, 16 }
 0x312   : > { %v3294_v58 = vpop.permute.xlu0 %3293  ;;  %2785 = vrot.lane.b32.xlu0 %v2684_v8, %s6678_s14  ;;  %v7995_v8 = vld [vmem:[#allocation2 + $0xb4] sm:$0xff]   ;;  %v3334_v28 = vrot.slane %v6530_v35, 1  ;;  %v4208_v31 = vshll.u32 %v7981_v42, 16  ;;  %v2751_v46 = vor.u32 %v2750_v22, %v2746_v62  ;;  %v4182_v38 = vshrl.u32 %v7939_v63, 16  ;;  %v8033_v62 = vld [vmem:[#allocation2 + $0x60] sm:$0xff]  }
 0x313   : > { %3850 = vmatpush1.bf16.msra.mxu1 %v6463_v7  ;;  %v3376_v57 = vsel %vm734_vm2, %v7900_v18, %v3294_v58  ;;  %v6489_v18 = vld [vmem:[%s8768_s4 + $0x28] sm:$0xff]   ;;  %v2691_v7 = vor.u32 %v2690_v36, %v2686_v54  ;;  %v2732_v58 = vsel %vm460_vm0, %v2727_v13, %v2731_v32  ;;  %v4189_v39 = vshll.u32 %v7973_v59, 16  ;;  %v6498_v36 = vld [vmem:[%s8768_s4 + $0x30] sm:$0xff]   ;;  %8811 = vst [vmem:[#allocation10_spill] sm:$0xff] %v8033_v62 }
 0x314   : > { %3851 = vmatprep.subr.bf16.mxu1 %v8775_v1  ;;  %2779 = vrot.lane.b32.xlu1 %v2648_v51, %s6678_s14  ;;  %v2738_v4 = vrot.slane %v2736_v29, 1  ;;  %v8009_v51 = vld [vmem:[#allocation2 + $0x24] sm:$0xff]   ;;  %v2755_v60 = vrot.slane %v2753_v25, 1  ;;  %v2715_v27 = vor.u32 %v2714_v30, %v2710_v10  ;;  %v2734_v54 = vshrl.u32 %v7963_v24, 16 }
 0x315   : > { %v3335_v32 = vsel %vm685_vm1, %v3333_v21, %v3334_v28  ;;  %v2719_v22 = vrot.slane %v2717_v43, 1  ;;  %v4210_v29 = vrot.slane %v4208_v31, 1  ;;  %v4232_v25 = vshll.u32 %v8004_v40, 16  ;;  %v8042_v43 = vld [vmem:[#allocation2 + $0x3c] sm:$0xff]  }
 0x316   : > { %2789 = vrot.lane.b32.xlu0 %v2708_v26, %s6678_s14  ;;  %v2756_v30 = vsel %vm460_vm0, %v2751_v46, %v2755_v60  ;;  %v4196_v35 = vshll.u32 %v8009_v51, 16  ;;  %v4206_v28 = vshrl.u32 %v7981_v42, 16  ;;  %8812 = vst [vmem:[#allocation11_spill] sm:$0xff] %v8042_v43 }
 0x317   : > { %3852 = vmatpush1.bf16.msra.mxu1 %v6476_v6  ;;  %v4186_v6 = vrot.slane %v4184_v37, 1  ;;  %v8016_v37 = vld [vmem:[#allocation2 + $0x38] ss:$0 sps:$4 sm:$0x11]   ;;  %v2720_v21 = vsel %vm460_vm0, %v2715_v27, %v2719_v22  ;;  %v2758_v27 = vshrl.u32 %v7995_v8, 16 }
 0x318   : > { %3611 = vmatmul.mubr.bf16.gmra.mrb[8].mxu1 %v3376_v57  ;;  %2783 = vrot.lane.b32.xlu1 %v2672_v19, %s6678_s14  ;;  %v2696_v57 = vsel %vm460_vm0, %v2691_v7, %v2695_v52  ;;  %8809 = vst [vmem:[#allocation8_spill] sm:$0xff] %v8016_v37  ;;  %v8025_v19 = vld [vmem:[#allocation2 + $0x50] ss:$0 sps:$4 sm:$0x11]   ;;  %v2739_v52 = vor.u32 %v2738_v4, %v2734_v54  ;;  %v8058_v22 = vld [vmem:[#allocation2 + $0x78] sm:$0xff]  }
 0x319   : > { %5851 = vmatprep.mubr.msk.bf16.mxu1 %vm734_vm2, %v3332_v9  ;;  %3853 = vmatprep.subr.bf16.mxu1 %v8775_v1  ;;  %v2760_v9 = vshll.u32 %v7995_v8, 16  ;;  %v4187_v13 = vor.u32 %v4186_v6, %v4182_v38  ;;  %8810 = vst [vmem:[#allocation9_spill] sm:$0xff] %v8025_v19  ;;  %v8028_v7 = vld [vmem:[#allocation2 + $0xbc] ss:$0 sps:$4 sm:$0x11]   ;;  %v6501_v6 = vld [vmem:[%s8768_s4 + $0x38] sm:$0xff]   ;;  %v4211_v60 = vor.u32 %v4210_v29, %v4206_v28 }
 0x31a   : > { %2793 = vrot.lane.b32.xlu0 %v2732_v58, %s6678_s14  ;;  %v4213_v58 = vshll.u32 %v8016_v37, 16  ;;  %v8047_v38 = vld [vmem:[#allocation2 + $0x48] sm:$0xff]   ;;  %v6532_v4 = vld [vmem:[#allocation2 + $0x50] ss:$0 sps:$4 sm:$0x11]   ;;  %v4237_v54 = vshll.u32 %v8025_v19, 16 }
 0x31b   : > { %3854 = vmatpush1.bf16.msra.mxu1 %v6489_v18  ;;  %v3296_v53 = vpop.permute.xlu1 %3295  ;;  %v2741_v18 = vshll.u32 %v7987_v23, 16  ;;  %v2762_v10 = vrot.slane %v2760_v9, 1  ;;  %v2765_v9 = vshll.u32 %v8028_v7, 16  ;;  %8813 = vst [vmem:[#allocation12_spill] sm:$0xff] %v8058_v22  ;;  %v6502_v29 = vld [vmem:[%s8768_s4 + $0x40] sm:$0xff]   ;;  %v4280_v37 = vshll.u32 %v8058_v22, 16 }
 0x31c   : > { %3855 = vmatprep.subr.bf16.mxu1 %v8775_v1  ;;  %v3379_v26 = vsel %vm734_vm2, %v7942_v45, %v3296_v53  ;;  %2787 = vrot.lane.b32.xlu1 %v2696_v57, %s6678_s14  ;;  %v4191_v45 = vrot.slane %v4189_v39, 1  ;;  %v3336_v39 = vrot.slane %v8047_v38, 1  ;;  %v8050_v53 = vld [vmem:[#allocation2 + $0x2c] ss:$0 sps:$4 sm:$0x11]   ;;  %v4239_v19 = vrot.slane %v4237_v54, 1 }
 0x31d   : > { %v2743_v46 = vrot.slane %v2741_v18, 1  ;;  %v4198_v18 = vrot.slane %v4196_v35, 1  ;;  %v4220_v35 = vshll.u32 %v8042_v43, 16 }
 0x31e   : > { %2797 = vrot.lane.b32.xlu0 %v2756_v30, %s6678_s14  ;;  %v4192_v31 = vsel %vm460_vm0, %v4187_v13, %v4191_v45  ;;  %v8060_v30 = vld [vmem:[#allocation2 + $0x54] sm:$0xff]   ;;  %v2763_v45 = vor.u32 %v2762_v10, %v2758_v27  ;;  %v8078_v27 = vld [vmem:[#allocation2 + $0x44] ss:$0 sps:$4 sm:$0x11]  }
 0x31f   : > { %3856 = vmatpush1.bf16.msra.mxu1 %v6498_v36  ;;  %v3337_v36 = vrot.slane %v6532_v4, 1  ;;  %v2744_v13 = vsel %vm460_vm0, %v2739_v52, %v2743_v46  ;;  %8814 = vst [vmem:[#allocation13_spill] sm:$0xff] %v8060_v30  ;;  %v4230_v52 = vshrl.u32 %v8004_v40, 16  ;;  %v4201_v46 = vshll.u32 %v8050_v53, 16  ;;  %8816 = vst [vmem:[#allocation15_spill] sm:$0xff] %v8078_v27 }
 0x320   : > { %3619 = vmatmul.mubr.bf16.gmra.mrb[12].mxu1 %v3379_v26  ;;  %2791 = vrot.lane.b32.xlu1 %v2720_v21, %s6678_s14  ;;  %v4234_v26 = vrot.slane %v4232_v25, 1  ;;  %v4215_v25 = vrot.slane %v4213_v58, 1  ;;  %v8067_v21 = vld [vmem:[#allocation2 + $0x68] ss:$0 sps:$4 sm:$0x11]  }
 0x321   : > { %5852 = vmatprep.mubr.msk.bf16.mxu1 %vm734_vm2, %v3335_v32  ;;  %3857 = vmatprep.subr.bf16.mxu1 %v8775_v1  ;;  %v4256_v32 = vshll.u32 %v8033_v62, 16  ;;  %8815 = vst [vmem:[#allocation14_spill] sm:$0xff] %v8067_v21  ;;  %v3338_v58 = vsel %vm685_vm1, %v3336_v39, %v3337_v36  ;;  %v6503_v39 = vld [vmem:[%s8768_s4 + $0x48] sm:$0xff]   ;;  %v4203_v54 = vrot.slane %v4201_v46, 1 }
 0x322   : > { %v3298_v57 = vpop.permute.xlu0 %3297  ;;  %4373 = vrot.lane.b32.xlu0 %v4192_v31, %s6678_s14  ;;  %v4216_v10 = vsel %vm460_vm0, %v4211_v60, %v4215_v25  ;;  %v2767_v31 = vrot.slane %v2765_v9, 1  ;;  %v4235_v4 = vor.u32 %v4234_v26, %v4230_v52  ;;  %v4261_v60 = vshll.u32 %v8067_v21, 16  ;;  %v8091_v26 = vld [vmem:[#allocation2 + $0x80] ss:$0 sps:$4 sm:$0x11]   ;;  %v8108_v21 = vld [vmem:[#allocation2 + $0xa8] sm:$0xff]  }
 0x323   : > { %3858 = vmatpush1.bf16.msra.mxu1 %v6501_v6  ;;  %v3382_v28 = vsel %vm734_vm2, %v7991_v3, %v3298_v57  ;;  %v4194_v6 = vshrl.u32 %v8009_v51, 16  ;;  %v8081_v3 = vld [vmem:[#allocation2 + $0x90] sm:$0xff]   ;;  %v4222_v9 = vrot.slane %v4220_v35, 1  ;;  %8819 = vst [vmem:[#allocation18_spill] sm:$0xff] %v8091_v26 }
 0x324   : > { %3859 = vmatprep.subr.bf16.mxu1 %v8775_v1  ;;  %2795 = vrot.lane.b32.xlu1 %v2744_v13, %s6678_s14  ;;  %v4258_v1 = vrot.slane %v4256_v32, 1  ;;  %8817 = vst [vmem:[#allocation16_spill] sm:$0xff] %v8081_v3  ;;  %v8083_v57 = vld [vmem:[#allocation2 + $0x6c] sm:$0xff]   ;;  %v2768_v36 = vsel %vm460_vm0, %v2763_v45, %v2767_v31  ;;  %v4244_v13 = vshll.u32 %v8060_v30, 16  ;;  %v4240_v45 = vsel %vm460_vm0, %v4235_v4, %v4239_v19  ;;  %v6504_v19 = vld [vmem:[%s8768_s4 + $0x50] sm:$0xff]  }
 0x325   : > { %v4199_v40 = vor.u32 %v4198_v18, %v4194_v6  ;;  %8818 = vst [vmem:[#allocation17_spill] sm:$0xff] %v8083_v57  ;;  %v8096_v18 = vld [vmem:[#allocation2 + $0x54] sm:$0xff]   ;;  %v8100_v25 = vld [vmem:[#allocation2 + $0x5c] ss:$0 sps:$4 sm:$0x11]   ;;  %v4225_v6 = vshll.u32 %v8078_v27, 16 }
 0x326   : > { %4377 = vrot.lane.b32.xlu0 %v4216_v10, %s6678_s14  ;;  %v3339_v32 = vrot.slane %v8096_v18, 1  ;;  %8820 = vst [vmem:[#allocation19_spill] sm:$0xff] %v8100_v25  ;;  %v6534_v52 = vld [vmem:[#allocation2 + $0x5c] ss:$0 sps:$4 sm:$0x11]   ;;  %v4282_v31 = vrot.slane %v4280_v37, 1 }
 0x327   : > { %3860 = vmatpush1.bf16.msra.mxu1 %v6502_v29  ;;  %v4254_v29 = vshrl.u32 %v8033_v62, 16  ;;  %v3340_v35 = vrot.slane %v6534_v52, 1  ;;  %v4204_v46 = vsel %vm460_vm0, %v4199_v40, %v4203_v54  ;;  %v4263_v52 = vrot.slane %v4261_v60, 1  ;;  %v8115_v40 = vld [vmem:[#allocation2 + $0x84] sm:$0xff]  }
 0x328   : > { %3627 = vmatmul.mubr.bf16.gmra.mrb[16].mxu1 %v3382_v28  ;;  %2799 = vrot.lane.b32.xlu1 %v2768_v36, %s6678_s14  ;;  %v4218_v28 = vshrl.u32 %v8042_v43, 16  ;;  %v4304_v36 = vshll.u32 %v8081_v3, 16  ;;  %v4246_v27 = vrot.slane %v4244_v13, 1  ;;  %v4268_v43 = vshll.u32 %v8083_v57, 16 }
 0x329   : > { %5853 = vmatprep.mubr.msk.bf16.mxu1 %vm734_vm2, %v3338_v58  ;;  %v8821_v58 = vmov 0   ;;  %v4259_v10 = vor.u32 %v4258_v1, %v4254_v29  ;;  %v4278_v37 = vshrl.u32 %v8058_v22, 16  ;;  %v4249_v54 = vshll.u32 %v8100_v25, 16  ;;  %v8124_v60 = vld [vmem:[#allocation2 + $0x98] ss:$0 sps:$4 sm:$0x11]  }
 0x32a   : > { %3861 = vmatprep.subr.bf16.mxu1 %v8821_v58  ;;  %4381 = vrot.lane.b32.xlu0 %v4240_v45, %s6678_s14  ;;  %v4223_v62 = vor.u32 %v4222_v9, %v4218_v28  ;;  %8822 = vst [vmem:[#allocation20_spill] sm:$0xff] %v8124_v60  ;;  %v3341_v9 = vsel %vm685_vm1, %v3339_v32, %v3340_v35  ;;  %v4227_v13 = vrot.slane %v4225_v6, 1  ;;  %v4242_v29 = vshrl.u32 %v8060_v30, 16  ;;  %v8128_v45 = vld [vmem:[#allocation2 + $0x74] ss:$0 sps:$4 sm:$0x11]  }
 0x32b   : > { %3862 = vmatpush1.bf16.msra.mxu1 %v6503_v39  ;;  %v3300_v4 = vpop.permute.xlu1 %3299  ;;  %v4285_v39 = vshll.u32 %v8091_v26, 16  ;;  %v8130_v28 = vld [vmem:[#allocation2 + $0xc0] sm:$0xff]   ;;  %v8133_v22 = vld [vmem:[#allocation2 + $0xb0] ss:$0 sps:$4 sm:$0x11]   ;;  %v4328_v26 = vshll.u32 %v8108_v21, 16 }
 0x32c   : > { %3863 = vmatprep.subr.bf16.mxu1 %v8821_v58  ;;  %v3385_v1 = vsel %vm734_vm2, %v8047_v38, %v3300_v4  ;;  %4375 = vrot.lane.b32.xlu1 %v4204_v46, %s6678_s14  ;;  %v4264_v38 = vsel %vm460_vm0, %v4259_v10, %v4263_v52  ;;  %v4283_v46 = vor.u32 %v4282_v31, %v4278_v37  ;;  %v4306_v4 = vrot.slane %v4304_v36, 1  ;;  %v6505_v32 = vld [vmem:[%s8768_s4 + $0x58] sm:$0xff]   ;;  %v8144_v31 = vld [vmem:[#allocation2 + $0x9c] sm:$0xff]  }
 0x32d   : > { %8823 = vst [vmem:[#allocation21_spill] sm:$0xff] %v8133_v22  ;;  %v4228_v35 = vsel %vm460_vm0, %v4223_v62, %v4227_v13  ;;  %v4247_v6 = vor.u32 %v4246_v27, %v4242_v29  ;;  %v4270_v25 = vrot.slane %v4268_v43, 1  ;;  %v8141_v30 = vld [vmem:[#allocation2 + $0x8c] ss:$0 sps:$4 sm:$0x11]   ;;  %v4292_v10 = vshll.u32 %v8115_v40, 16 }
 0x32e   : > { %4385 = vrot.lane.b32.xlu0 %v4264_v38, %s6678_s14  ;;  %v4287_v36 = vrot.slane %v4285_v39, 1  ;;  %v4302_v52 = vshrl.u32 %v8081_v3, 16  ;;  %v6535_v62 = vld [vmem:[#allocation2 + $0x60] sm:$0xff]   ;;  %v6536_v43 = vld [vmem:[#allocation2 + $0x68] ss:$0 sps:$4 sm:$0x11]  }
 0x32f   : > { %3864 = vmatpush1.bf16.msra.mxu1 %v6504_v19  ;;  %v4251_v19 = vrot.slane %v4249_v54, 1  ;;  %v3342_v27 = vrot.slane %v6535_v62, 1  ;;  %v3343_v13 = vrot.slane %v6536_v43, 1  ;;  %v4266_v29 = vshrl.u32 %v8083_v57, 16  ;;  %v8158_v57 = vld [vmem:[#allocation2 + $0xb4] sm:$0xff]  }
 0x330   : > { %3635 = vmatmul.mubr.bf16.gmra.mrb[20].mxu1 %v3385_v1  ;;  %4379 = vrot.lane.b32.xlu1 %v4228_v35, %s6678_s14  ;;  %v4309_v1 = vshll.u32 %v8124_v60, 16  ;;  %v4273_v38 = vshll.u32 %v8128_v45, 16  ;;  %v4307_v35 = vor.u32 %v4306_v4, %v4302_v52  ;;  %v4330_v39 = vrot.slane %v4328_v26, 1 }
 0x331   : > { %5854 = vmatprep.mubr.msk.bf16.mxu1 %vm734_vm2, %v3341_v9  ;;  %3865 = vmatprep.subr.bf16.mxu1 %v8821_v58  ;;  %v4288_v9 = vsel %vm460_vm0, %v4283_v46, %v4287_v36  ;;  %v4352_v54 = vshll.u32 %v8130_v28, 16  ;;  %v4252_v60 = vsel %vm460_vm0, %v4247_v6, %v4251_v19  ;;  %v4271_v3 = vor.u32 %v4270_v25, %v4266_v29  ;;  %v8166_v36 = vld [vmem:[#allocation2 + $0xc8] ss:$0 sps:$4 sm:$0x11]  }
 0x332   : > { %v3302_v37 = vpop.permute.xlu0 %3301  ;;  %4389 = vrot.lane.b32.xlu0 %v4288_v9, %s6678_s14  ;;  %v4294_v42 = vrot.slane %v4292_v10, 1  ;;  %v4316_v43 = vshll.u32 %v8144_v31, 16  ;;  %v4311_v26 = vrot.slane %v4309_v1, 1  ;;  %v4326_v4 = vshrl.u32 %v8108_v21, 16  ;;  %8824 = vst [vmem:[#allocation22_spill] sm:$0xff] %v8166_v36 }
 0x333   : > { %3866 = vmatpush1.bf16.msra.mxu1 %v6505_v32  ;;  %v3388_v46 = vsel %vm734_vm2, %v8096_v18, %v3302_v37  ;;  %v4333_v32 = vshll.u32 %v8133_v22, 16  ;;  %v4275_v25 = vrot.slane %v4273_v38, 1  ;;  %v4290_v6 = vshrl.u32 %v8115_v40, 16  ;;  %v8170_v19 = vld [vmem:[#allocation2 + $0xa4] ss:$0 sps:$4 sm:$0x11]  }
 0x334   : > { %4646 = vmatprep.subr.bf16.mxu1 %v8821_v58  ;;  %4383 = vrot.lane.b32.xlu1 %v4252_v60, %s6678_s14  ;;  %v4297_v10 = vshll.u32 %v8141_v30, 16  ;;  %v3344_v52 = vsel %vm685_vm1, %v3342_v27, %v3343_v13  ;;  %v4312_v18 = vsel %vm460_vm0, %v4307_v35, %v4311_v26  ;;  %v4331_v37 = vor.u32 %v4330_v39, %v4326_v4 }
 0x335   : > { %v4354_v60 = vrot.slane %v4352_v54, 1  ;;  %v4276_v1 = vsel %vm460_vm0, %v4271_v3, %v4275_v25  ;;  %v4295_v29 = vor.u32 %v4294_v42, %v4290_v6  ;;  %v4318_v9 = vrot.slane %v4316_v43, 1  ;;  %v6537_v3 = vld [vmem:[#allocation2 + $0x6c] sm:$0xff]   ;;  %v6538_v25 = vld [vmem:[#allocation2 + $0x74] ss:$0 sps:$4 sm:$0x11]  }
 0x336   : > { %4393 = vrot.lane.b32.xlu0 %v4312_v18, %s6678_s14  ;;  %v4340_v38 = vshll.u32 %v8158_v57, 16  ;;  %v4335_v22 = vrot.slane %v4333_v32, 1  ;;  %v4350_v27 = vshrl.u32 %v8130_v28, 16  ;;  %v4357_v13 = vshll.u32 %v8166_v36, 16 }
 0x337   : > { %v4299_v35 = vrot.slane %v4297_v10, 1  ;;  %v4314_v39 = vshrl.u32 %v8144_v31, 16  ;;  %v4321_v54 = vshll.u32 %v8170_v19, 16  ;;  %v3345_v43 = vrot.slane %v6537_v3, 1 }
 0x338   : > { %3643 = vmatmul.mubr.bf16.gmra.mrb[24].mxu1 %v3388_v46  ;;  %4387 = vrot.lane.b32.xlu1 %v4276_v1, %s6678_s14  ;;  %v8183_v46 = vld [vmem:[#allocation2 + $0xbc] ss:$0 sps:$4 sm:$0x11]   ;;  %v4336_v42 = vsel %vm460_vm0, %v4331_v37, %v4335_v22  ;;  %v4355_v26 = vor.u32 %v4354_v60, %v4350_v27  ;;  %v3346_v6 = vrot.slane %v6538_v25, 1  ;;  %v4342_v10 = vrot.slane %v4340_v38, 1 }
 0x339   : > { %5855 = vmatprep.mubr.msk.bf16.mxu1 %vm734_vm2, %v3344_v52  ;;  %v4300_v32 = vsel %vm460_vm0, %v4295_v29, %v4299_v35  ;;  %v4319_v52 = vor.u32 %v4318_v9, %v4314_v39  ;;  %v4359_v1 = vrot.slane %v4357_v13, 1  ;;  %v4323_v36 = vrot.slane %v4321_v54, 1  ;;  %v6539_v35 = vld [vmem:[#allocation2 + $0x78] sm:$0xff]   ;;  %v6540_v54 = vld [vmem:[#allocation2 + $0x80] ss:$0 sps:$4 sm:$0x11]  }
 0x33a   : > { %4397 = vrot.lane.b32.xlu0 %v4336_v42, %s6678_s14  ;;  %v4338_v22 = vshrl.u32 %v8158_v57, 16  ;;  %v4345_v37 = vshll.u32 %v8183_v46, 16  ;;  %v3347_v27 = vsel %vm685_vm1, %v3345_v43, %v3346_v6  ;;  %v3348_v39 = vrot.slane %v6539_v35, 1  ;;  %v6542_v25 = vld [vmem:[#allocation2 + $0x8c] ss:$0 sps:$4 sm:$0x11]  }
 0x33b   : > { %v3304_v4 = vpop.permute.xlu1 %3303  ;;  %v4360_v60 = vsel %vm460_vm0, %v4355_v26, %v4359_v1  ;;  %v4324_v29 = vsel %vm460_vm0, %v4319_v52, %v4323_v36  ;;  %v3349_v42 = vrot.slane %v6540_v54, 1  ;;  %v3352_v6 = vrot.slane %v6542_v25, 1 }
 0x33c   : > { %v3391_v18 = vsel %vm734_vm2, %v6535_v62, %v3304_v4  ;;  %4391 = vrot.lane.b32.xlu1 %v4300_v32, %s6678_s14  ;;  %v4343_v9 = vor.u32 %v4342_v10, %v4338_v22  ;;  %v4347_v38 = vrot.slane %v4345_v37, 1  ;;  %v6541_v4 = vld [vmem:[#allocation2 + $0x84] sm:$0xff]   ;;  %v6544_v22 = vld [vmem:[#allocation2 + $0x98] ss:$0 sps:$4 sm:$0x11]   ;;  %v3363_v25 = vrot.slane %v7824_v56, 1 }
 0x33d   : > { %v3350_v36 = vsel %vm685_vm1, %v3348_v39, %v3349_v42  ;;  %v3351_v32 = vrot.slane %v6541_v4, 1  ;;  %v3355_v37 = vrot.slane %v6544_v22, 1  ;;  %v6547_v42 = vld [vmem:[#allocation2 + $0xa8] sm:$0xff]  }
 0x33e   : > { %4401 = vrot.lane.b32.xlu0 %v4360_v60, %s6678_s14  ;;  %v4348_v13 = vsel %vm460_vm0, %v4343_v9, %v4347_v38  ;;  %v6545_v9 = vld [vmem:[#allocation2 + $0x9c] sm:$0xff]   ;;  %v6546_v38 = vld [vmem:[#allocation2 + $0xa4] ss:$0 sps:$4 sm:$0x11]  }
 0x33f   : > { %v3353_v10 = vsel %vm685_vm1, %v3351_v32, %v3352_v6  ;;  %v3364_v6 = vrot.slane %v7831_v2, 1 }
 0x340   : > { %3651 = vmatmul.mubr.bf16.gmra.mrb[28].mxu1 %v3391_v18  ;;  %4395 = vrot.lane.b32.xlu1 %v4324_v29, %s6678_s14  ;;  %v6543_v18 = vld [vmem:[#allocation2 + $0x90] sm:$0xff]  }
 0x341   : > { %5856 = vmatprep.mubr.msk.bf16.mxu1 %vm734_vm2, %v3347_v27  ;;  %v3354_v1 = vrot.slane %v6543_v18, 1 }
 0x342   : > { %v3306_v62 = vpop.permute.xlu0 %3305 }
 0x343   : > { %v3394_v26 = vsel %vm734_vm2, %v6537_v3, %v3306_v62  ;;  %v3356_v27 = vsel %vm685_vm1, %v3354_v1, %v3355_v37  ;;  %v3357_v62 = vrot.slane %v6545_v9, 1  ;;  %v6548_v37 = vld [vmem:[#allocation2] sm:$0xff]  }
 0x344   : > { %4399 = vrot.lane.b32.xlu1 %v4348_v13, %s6678_s14  ;;  %v3358_v13 = vrot.slane %v6546_v38, 1  ;;  %v2805_v38 = vrot.slane %v7842_v5, 1 }
 0x346   : > { %v3359_v39 = vsel %vm685_vm1, %v3357_v62, %v3358_v13 }
 0x348   : > { %3659 = vmatmul.mubr.bf16.gmra.mrb[32].mxu1 %v3394_v26  ;;  %v3360_v26 = vrot.slane %v6547_v42, 1 }
 0x349   : > { %5857 = vmatprep.mubr.msk.bf16.mxu1 %vm734_vm2, %v3350_v36  ;;  %v3361_v36 = vrot.slane %v7819_v44, 1 }
 0x34b   : > { %v3308_v43 = vpop.permute.xlu1 %3307 }
 0x34c   : > { %v3397_v52 = vsel %vm734_vm2, %v6539_v35, %v3308_v43 }
 0x350   : > { %3667 = vmatmul.mubr.bf16.gmra.mrb[36].mxu1 %v3397_v52 }
 0x351   : > { %5858 = vmatprep.mubr.msk.bf16.mxu1 %vm734_vm2, %v3353_v10  ;;  %v3365_v10 = vsel %vm685_vm1, %v3363_v25, %v3364_v6  ;;  %v6508_v25 = vld [vmem:[%s8768_s4 + $0xd0] sm:$0xff]  }
 0x352   : > { %v3310_v3 = vpop.permute.xlu0 %3309 }
 0x353   : > { %v3400_v60 = vsel %vm734_vm2, %v6541_v4, %v3310_v3  ;;  %v3362_v4 = vsel %vm685_vm1, %v3360_v26, %v3361_v36  ;;  %v3366_v3 = vrot.slane %v7854_v11, 1 }
 0x358   : > { %3675 = vmatmul.mubr.bf16.gmra.mrb[40].mxu1 %v3400_v60  ;;  %v2801_v60 = vrot.slane %v6548_v37, 1 }
 0x359   : > { %5859 = vmatprep.mubr.msk.bf16.mxu1 %vm734_vm2, %v3356_v27  ;;  %v6549_v27 = vld [vmem:[#allocation2 + $0x8] ss:$0 sps:$4 sm:$0x11]  }
 0x35b   : > { %v3312_v29 = vpop.permute.xlu1 %3311 }
 0x35c   : > { %v3403_v35 = vsel %vm734_vm2, %v6543_v18, %v3312_v29  ;;  %v3367_v18 = vrot.slane %v7858_v33, 1  ;;  %v2802_v29 = vrot.slane %v6549_v27, 1 }
 0x35e   : > { %v3368_v22 = vsel %vm685_vm1, %v3366_v3, %v3367_v18  ;;  %v2803_v62 = vsel %vm685_vm1, %v2801_v60, %v2802_v29  ;;  %v6510_v60 = vld [vmem:[%s8768_s4 + $0xe0] sm:$0xff]  }
 0x360   : > { %3683 = vmatmul.mubr.bf16.gmra.mrb[44].mxu1 %v3403_v35  ;;  %v6506_v35 = vld [vmem:[%s8768_s4 + $0xc0] sm:$0xff]  }
 0x361   : > { %5860 = vmatprep.mubr.msk.bf16.mxu1 %vm734_vm2, %v3359_v39 }
 0x362   : > { %v3314_v54 = vpop.permute.xlu0 %3313 }
 0x363   : > { %v3406_v43 = vsel %vm734_vm2, %v6545_v9, %v3314_v54  ;;  %v8242_v54 = vld [vmem:[#allocation2 + $0xcc] sm:$0xff]  }
 0x364   : > { %v4362_v5 = vshrl.u32 %v8242_v54, 16 }
 0x368   : > { %3691 = vmatmul.mubr.bf16.gmra.mrb[48].mxu1 %v3406_v43  ;;  %v6550_v43 = vld [vmem:[#allocation2 + $0x18] sm:$0xff]  }
 0x369   : > { %5861 = vmatprep.mubr.msk.bf16.mxu1 %vm734_vm2, %v3362_v4  ;;  %v3316_v32 = vpop.permute.xlu1 %3315  ;;  %v2807_v4 = vrot.slane %v6550_v43, 1 }
 0x36a   : > { %v3409_v52 = vsel %vm734_vm2, %v6547_v42, %v3316_v32  ;;  %v4364_v42 = vshll.u32 %v8242_v54, 16  ;;  %v2808_v32 = vrot.slane %v7840_v34, 1  ;;  %v6509_v34 = vld [vmem:[%s8768_s4 + $0xd8] sm:$0xff]  }
 0x36c   : > { %v4366_v6 = vrot.slane %v4364_v42, 1  ;;  %v2809_v18 = vsel %vm685_vm1, %v2807_v4, %v2808_v32  ;;  %v2816_v42 = vrot.slane %v7875_v15, 1  ;;  %v6515_v15 = vld [vmem:[%s8768_s4 + $0x108] sm:$0xff]   ;;  %v6555_v32 = vld [vmem:[#allocation2 + $0x48] sm:$0xff]  }
 0x36e   : > { %v4367_v3 = vor.u32 %v4366_v6, %v4362_v5  ;;  %v6556_v6 = vld [vmem:[#allocation2 + $0x50] ss:$0 sps:$4 sm:$0x11]  }
 0x370   : > { %3699 = vmatmul.mubr.bf16.gmra.mrb[52].mxu1 %v3409_v52  ;;  %v3318_v44 = vpop.permute.xlu0 %3317 }
 0x371   : > { %5862 = vmatprep.mubr.msk.bf16.mxu1 %vm734_vm2, %v3365_v10  ;;  %v3412_v1 = vsel %vm734_vm2, %v7824_v56, %v3318_v44  ;;  %v2804_v56 = vrot.slane %v7837_v16, 1  ;;  %v8244_v16 = vld [vmem:[#allocation2 + $0xd4] ss:$0 sps:$4 sm:$0x11]   ;;  %v6551_v10 = vld [vmem:[#allocation2 + $0xc] sm:$0xff]  }
 0x372   : > { %v4369_v26 = vshll.u32 %v8244_v16, 16 }
 0x373   : > { %v2806_v39 = vsel %vm685_vm1, %v2804_v56, %v2805_v38  ;;  %v6512_v38 = vld [vmem:[%s8768_s4 + $0xf0] sm:$0xff]  }
 0x374   : > { %v2770_v33 = vpop.permute.xlu0 %2769  ;;  %v4371_v52 = vrot.slane %v4369_v26, 1  ;;  %v2817_v26 = vrot.slane %v7890_v20, 1 }
 0x375   : > { %v2850_v13 = vsel %vm734_vm2, %v6548_v37, %v2770_v33  ;;  %v2811_v37 = vrot.slane %v7868_v12, 1  ;;  %v6553_v33 = vld [vmem:[#allocation2 + $0x38] ss:$0 sps:$4 sm:$0x11]  }
 0x376   : > { %v2814_v56 = vrot.slane %v6553_v33, 1  ;;  %v2818_v4 = vsel %vm685_vm1, %v2816_v42, %v2817_v26  ;;  %v2828_v33 = vrot.slane %v7918_v0, 1 }
 0x378   : > { %3707 = vmatmul.mubr.bf16.gmra.mrb[56].mxu1 %v3412_v1  ;;  %v4372_v1 = vsel %vm460_vm0, %v4367_v3, %v4371_v52  ;;  %v2820_v52 = vrot.slane %v6556_v6, 1  ;;  %v2838_v6 = vrot.slane %v7924_v41, 1 }
 0x379   : > { %5863 = vmatprep.mubr.msk.bf16.mxu1 %vm734_vm2, %v3368_v22  ;;  %4403 = vrot.lane.b32.xlu1 %v4372_v1, %s6678_s14  ;;  %v2774_v22 = vpop.permute.xlu0 %2773  ;;  %s6679_s14 = smov [#allocation3]  }
 0x37a   : > { %v3320_v2 = vpop.permute.xlu1 %3319  ;;  %v2856_v27 = vsel %vm734_vm2, %v6550_v43, %v2774_v22  ;;  %v2822_v22 = vrot.slane %v7885_v14, 1  ;;  %s6617_s29 = sshll.u32 %s6679_s14, 4  ;;  %s6618_s29 = int_to_ptr.vmem [resolvable:$false] %s6617_s29 }
 0x37b   : > { %v3415_v9 = vsel %vm734_vm2, %v7854_v11, %v3320_v2  ;;  %v6507_v11 = vld [vmem:[%s8768_s4 + $0xc8] sm:$0xff]   ;;  %v2810_v2 = vrot.slane %v7851_v61, 1  ;;  %s6619_s8 = scalar_lea.vmem %s6618_s29, 8192  ;;  %p6620_p0 = scmp.lt.s32.totalorder %s8715_s18, %s6618_s29 }
 0x37c   : > { %v6511_v61 = vld [vmem:[%s8768_s4 + $0xe8] sm:$0xff]   ;;  %p6621_p1 = scmp.lt.s32.totalorder %s6619_s8, %s6613_s23 }
 0x37d   : > { %v2812_v29 = vsel %vm685_vm1, %v2810_v2, %v2811_v37  ;;  %v2778_v5 = vpop.permute.xlu0 %2777  ;;  %v2823_v2 = vrot.slane %v7910_v47, 1 }
 0x37e   : > { %v2772_v36 = vpop.permute.xlu1 %2771  ;;  %p6622_p2 = por %p6621_p1, %p6620_p0 }
 0x37f   : > { %v2853_v44 = vsel %vm734_vm2, %v6551_v10, %v2772_v36  ;;  %v6514_v36 = vld [vmem:[%s8768_s4 + $0x100] sm:$0xff]   ;;  %v6516_v10 = vld [vmem:[%s8768_s4 + $0x110] sm:$0xff]  }
 0x380   : > { %3715 = vmatmul.mubr.bf16.gmra.mrb[60].mxu1 %v3415_v9  ;;  %v6552_v9 = vld [vmem:[#allocation2 + $0x30] sm:$0xff]   ;;  %p6623_p3 = pnand %p6622_p2, %p6616_p13 }
 0x381   : > { %5876 = vmatprep.mubr.msk.bf16.mxu1 %vm734_vm2, %v2803_v62  ;;  %v2813_v62 = vrot.slane %v6552_v9, 1  ;;  %v2862_v43 = vsel %vm734_vm2, %v6552_v9, %v2778_v5  ;;  %v2782_v1 = vpop.permute.xlu0 %2781  ;;  %v6562_v5 = vld [vmem:[#allocation2 + $0x80] ss:$0 sps:$4 sm:$0x11]  }
 0x382   : > { %v2776_v12 = vpop.permute.xlu1 %2775  ;;  %v2868_v37 = vsel %vm734_vm2, %v6555_v32, %v2782_v1  ;;  %v2832_v42 = vrot.slane %v6562_v5, 1  ;;  %v2844_v1 = vrot.slane %v7957_v55, 1 }
 0x385   : > { %v2786_v47 = vpop.permute.xlu0 %2785 }
 0x386   : > { %v2780_v20 = vpop.permute.xlu1 %2779 }
 0x388   : > { %3876 = vmatmul.mubr.bf16.vlgmr.msra.gmra.mrb[0].mxu1 %v2850_v13  ;;  %v6554_v13 = vld [vmem:[#allocation2 + $0x24] sm:$0xff]  }
 0x389   : > { %4647 = vmatpush1.bf16.msra.mxu1 %v6506_v35  ;;  %5877 = vmatprep.mubr.msk.bf16.mxu1 %vm734_vm2, %v2806_v39  ;;  %v2859_v35 = vsel %vm734_vm2, %v6554_v13, %v2776_v12  ;;  %v2815_v39 = vsel %vm685_vm1, %v2813_v62, %v2814_v56  ;;  %v6559_v12 = vld [vmem:[#allocation2 + $0x68] ss:$0 sps:$4 sm:$0x11]   ;;  %v6560_v62 = vld [vmem:[#allocation2 + $0x54] sm:$0xff]   ;;  %v2829_v56 = vrot.slane %v7932_v17, 1  ;;  %v2790_v17 = vpop.permute.xlu0 %2789 }
 0x38a   : > { %4648 = vmatprep.subr.bf16.mxu1 %v8821_v58  ;;  %v2826_v9 = vrot.slane %v6559_v12, 1 }
 0x38b   : > { %v2830_v13 = vsel %vm685_vm1, %v2828_v33, %v2829_v56  ;;  %v8826_v33 = vld [vmem:[#allocation8_spill] sm:$0xff] }
 0x38c   : > { %v4412_v56 = vrot.slane %v8826_v33, 1 }
 0x38d   : > { %4649 = vmatpush1.bf16.msra.mxu1 %v6507_v11  ;;  %v6513_v11 = vld [vmem:[%s8768_s4 + $0xf8] sm:$0xff]  }
 0x38e   : > { %4650 = vmatprep.subr.bf16.mxu1 %v8821_v58 }
 0x390   : > { %3884 = vmatmul.mubr.bf16.gmra.mrb[4].mxu1 %v2853_v44  ;;  %v6557_v44 = vld [vmem:[#allocation2 + $0x3c] sm:$0xff]  }
 0x391   : > { %5878 = vmatprep.mubr.msk.bf16.mxu1 %vm734_vm2, %v2809_v18  ;;  %4651 = vmatpush1.bf16.msra.mxu1 %v6508_v25  ;;  %v2819_v25 = vrot.slane %v6555_v32, 1  ;;  %v2865_v3 = vsel %vm734_vm2, %v6557_v44, %v2780_v20  ;;  %v2840_v44 = vrot.slane %v7963_v24, 1 }
 0x392   : > { %4652 = vmatprep.subr.bf16.mxu1 %v8821_v58 }
 0x393   : > { %v2821_v18 = vsel %vm685_vm1, %v2819_v25, %v2820_v52  ;;  %v6563_v25 = vld [vmem:[#allocation2 + $0x90] sm:$0xff]  }
 0x395   : > { %4653 = vmatpush1.bf16.msra.mxu1 %v6509_v34  ;;  %v6517_v34 = vld [vmem:[%s8768_s4 + $0x118] sm:$0xff]  }
 0x396   : > { %4654 = vmatprep.subr.bf16.mxu1 %v8821_v58 }
 0x398   : > { %3892 = vmatmul.mubr.bf16.gmra.mrb[8].mxu1 %v2856_v27  ;;  %v2784_v27 = vpop.permute.xlu1 %2783 }
 0x399   : > { %5879 = vmatprep.mubr.msk.bf16.mxu1 %vm734_vm2, %v2812_v29  ;;  %4655 = vmatpush1.bf16.msra.mxu1 %v6510_v60  ;;  %v2824_v60 = vsel %vm685_vm1, %v2822_v22, %v2823_v2  ;;  %v6558_v29 = vld [vmem:[#allocation2 + $0x60] sm:$0xff]  }
 0x39a   : > { %4656 = vmatprep.subr.bf16.mxu1 %v8821_v58 }
 0x39d   : > { %4657 = vmatpush1.bf16.msra.mxu1 %v6511_v61  ;;  %v2825_v61 = vrot.slane %v6558_v29, 1 }
 0x39e   : > { %4658 = vmatprep.subr.bf16.mxu1 %v8821_v58 }
 0x39f   : > { %v2827_v14 = vsel %vm685_vm1, %v2825_v61, %v2826_v9  ;;  %v4406_v61 = vrot.slane %v7973_v59, 1 }
 0x3a0   : > { %3900 = vmatmul.mubr.bf16.gmra.mrb[12].mxu1 %v2859_v35  ;;  %v2788_v35 = vpop.permute.xlu1 %2787 }
 0x3a1   : > { %5880 = vmatprep.mubr.msk.bf16.mxu1 %vm734_vm2, %v2815_v39  ;;  %4659 = vmatpush1.bf16.msra.mxu1 %v6512_v38  ;;  %v2874_v38 = vsel %vm734_vm2, %v6558_v29, %v2786_v47  ;;  %v6561_v39 = vld [vmem:[#allocation2 + $0x78] sm:$0xff]   ;;  %v2877_v26 = vsel %vm734_vm2, %v7918_v0, %v2788_v35  ;;  %v2837_v0 = vrot.slane %v6563_v25, 1  ;;  %v8827_v35 = vld [vmem:[#allocation11_spill] sm:$0xff] }
 0x3a2   : > { %4660 = vmatprep.subr.bf16.mxu1 %v8821_v58 }
 0x3a4   : > { %v2792_v32 = vpop.permute.xlu1 %2791 }
 0x3a5   : > { %4661 = vmatpush1.bf16.msra.mxu1 %v6513_v11  ;;  %v2831_v11 = vrot.slane %v6561_v39, 1  ;;  %v2883_v52 = vsel %vm734_vm2, %v7947_v50, %v2792_v32 }
 0x3a6   : > { %4662 = vmatprep.subr.bf16.mxu1 %v8821_v58 }
 0x3a8   : > { %3908 = vmatmul.mubr.bf16.gmra.mrb[16].mxu1 %v2862_v43  ;;  %v2834_v43 = vrot.slane %v7947_v50, 1  ;;  %v2796_v41 = vpop.permute.xlu1 %2795  ;;  %v2843_v50 = vrot.slane %v7934_v48, 1 }
 0x3a9   : > { %5881 = vmatprep.mubr.msk.bf16.mxu1 %vm734_vm2, %v2818_v4  ;;  %4663 = vmatpush1.bf16.msra.mxu1 %v6514_v36  ;;  %v2833_v36 = vsel %vm685_vm1, %v2831_v11, %v2832_v42  ;;  %v2835_v4 = vrot.slane %v7979_v49, 1  ;;  %v2794_v49 = vpop.permute.xlu0 %2793  ;;  %v2889_v22 = vsel %vm734_vm2, %v7963_v24, %v2796_v41  ;;  %v4405_v24 = vrot.slane %v7939_v63, 1  ;;  %v8828_v11 = vld [vmem:[#allocation15_spill] sm:$0xff] }
 0x3aa   : > { %4664 = vmatprep.subr.bf16.mxu1 %v8821_v58  ;;  %v2845_v2 = vsel %vm685_vm1, %v2843_v50, %v2844_v1  ;;  %v4415_v5 = vrot.slane %v8828_v11, 1 }
 0x3ab   : > { %v2836_v20 = vsel %vm685_vm1, %v2834_v43, %v2835_v4  ;;  %v4407_v9 = vsel %vm685_vm1, %v4405_v24, %v4406_v61  ;;  %v8830_v43 = vld [vmem:[#allocation9_spill] sm:$0xff]  ;;  %v8837_v61 = vld [vmem:[#allocation18_spill] sm:$0xff] }
 0x3ac   : > { %v2800_v55 = vpop.permute.xlu1 %2799  ;;  %v4418_v4 = vrot.slane %v8830_v43, 1 }
 0x3ad   : > { %4665 = vmatpush1.bf16.msra.mxu1 %v6515_v15  ;;  %v2880_v15 = vsel %vm734_vm2, %v6561_v39, %v2790_v17  ;;  %v2895_v12 = vsel %vm734_vm2, %v7995_v8, %v2800_v55  ;;  %v4414_v39 = vrot.slane %v8827_v35, 1  ;;  %v8836_v55 = vld [vmem:[#allocation12_spill] sm:$0xff] }
 0x3ae   : > { %4666 = vmatprep.subr.bf16.mxu1 %v8821_v58  ;;  %v4429_v24 = vrot.slane %v8836_v55, 1 }
 0x3b0   : > { %3916 = vmatmul.mubr.bf16.gmra.mrb[20].mxu1 %v2865_v3  ;;  %v2841_v3 = vrot.slane %v7987_v23, 1  ;;  %v2798_v23 = vpop.permute.xlu0 %2797  ;;  %v4376_v59 = vpop.permute.xlu1 %4375 }
 0x3b1   : > { %5882 = vmatprep.mubr.msk.bf16.mxu1 %vm734_vm2, %v2821_v18  ;;  %4667 = vmatpush1.bf16.msra.mxu1 %v6516_v10  ;;  %v2839_v10 = vsel %vm685_vm1, %v2837_v0, %v2838_v6  ;;  %v2886_v18 = vsel %vm734_vm2, %v6563_v25, %v2794_v49  ;;  %v8831_v25 = vld [vmem:[#allocation13_spill] sm:$0xff]  ;;  %v8832_v6 = vld [vmem:[#allocation19_spill] sm:$0xff] }
 0x3b2   : > { %4668 = vmatprep.subr.bf16.mxu1 %v8821_v58  ;;  %v2871_v58 = vsel %vm734_vm2, %v6560_v62, %v2784_v27  ;;  %v2892_v27 = vsel %vm734_vm2, %v7934_v48, %v2798_v23  ;;  %v4408_v48 = vrot.slane %v8009_v51, 1  ;;  %v4409_v62 = vrot.slane %v8050_v53, 1 }
 0x3b3   : > { %v4420_v0 = vrot.slane %v8831_v25, 1 }
 0x3b4   : > { %v4410_v63 = vsel %vm685_vm1, %v4408_v48, %v4409_v62  ;;  %v4432_v48 = vrot.slane %v8115_v40, 1  ;;  %v4433_v62 = vrot.slane %v8141_v30, 1 }
 0x3b5   : > { %4669 = vmatpush1.bf16.msra.mxu1 %v6517_v34  ;;  %v2842_v34 = vsel %vm685_vm1, %v2840_v44, %v2841_v3  ;;  %v8833_v3 = vld [vmem:[#allocation10_spill] sm:$0xff] }
 0x3b8   : > { %3924 = vmatmul.mubr.bf16.gmra.mrb[24].mxu1 %v2868_v37  ;;  %v2846_v37 = vrot.slane %v7995_v8, 1  ;;  %v8825_v8 = vld [vmem:[#allocation6_spill] sm:$0xff] }
 0x3b9   : > { %5883 = vmatprep.mubr.msk.bf16.mxu1 %vm734_vm2, %v2824_v60  ;;  %v2847_v60 = vrot.slane %v8028_v7, 1  ;;  %v4374_v7 = vpop.permute.xlu0 %4373  ;;  %v4411_v47 = vrot.slane %v8825_v8, 1 }
 0x3bb   : > { %v2848_v29 = vsel %vm685_vm1, %v2846_v37, %v2847_v60  ;;  %v4427_v37 = vrot.slane %v8128_v45, 1 }
 0x3bd   : > { %v4378_v53 = vpop.permute.xlu0 %4377 }
 0x3be   : > { %v4460_v42 = vsel %vm734_vm2, %v8825_v8, %v4378_v53  ;;  %v4439_v53 = vrot.slane %v8170_v19, 1 }
 0x3c0   : > { %3932 = vmatmul.mubr.bf16.gmra.mrb[28].mxu1 %v2871_v58  ;;  %v6564_v58 = vld [vmem:[#allocation2 + $0x18] sm:$0xff]  }
 0x3c1   : > { %5884 = vmatprep.mubr.msk.bf16.mxu1 %vm734_vm2, %v2827_v14  ;;  %v4454_v14 = vsel %vm734_vm2, %v6564_v58, %v4374_v7  ;;  %v4382_v32 = vpop.permute.xlu0 %4381 }
 0x3c8   : > { %3940 = vmatmul.mubr.bf16.gmra.mrb[32].mxu1 %v2874_v38  ;;  %v4457_v38 = vsel %vm734_vm2, %v8009_v51, %v4376_v59  ;;  %v8829_v51 = vld [vmem:[#allocation7_spill] sm:$0xff]  ;;  %v8838_v59 = vld [vmem:[#allocation16_spill] sm:$0xff] }
 0x3c9   : > { %5885 = vmatprep.mubr.msk.bf16.mxu1 %vm734_vm2, %v2830_v13  ;;  %v4413_v13 = vsel %vm685_vm1, %v4411_v47, %v4412_v56  ;;  %v4417_v17 = vrot.slane %v8829_v51, 1  ;;  %v4435_v8 = vrot.slane %v8838_v59, 1  ;;  %v8839_v47 = vld [vmem:[#allocation20_spill] sm:$0xff] }
 0x3ca   : > { %v4436_v33 = vrot.slane %v8839_v47, 1  ;;  %v6570_v47 = vld [vmem:[%s6784_s21 + $0x24] sm:$0xf] }
 0x3d0   : > { %3948 = vmatmul.mubr.bf16.gmra.mrb[36].mxu1 %v2877_v26  ;;  %v4416_v26 = vsel %vm685_vm1, %v4414_v39, %v4415_v5  ;;  %v8840_v5 = vld [vmem:[#allocation21_spill] sm:$0xff] }
 0x3d1   : > { %5886 = vmatprep.mubr.msk.bf16.mxu1 %vm734_vm2, %v2833_v36  ;;  %v4380_v36 = vpop.permute.xlu1 %4379 }
 0x3d5   : > { %v4384_v44 = vpop.permute.xlu1 %4383 }
 0x3d6   : > { %v4469_v50 = vsel %vm734_vm2, %v8831_v25, %v4384_v44  ;;  %v6565_v44 = vld [vmem:[%s6784_s21 + $0xc] sm:$0xf] }
 0x3d8   : > { %3956 = vmatmul.mubr.bf16.gmra.mrb[40].mxu1 %v2880_v15  ;;  %v4463_v15 = vsel %vm734_vm2, %v8827_v35, %v4380_v36 }
 0x3d9   : > { %5887 = vmatprep.mubr.msk.bf16.mxu1 %vm734_vm2, %v2836_v20  ;;  %v4419_v20 = vsel %vm685_vm1, %v4417_v17, %v4418_v4  ;;  %v4445_v17 = vrot.slane %v8183_v46, 1 }
 0x3e0   : > { %3964 = vmatmul.mubr.bf16.gmra.mrb[44].mxu1 %v2883_v52  ;;  %v4421_v52 = vrot.slane %v8832_v6, 1 }
 0x3e1   : > { %5888 = vmatprep.mubr.msk.bf16.mxu1 %vm734_vm2, %v2839_v10  ;;  %v4466_v10 = vsel %vm734_vm2, %v8829_v51, %v4382_v32  ;;  %v4444_v51 = vrot.slane %v8158_v57, 1 }
 0x3e2   : > { %v4422_v49 = vsel %vm685_vm1, %v4420_v0, %v4421_v52  ;;  %v4451_v0 = vrot.slane %v8244_v16, 1  ;;  %v6566_v16 = vld [vmem:[%s6784_s21 + $0x10] sm:$0xf] }
 0x3e3   : > { %v4446_v4 = vsel %vm685_vm1, %v4444_v51, %v4445_v17 }
 0x3e8   : > { %3972 = vmatmul.mubr.bf16.gmra.mrb[48].mxu1 %v2886_v18  ;;  %v4423_v18 = vrot.slane %v8833_v3, 1 }
 0x3e9   : > { %5889 = vmatprep.mubr.msk.bf16.mxu1 %vm734_vm2, %v2842_v34  ;;  %v8834_v34 = vld [vmem:[#allocation14_spill] sm:$0xff] }
 0x3ea   : > { %v4424_v41 = vrot.slane %v8834_v34, 1  ;;  %v4930_v34 = vshll.u32 %v6566_v16, 16 }
 0x3ec   : > { %v4425_v1 = vsel %vm685_vm1, %v4423_v18, %v4424_v41  ;;  %v4924_v18 = vshll.u32 %v6565_v44, 16  ;;  %v4934_v41 = vshrl.u32 %v6566_v16, 16 }
 0x3f0   : > { %3980 = vmatmul.mubr.bf16.gmra.mrb[52].mxu1 %v2889_v22  ;;  %v4386_v22 = vpop.permute.xlu0 %4385 }
 0x3f1   : > { %5890 = vmatprep.mubr.msk.bf16.mxu1 %vm734_vm2, %v2845_v2  ;;  %v8835_v2 = vld [vmem:[#allocation17_spill] sm:$0xff]  ;;  %v4472_v60 = vsel %vm734_vm2, %v8833_v3, %v4386_v22  ;;  %v4921_v3 = vshrl.u32 %v6565_v44, 16  ;;  %v4936_v22 = vrot.slane %v4934_v41, 4 }
 0x3f2   : > { %v4426_v23 = vrot.slane %v8835_v2, 1 }
 0x3f4   : > { %v4390_v45 = vpop.permute.xlu0 %4389 }
 0x3f5   : > { %v4478_v58 = vsel %vm734_vm2, %v8836_v55, %v4390_v45  ;;  %v6569_v55 = vld [vmem:[%s6784_s21 + $0x1c] sm:$0xf] }
 0x3f8   : > { %3988 = vmatmul.mubr.bf16.gmra.mrb[56].mxu1 %v2892_v27  ;;  %v4428_v27 = vsel %vm685_vm1, %v4426_v23, %v4427_v37  ;;  %v4394_v30 = vpop.permute.xlu0 %4393  ;;  %v6567_v23 = vld [vmem:[%s6784_s21 + $0x18] sm:$0xf] }
 0x3f9   : > { %5891 = vmatprep.mubr.msk.bf16.mxu1 %vm734_vm2, %v2848_v29  ;;  %v4388_v29 = vpop.permute.xlu1 %4387  ;;  %v4484_v35 = vsel %vm734_vm2, %v8838_v59, %v4394_v30  ;;  %v4945_v37 = vshrl.u32 %v6567_v23, 16 }
 0x3fc   : > { %v4398_v19 = vpop.permute.xlu0 %4397 }
 0x3fd   : > { %v4490_v43 = vsel %vm734_vm2, %v8108_v21, %v4398_v19 }
 0x400   : > { %3996 = vmatmul.mubr.bf16.gmra.mrb[60].mxu1 %v2895_v12  ;;  %v4430_v12 = vrot.slane %v8837_v61, 1  ;;  %v4402_v6 = vpop.permute.xlu0 %4401  ;;  %v4958_v61 = vshrl.u32 %v6569_v55, 16 }
 0x401   : > { %5960 = vmatprep.mubr.msk.bf16.mxu1 %vm734_vm2, %v4407_v9  ;;  %v4475_v9 = vsel %vm734_vm2, %v8835_v2, %v4388_v29 }
 0x402   : > { %v4431_v7 = vsel %vm685_vm1, %v4429_v24, %v4430_v12  ;;  %v4954_v24 = vshll.u32 %v6569_v55, 16 }
 0x408   : > { %4679 = vmatmul.mubr.bf16.vlgmr.msra.gmra.mrb[0].mxu1 %v4454_v14  ;;  %v4434_v14 = vsel %vm685_vm1, %v4432_v48, %v4433_v62 }
 0x409   : > { %5961 = vmatprep.mubr.msk.bf16.mxu1 %vm734_vm2, %v4410_v63  ;;  %v4392_v63 = vpop.permute.xlu1 %4391 }
 0x40a   : > { %v4481_v56 = vsel %vm734_vm2, %v8115_v40, %v4392_v63  ;;  %v4441_v40 = vrot.slane %v8108_v21, 1  ;;  %v4450_v21 = vrot.slane %v8242_v54, 1  ;;  %v8465_v63 = vld [vmem:[%s8769_s5] ss:$0 sm:$0xff] }
 0x40c   : > { %v4452_v52 = vsel %vm685_vm1, %v4450_v21, %v4451_v0 }
 0x40d   : > { %v4396_v11 = vpop.permute.xlu1 %4395 }
 0x410   : > { %4687 = vmatmul.mubr.bf16.gmra.mrb[4].mxu1 %v4457_v38  ;;  %v4437_v38 = vsel %vm685_vm1, %v4435_v8, %v4436_v33  ;;  %v4969_v33 = vshrl.u32 %v6570_v47, 16 }
 0x411   : > { %5962 = vmatprep.mubr.msk.bf16.mxu1 %vm734_vm2, %v4413_v13  ;;  %v4438_v13 = vrot.slane %v8144_v31, 1 }
 0x412   : > { %v4971_v17 = vrot.slane %v4969_v33, 4 }
 0x413   : > { %v4440_v39 = vsel %vm685_vm1, %v4438_v13, %v4439_v53  ;;  %v8475_v53 = vld [vmem:[%s8770_s6] ss:$0 sm:$0xff] }
 0x418   : > { %4695 = vmatmul.mubr.bf16.gmra.mrb[8].mxu1 %v4460_v42  ;;  %v4442_v42 = vrot.slane %v8840_v5, 1 }
 0x419   : > { %5963 = vmatprep.mubr.msk.bf16.mxu1 %vm734_vm2, %v4416_v26  ;;  %v4487_v26 = vsel %vm734_vm2, %v8144_v31, %v4396_v11  ;;  %v4447_v31 = vrot.slane %v8130_v28, 1  ;;  %v6572_v11 = vld [vmem:[%s6784_s21 + $0x28] sm:$0xf] }
 0x41a   : > { %v4443_v36 = vsel %vm685_vm1, %v4441_v40, %v4442_v42  ;;  %v4978_v40 = vshll.u32 %v6572_v11, 16  ;;  %v4982_v5 = vshrl.u32 %v6572_v11, 16 }
 0x41c   : > { %v4984_v21 = vrot.slane %v4982_v5, 4 }
 0x420   : > { %4703 = vmatmul.mubr.bf16.gmra.mrb[12].mxu1 %v4463_v15  ;;  %v4400_v15 = vpop.permute.xlu1 %4399 }
 0x421   : > { %5964 = vmatprep.mubr.msk.bf16.mxu1 %vm734_vm2, %v4419_v20  ;;  %v8841_v20 = vld [vmem:[#allocation22_spill] sm:$0xff]  ;;  %v4493_v25 = vsel %vm734_vm2, %v8158_v57, %v4400_v15 }
 0x422   : > { %v4448_v32 = vrot.slane %v8841_v20, 1 }
 0x424   : > { %v4449_v46 = vsel %vm685_vm1, %v4447_v31, %v4448_v32  ;;  %v4404_v57 = vpop.permute.xlu1 %4403 }
 0x428   : > { %4711 = vmatmul.mubr.bf16.gmra.mrb[16].mxu1 %v4466_v10  ;;  %v4496_v10 = vsel %vm734_vm2, %v8130_v28, %v4402_v6  ;;  %v4932_v28 = vrot.slane %v4930_v34, 5 }
 0x429   : > { %5965 = vmatprep.mubr.msk.bf16.mxu1 %vm734_vm2, %v4422_v49  ;;  %v4499_v49 = vsel %vm734_vm2, %v8242_v54, %v4404_v57  ;;  %v6573_v57 = vld [vmem:[%s6784_s21 + $0x30] sm:$0xf] }
 0x42a   : > { %v4937_v54 = vor.u32 %v4936_v22, %v4932_v28  ;;  %v4996_v44 = vshll.u32 %v6573_v57, 16 }
 0x42c   : > { %v4938_v62 = vrot.slane %v4937_v54, 4 }
 0x430   : > { %4719 = vmatmul.mubr.bf16.gmra.mrb[20].mxu1 %v4469_v50  ;;  %v4923_v50 = vrot.slane %v4921_v3, 4  ;;  %v6574_v3 = vld [vmem:[%s6784_s21 + $0x2c] sm:$0x1] }
 0x431   : > { %5966 = vmatprep.mubr.msk.bf16.mxu1 %vm734_vm2, %v4425_v1  ;;  %v4926_v1 = vrot.slane %v4924_v18, 5  ;;  %v4988_v18 = vshll.u32 %v6574_v3, 16 }
 0x433   : > { %v4927_v2 = vor.u32 %v4926_v1, %v4923_v50 }
 0x435   : > { %v4928_v12 = vrot.slane %v4927_v2, 4 }
 0x437   : > { %v4933_v59 = vsel %vm8458_vm13, %v4928_v12, %v4932_v28  ;;  %v6575_v28 = vld [vmem:[%s6784_s21 + $0x34] sm:$0xf] }
 0x438   : > { %4727 = vmatmul.mubr.bf16.gmra.mrb[24].mxu1 %v4472_v60  ;;  %v4948_v60 = vshll.u32 %v6567_v23, 16  ;;  %v5002_v22 = vshll.u32 %v6575_v28, 16  ;;  %v5006_v2 = vshrl.u32 %v6575_v28, 16 }
 0x439   : > { %5967 = vmatprep.mubr.msk.bf16.mxu1 %vm734_vm2, %v4428_v27  ;;  %v6568_v27 = vld [vmem:[%s6784_s21 + $0x14] sm:$0x1] }
 0x43a   : > { %v4940_v29 = vshll.u32 %v6568_v27, 16 }
 0x43c   : > { %v4942_v48 = vrot.slane %v4940_v29, 5 }
 0x440   : > { %4735 = vmatmul.mubr.bf16.gmra.mrb[28].mxu1 %v4475_v9  ;;  %v4947_v9 = vrot.slane %v4945_v37, 4 }
 0x441   : > { %5968 = vmatprep.mubr.msk.bf16.mxu1 %vm734_vm2, %v4431_v7  ;;  %v4950_v7 = vrot.slane %v4948_v60, 5 }
 0x443   : > { %v4951_v8 = vor.u32 %v4950_v7, %v4947_v9 }
 0x445   : > { %v4952_v51 = vrot.slane %v4951_v8, 4 }
 0x448   : > { %4743 = vmatmul.mubr.bf16.gmra.mrb[32].mxu1 %v4478_v58  ;;  %v4956_v58 = vrot.slane %v4954_v24, 5  ;;  %v4998_v24 = vrot.slane %v4996_v44, 5 }
 0x449   : > { %5969 = vmatprep.mubr.msk.bf16.mxu1 %vm734_vm2, %v4434_v14  ;;  %v4960_v14 = vrot.slane %v4958_v61, 4 }
 0x450   : > { %4751 = vmatmul.mubr.bf16.gmra.mrb[36].mxu1 %v4481_v56  ;;  %v4972_v56 = vshll.u32 %v6570_v47, 16 }
 0x451   : > { %5970 = vmatprep.mubr.msk.bf16.mxu1 %vm734_vm2, %v4437_v38  ;;  %v6571_v38 = vld [vmem:[%s6784_s21 + $0x20] sm:$0x1] }
 0x452   : > { %v4964_v30 = vshll.u32 %v6571_v38, 16 }
 0x458   : > { %4759 = vmatmul.mubr.bf16.gmra.mrb[40].mxu1 %v4484_v35  ;;  %v4943_v35 = vsel %vm8458_vm13, %v4938_v62, %v4942_v48  ;;  %v4990_v48 = vrot.slane %v4988_v18, 5 }
 0x459   : > { %5971 = vmatprep.mubr.msk.bf16.mxu1 %vm734_vm2, %v4440_v39  ;;  %v4961_v39 = vor.u32 %v4960_v14, %v4956_v58  ;;  %v5337_v31 = vunpack.c.l.bf16 %v4943_v35  ;;  %v5008_v14 = vrot.slane %v5006_v2, 4 }
 0x45b   : > { %v4962_v32 = vrot.slane %v4961_v39, 4 }
 0x460   : > { %4767 = vmatmul.mubr.bf16.gmra.mrb[44].mxu1 %v4487_v26  ;;  %v5336_v26 = vunpack.c.l.bf16 %v4933_v59 }
 0x461   : > { %5972 = vmatprep.mubr.msk.bf16.mxu1 %vm734_vm2, %v4443_v36 }
 0x468   : > { %4775 = vmatmul.mubr.bf16.gmra.mrb[48].mxu1 %v4490_v43  ;;  %v4974_v43 = vrot.slane %v4972_v56, 5  ;;  %v6576_v56 = vld [vmem:[%s6784_s21 + $0x3c] sm:$0xf] }
 0x469   : > { %5973 = vmatprep.mubr.msk.bf16.mxu1 %vm734_vm2, %v4446_v4  ;;  %v5017_v38 = vshrl.u32 %v6576_v56, 16 }
 0x470   : > { %4783 = vmatmul.mubr.bf16.gmra.mrb[52].mxu1 %v4493_v25  ;;  %v4966_v25 = vrot.slane %v4964_v30, 5  ;;  %v5020_v30 = vshll.u32 %v6576_v56, 16 }
 0x471   : > { %5974 = vmatprep.mubr.msk.bf16.mxu1 %vm734_vm2, %v4449_v46  ;;  %v4980_v46 = vrot.slane %v4978_v40, 5 }
 0x472   : > { %v4967_v50 = vsel %vm8458_vm13, %v4962_v32, %v4966_v25  ;;  %v5022_v32 = vrot.slane %v5020_v30, 5 }
 0x473   : > { %v4985_v1 = vor.u32 %v4984_v21, %v4980_v46  ;;  %v5339_v9 = vunpack.c.l.bf16 %v4967_v50  ;;  %v6580_v50 = vld [vmem:[%s6784_s21 + $0x44] sm:$0x1] }
 0x475   : > { %v4986_v62 = vrot.slane %v4985_v1, 4  ;;  %v5036_v1 = vshll.u32 %v6580_v50, 16 }
 0x477   : > { %v4991_v5 = vsel %vm8458_vm13, %v4986_v62, %v4990_v48 }
 0x478   : > { %4791 = vmatmul.mubr.bf16.gmra.mrb[56].mxu1 %v4496_v10  ;;  %v4975_v10 = vor.u32 %v4974_v43, %v4971_v17  ;;  %v5341_v21 = vunpack.c.l.bf16 %v4991_v5  ;;  %v6583_v5 = vld [vmem:[%s6784_s21 + $0x50] sm:$0x1] }
 0x479   : > { %5975 = vmatprep.mubr.msk.bf16.mxu1 %vm734_vm2, %v4452_v52  ;;  %v4957_v52 = vsel %vm8458_vm13, %v4952_v51, %v4956_v58  ;;  %v5004_v58 = vrot.slane %v5002_v22, 5 }
 0x47a   : > { %v5338_v60 = vunpack.c.l.bf16 %v4957_v52  ;;  %v4976_v54 = vrot.slane %v4975_v10, 4 }
 0x47c   : > { %v4981_v47 = vsel %vm8458_vm13, %v4976_v54, %v4980_v46 }
 0x47d   : > { %v5340_v43 = vunpack.c.l.bf16 %v4981_v47  ;;  %v5038_v47 = vrot.slane %v5036_v1, 5 }
 0x480   : > { %4799 = vmatmul.mubr.bf16.gmra.mrb[60].mxu1 %v4499_v49  ;;  %v4993_v49 = vshrl.u32 %v6573_v57, 16 }
 0x482   : > { %v4995_v55 = vrot.slane %v4993_v49, 4 }
 0x484   : > { %v4999_v33 = vor.u32 %v4998_v24, %v4995_v55 }
 0x4db   : > { %v4680_v13 = vpop.f32.mrb[0].mxu1 }
 0x4dc   : > { %v4846_v42 = vmul.f32 %v8465_v63, %v4680_v13  ;;  %v4682_v36 = vpop.f32.mrb[1].mxu1  ;;  %v6577_v13 = vld [vmem:[%s6784_s21 + $0x38] sm:$0x1] }
 0x4dd   : > { %v4683_v19 = vpop.f32.mrb[2].mxu1  ;;  %v5012_v35 = vshll.u32 %v6577_v13, 16 }
 0x4de   : > { %v4885_v4 = vadd.f32 %v8475_v53, %v4846_v42  ;;  %v4847_v15 = vmul.f32 %v8465_v63, %v4683_v19  ;;  %v4685_v20 = vpop.f32.mrb[3].mxu1  ;;  %v5009_v42 = vor.u32 %v5008_v14, %v5004_v58 }
 0x4df   : > { %v5019_v20 = vrot.slane %v5017_v38, 4  ;;  %v5014_v52 = vrot.slane %v5012_v35, 5 }
 0x4e0   : > { %v5368_v0 = vadd.f32 %v5336_v26, %v4885_v4  ;;  %v4886_v6 = vadd.f32 %v8475_v53, %v4847_v15  ;;  %v6578_v26 = vld [vmem:[%s6784_s21 + $0x40] sm:$0xf] }
 0x4e1   : > { %v5026_v36 = vshll.u32 %v6578_v26, 16  ;;  %v5030_v19 = vshrl.u32 %v6578_v26, 16  ;;  %v5023_v18 = vor.u32 %v5022_v32, %v5019_v20 }
 0x4e2   : > { %v5400_v16 = vmax.f32 %v5368_v0, 0.0  ;;  %v5369_v34 = vadd.f32 %v5337_v31, %v4886_v6  ;;  %v5000_v31 = vrot.slane %v4999_v33, 4  ;;  %v5010_v6 = vrot.slane %v5009_v42, 4 }
 0x4e3   : > { %v4688_v41 = vpop.f32.mrb[4].mxu1  ;;  %v5028_v10 = vrot.slane %v5026_v36, 5  ;;  %v5032_v57 = vrot.slane %v5030_v19, 4  ;;  %v5060_v42 = vshll.u32 %v6583_v5, 16 }
 0x4e4   : > { %5432 = vst.msk [vmem:[%s8493_s17] sm:$0xff] %vm734_vm2, %v5400_v16  ;;  %v5401_v23 = vmax.f32 %v5369_v34, 0.0  ;;  %v4848_v37 = vmul.f32 %v8465_v63, %v4688_v41  ;;  %v4690_v27 = vpop.f32.mrb[5].mxu1  ;;  %v5005_v3 = vsel %vm8458_vm13, %v5000_v31, %v5004_v58  ;;  %v6579_v16 = vld [vmem:[%s6784_s21 + $0x48] sm:$0xf] }
 0x4e5   : > { %v4691_v29 = vpop.f32.mrb[6].mxu1  ;;  %v5041_v34 = vshrl.u32 %v6579_v16, 16  ;;  %v5044_v41 = vshll.u32 %v6579_v16, 16  ;;  %v5342_v24 = vunpack.c.l.bf16 %v5005_v3  ;;  %v5062_v3 = vrot.slane %v5060_v42, 5 }
 0x4e6   : > { %5433 = vst.msk [vmem:[%s8493_s17 + $0x8] sm:$0xff] %vm734_vm2, %v5401_v23  ;;  %v4887_v61 = vadd.f32 %v8475_v53, %v4848_v37  ;;  %v4849_v12 = vmul.f32 %v8465_v63, %v4691_v29  ;;  %v4693_v7 = vpop.f32.mrb[7].mxu1  ;;  %v5015_v23 = vsel %vm8458_vm13, %v5010_v6, %v5014_v52  ;;  %v5033_v37 = vor.u32 %v5032_v57, %v5028_v10 }
 0x4e7   : > { %v5043_v7 = vrot.slane %v5041_v34, 4  ;;  %v5046_v48 = vrot.slane %v5044_v41, 5  ;;  %v5343_v14 = vunpack.c.l.bf16 %v5015_v23  ;;  %v6586_v23 = vld [vmem:[%s6784_s21 + $0x5c] sm:$0x1] }
 0x4e8   : > { %v5370_v59 = vadd.f32 %v5338_v60, %v4887_v61  ;;  %v4888_v8 = vadd.f32 %v8475_v53, %v4849_v12  ;;  %v6581_v60 = vld [vmem:[%s6784_s21 + $0x4c] sm:$0xf] }
 0x4e9   : > { %v5050_v27 = vshll.u32 %v6581_v60, 16  ;;  %v5054_v29 = vshrl.u32 %v6581_v60, 16  ;;  %v5047_v35 = vor.u32 %v5046_v48, %v5043_v7 }
 0x4ea   : > { %v5402_v39 = vmax.f32 %v5370_v59, 0.0  ;;  %v5371_v11 = vadd.f32 %v5339_v9, %v4888_v8  ;;  %v5024_v9 = vrot.slane %v5023_v18, 4  ;;  %v5034_v8 = vrot.slane %v5033_v37, 4 }
 0x4eb   : > { %v4696_v40 = vpop.f32.mrb[8].mxu1  ;;  %v5052_v33 = vrot.slane %v5050_v27, 5  ;;  %v5056_v56 = vrot.slane %v5054_v29, 4  ;;  %v5084_v37 = vshll.u32 %v6586_v23, 16 }
 0x4ec   : > { %5434 = vst.msk [vmem:[%s8493_s17 + $0x10] sm:$0xff] %vm734_vm2, %v5402_v39  ;;  %v5403_v51 = vmax.f32 %v5371_v11, 0.0  ;;  %v4850_v17 = vmul.f32 %v8465_v63, %v4696_v40  ;;  %v4698_v4 = vpop.f32.mrb[9].mxu1  ;;  %v5029_v13 = vsel %vm8458_vm13, %v5024_v9, %v5028_v10  ;;  %v6582_v39 = vld [vmem:[%s6784_s21 + $0x54] sm:$0xf] }
 0x4ed   : > { %v4699_v15 = vpop.f32.mrb[10].mxu1  ;;  %v5065_v11 = vshrl.u32 %v6582_v39, 16  ;;  %v5068_v40 = vshll.u32 %v6582_v39, 16  ;;  %v5344_v32 = vunpack.c.l.bf16 %v5029_v13  ;;  %v5086_v13 = vrot.slane %v5084_v37, 5 }
 0x4ee   : > { %5435 = vst.msk [vmem:[%s8493_s17 + $0x18] sm:$0xff] %vm734_vm2, %v5403_v51  ;;  %v4889_v25 = vadd.f32 %v8475_v53, %v4850_v17  ;;  %v4851_v46 = vmul.f32 %v8465_v63, %v4699_v15  ;;  %v4701_v0 = vpop.f32.mrb[11].mxu1  ;;  %v5039_v51 = vsel %vm8458_vm13, %v5034_v8, %v5038_v47  ;;  %v5057_v17 = vor.u32 %v5056_v56, %v5052_v33 }
 0x4ef   : > { %v5067_v0 = vrot.slane %v5065_v11, 4  ;;  %v5070_v6 = vrot.slane %v5068_v40, 5  ;;  %v5345_v57 = vunpack.c.l.bf16 %v5039_v51  ;;  %v6589_v51 = vld [vmem:[%s6784_s21 + $0x68] sm:$0x1] }
 0x4f0   : > { %v5372_v49 = vadd.f32 %v5340_v43, %v4889_v25  ;;  %v4890_v44 = vadd.f32 %v8475_v53, %v4851_v46  ;;  %v6584_v43 = vld [vmem:[%s6784_s21 + $0x58] sm:$0xf] }
 0x4f1   : > { %v5074_v4 = vshll.u32 %v6584_v43, 16  ;;  %v5078_v15 = vshrl.u32 %v6584_v43, 16  ;;  %v5071_v1 = vor.u32 %v5070_v6, %v5067_v0 }
 0x4f2   : > { %v5404_v28 = vmax.f32 %v5372_v49, 0.0  ;;  %v5373_v22 = vadd.f32 %v5341_v21, %v4890_v44  ;;  %v5048_v21 = vrot.slane %v5047_v35, 4  ;;  %v5058_v44 = vrot.slane %v5057_v17, 4 }
 0x4f3   : > { %v4704_v2 = vpop.f32.mrb[12].mxu1  ;;  %v5076_v18 = vrot.slane %v5074_v4, 5  ;;  %v5080_v16 = vrot.slane %v5078_v15, 4  ;;  %v5108_v17 = vshll.u32 %v6589_v51, 16 }
 0x4f4   : > { %5436 = vst.msk [vmem:[%s8493_s17 + $0x20] sm:$0xff] %vm734_vm2, %v5404_v28  ;;  %v5405_v54 = vmax.f32 %v5373_v22, 0.0  ;;  %v4852_v55 = vmul.f32 %v8465_v63, %v4704_v2  ;;  %v4706_v61 = vpop.f32.mrb[13].mxu1  ;;  %v5053_v50 = vsel %vm8458_vm13, %v5048_v21, %v5052_v33  ;;  %v6585_v28 = vld [vmem:[%s6784_s21 + $0x60] sm:$0xf] }
 0x4f5   : > { %v4707_v12 = vpop.f32.mrb[14].mxu1  ;;  %v5089_v22 = vshrl.u32 %v6585_v28, 16  ;;  %v5092_v2 = vshll.u32 %v6585_v28, 16  ;;  %v5346_v48 = vunpack.c.l.bf16 %v5053_v50  ;;  %v5110_v50 = vrot.slane %v5108_v17, 5 }
 0x4f6   : > { %5437 = vst.msk [vmem:[%s8493_s17 + $0x28] sm:$0xff] %vm734_vm2, %v5405_v54  ;;  %v4891_v62 = vadd.f32 %v8475_v53, %v4852_v55  ;;  %v4853_v58 = vmul.f32 %v8465_v63, %v4707_v12  ;;  %v4709_v59 = vpop.f32.mrb[15].mxu1  ;;  %v5063_v54 = vsel %vm8458_vm13, %v5058_v44, %v5062_v3  ;;  %v5081_v55 = vor.u32 %v5080_v16, %v5076_v18 }
 0x4f7   : > { %v5091_v59 = vrot.slane %v5089_v22, 4  ;;  %v5094_v8 = vrot.slane %v5092_v2, 5  ;;  %v5347_v56 = vunpack.c.l.bf16 %v5063_v54  ;;  %v6592_v54 = vld [vmem:[%s6784_s21 + $0x74] sm:$0x1] }
 0x4f8   : > { %v5374_v38 = vadd.f32 %v5342_v24, %v4891_v62  ;;  %v4892_v30 = vadd.f32 %v8475_v53, %v4853_v58  ;;  %v6587_v24 = vld [vmem:[%s6784_s21 + $0x64] sm:$0xf] }
 0x4f9   : > { %v5098_v61 = vshll.u32 %v6587_v24, 16  ;;  %v5102_v12 = vshrl.u32 %v6587_v24, 16  ;;  %v5095_v42 = vor.u32 %v5094_v8, %v5091_v59 }
 0x4fa   : > { %v5406_v26 = vmax.f32 %v5374_v38, 0.0  ;;  %v5375_v36 = vadd.f32 %v5343_v14, %v4892_v30  ;;  %v5072_v14 = vrot.slane %v5071_v1, 4  ;;  %v5082_v30 = vrot.slane %v5081_v55, 4 }
 0x4fb   : > { %v4712_v19 = vpop.f32.mrb[16].mxu1  ;;  %v5100_v35 = vrot.slane %v5098_v61, 5  ;;  %v5104_v39 = vrot.slane %v5102_v12, 4  ;;  %v5132_v55 = vshll.u32 %v6592_v54, 16 }
 0x4fc   : > { %5438 = vst.msk [vmem:[%s8493_s17 + $0x30] sm:$0xff] %vm734_vm2, %v5406_v26  ;;  %v5407_v31 = vmax.f32 %v5375_v36, 0.0  ;;  %v4854_v20 = vmul.f32 %v8465_v63, %v4712_v19  ;;  %v4714_v25 = vpop.f32.mrb[17].mxu1  ;;  %v5077_v5 = vsel %vm8458_vm13, %v5072_v14, %v5076_v18  ;;  %v6588_v26 = vld [vmem:[%s6784_s21 + $0x6c] sm:$0xf] }
 0x4fd   : > { %v4715_v46 = vpop.f32.mrb[18].mxu1  ;;  %v5113_v36 = vshrl.u32 %v6588_v26, 16  ;;  %v5116_v19 = vshll.u32 %v6588_v26, 16  ;;  %v5348_v6 = vunpack.c.l.bf16 %v5077_v5  ;;  %v5134_v5 = vrot.slane %v5132_v55, 5 }
 0x4fe   : > { %5439 = vst.msk [vmem:[%s8493_s17 + $0x38] sm:$0xff] %vm734_vm2, %v5407_v31  ;;  %v4893_v52 = vadd.f32 %v8475_v53, %v4854_v20  ;;  %v4855_v10 = vmul.f32 %v8465_v63, %v4715_v46  ;;  %v4717_v49 = vpop.f32.mrb[19].mxu1  ;;  %v5087_v31 = vsel %vm8458_vm13, %v5082_v30, %v5086_v13  ;;  %v5105_v20 = vor.u32 %v5104_v39, %v5100_v35 }
 0x4ff   : > { %v5115_v49 = vrot.slane %v5113_v36, 4  ;;  %v5118_v44 = vrot.slane %v5116_v19, 5  ;;  %v5349_v16 = vunpack.c.l.bf16 %v5087_v31  ;;  %v6595_v31 = vld [vmem:[%s6784_s21 + $0x80] sm:$0x1] }
 0x500   : > { %v5376_v34 = vadd.f32 %v5344_v32, %v4893_v52  ;;  %v4894_v41 = vadd.f32 %v8475_v53, %v4855_v10  ;;  %v6590_v32 = vld [vmem:[%s6784_s21 + $0x70] sm:$0xf] }
 0x501   : > { %v5122_v25 = vshll.u32 %v6590_v32, 16  ;;  %v5126_v46 = vshrl.u32 %v6590_v32, 16  ;;  %v5119_v37 = vor.u32 %v5118_v44, %v5115_v49 }
 0x502   : > { %v5408_v60 = vmax.f32 %v5376_v34, 0.0  ;;  %v5377_v27 = vadd.f32 %v5345_v57, %v4894_v41  ;;  %v5096_v57 = vrot.slane %v5095_v42, 4  ;;  %v5106_v41 = vrot.slane %v5105_v20, 4 }
 0x503   : > { %v4720_v29 = vpop.f32.mrb[20].mxu1  ;;  %v5124_v1 = vrot.slane %v5122_v25, 5  ;;  %v5128_v28 = vrot.slane %v5126_v46, 4  ;;  %v5156_v20 = vshll.u32 %v6595_v31, 16 }
 0x504   : > { %5440 = vst.msk [vmem:[%s8493_s17 + $0x40] sm:$0xff] %vm734_vm2, %v5408_v60  ;;  %v5409_v9 = vmax.f32 %v5377_v27, 0.0  ;;  %v4856_v7 = vmul.f32 %v8465_v63, %v4720_v29  ;;  %v4722_v62 = vpop.f32.mrb[21].mxu1  ;;  %v5101_v23 = vsel %vm8458_vm13, %v5096_v57, %v5100_v35  ;;  %v6591_v60 = vld [vmem:[%s6784_s21 + $0x78] sm:$0xf] }
 0x505   : > { %v4723_v58 = vpop.f32.mrb[22].mxu1  ;;  %v5137_v27 = vshrl.u32 %v6591_v60, 16  ;;  %v5140_v29 = vshll.u32 %v6591_v60, 16  ;;  %v5350_v8 = vunpack.c.l.bf16 %v5101_v23  ;;  %v5158_v23 = vrot.slane %v5156_v20, 5 }
 0x506   : > { %5441 = vst.msk [vmem:[%s8493_s17 + $0x48] sm:$0xff] %vm734_vm2, %v5409_v9  ;;  %v4895_v47 = vadd.f32 %v8475_v53, %v4856_v7  ;;  %v4857_v33 = vmul.f32 %v8465_v63, %v4723_v58  ;;  %v4725_v38 = vpop.f32.mrb[23].mxu1  ;;  %v5111_v9 = vsel %vm8458_vm13, %v5106_v41, %v5110_v50  ;;  %v5129_v7 = vor.u32 %v5128_v28, %v5124_v1 }
 0x507   : > { %v5139_v38 = vrot.slane %v5137_v27, 4  ;;  %v5142_v30 = vrot.slane %v5140_v29, 5  ;;  %v5351_v39 = vunpack.c.l.bf16 %v5111_v9  ;;  %v6598_v9 = vld [vmem:[%s6784_s21 + $0x8c] sm:$0x1] }
 0x508   : > { %v5378_v11 = vadd.f32 %v5346_v48, %v4895_v47  ;;  %v4896_v40 = vadd.f32 %v8475_v53, %v4857_v33  ;;  %v6593_v48 = vld [vmem:[%s6784_s21 + $0x7c] sm:$0xf] }
 0x509   : > { %v5146_v62 = vshll.u32 %v6593_v48, 16  ;;  %v5150_v58 = vshrl.u32 %v6593_v48, 16  ;;  %v5143_v17 = vor.u32 %v5142_v30, %v5139_v38 }
 0x50a   : > { %v5410_v43 = vmax.f32 %v5378_v11, 0.0  ;;  %v5379_v4 = vadd.f32 %v5347_v56, %v4896_v40  ;;  %v5120_v56 = vrot.slane %v5119_v37, 4  ;;  %v5130_v40 = vrot.slane %v5129_v7, 4 }
 0x50b   : > { %v4728_v15 = vpop.f32.mrb[24].mxu1  ;;  %v5148_v42 = vrot.slane %v5146_v62, 5  ;;  %v5152_v26 = vrot.slane %v5150_v58, 4  ;;  %v5180_v7 = vshll.u32 %v6598_v9, 16 }
 0x50c   : > { %5442 = vst.msk [vmem:[%s8493_s17 + $0x50] sm:$0xff] %vm734_vm2, %v5410_v43  ;;  %v5411_v21 = vmax.f32 %v5379_v4, 0.0  ;;  %v4858_v0 = vmul.f32 %v8465_v63, %v4728_v15  ;;  %v4730_v52 = vpop.f32.mrb[25].mxu1  ;;  %v5125_v51 = vsel %vm8458_vm13, %v5120_v56, %v5124_v1  ;;  %v6594_v43 = vld [vmem:[%s6784_s21 + $0x84] sm:$0xf] }
 0x50d   : > { %v4731_v10 = vpop.f32.mrb[26].mxu1  ;;  %v5161_v4 = vshrl.u32 %v6594_v43, 16  ;;  %v5164_v15 = vshll.u32 %v6594_v43, 16  ;;  %v5352_v44 = vunpack.c.l.bf16 %v5125_v51  ;;  %v5182_v51 = vrot.slane %v5180_v7, 5 }
 0x50e   : > { %5443 = vst.msk [vmem:[%s8493_s17 + $0x58] sm:$0xff] %vm734_vm2, %v5411_v21  ;;  %v4897_v3 = vadd.f32 %v8475_v53, %v4858_v0  ;;  %v4859_v18 = vmul.f32 %v8465_v63, %v4731_v10  ;;  %v4733_v34 = vpop.f32.mrb[27].mxu1  ;;  %v5135_v21 = vsel %vm8458_vm13, %v5130_v40, %v5134_v5  ;;  %v5153_v0 = vor.u32 %v5152_v26, %v5148_v42 }
 0x50f   : > { %v5163_v34 = vrot.slane %v5161_v4, 4  ;;  %v5166_v41 = vrot.slane %v5164_v15, 5  ;;  %v5353_v28 = vunpack.c.l.bf16 %v5135_v21  ;;  %v6601_v21 = vld [vmem:[%s6784_s21 + $0x98] sm:$0x1] }
 0x510   : > { %v5380_v22 = vadd.f32 %v5348_v6, %v4897_v3  ;;  %v4898_v2 = vadd.f32 %v8475_v53, %v4859_v18  ;;  %v6596_v6 = vld [vmem:[%s6784_s21 + $0x88] sm:$0xf] }
 0x511   : > { %v5170_v52 = vshll.u32 %v6596_v6, 16  ;;  %v5174_v10 = vshrl.u32 %v6596_v6, 16  ;;  %v5167_v55 = vor.u32 %v5166_v41, %v5163_v34 }
 0x512   : > { %v5412_v24 = vmax.f32 %v5380_v22, 0.0  ;;  %v5381_v61 = vadd.f32 %v5349_v16, %v4898_v2  ;;  %v5144_v16 = vrot.slane %v5143_v17, 4  ;;  %v5154_v2 = vrot.slane %v5153_v0, 4 }
 0x513   : > { %v4736_v12 = vpop.f32.mrb[28].mxu1  ;;  %v5172_v37 = vrot.slane %v5170_v52, 5  ;;  %v5176_v60 = vrot.slane %v5174_v10, 4  ;;  %v5204_v0 = vshll.u32 %v6601_v21, 16 }
 0x514   : > { %5444 = vst.msk [vmem:[%s8493_s17 + $0x60] sm:$0xff] %vm734_vm2, %v5412_v24  ;;  %v5413_v14 = vmax.f32 %v5381_v61, 0.0  ;;  %v4860_v59 = vmul.f32 %v8465_v63, %v4736_v12  ;;  %v4738_v47 = vpop.f32.mrb[29].mxu1  ;;  %v5149_v54 = vsel %vm8458_vm13, %v5144_v16, %v5148_v42  ;;  %v6597_v24 = vld [vmem:[%s6784_s21 + $0x90] sm:$0xf] }
 0x515   : > { %v4739_v33 = vpop.f32.mrb[30].mxu1  ;;  %v5185_v61 = vshrl.u32 %v6597_v24, 16  ;;  %v5188_v12 = vshll.u32 %v6597_v24, 16  ;;  %v5354_v30 = vunpack.c.l.bf16 %v5149_v54  ;;  %v5206_v54 = vrot.slane %v5204_v0, 5 }
 0x516   : > { %5445 = vst.msk [vmem:[%s8493_s17 + $0x68] sm:$0xff] %vm734_vm2, %v5413_v14  ;;  %v4899_v13 = vadd.f32 %v8475_v53, %v4860_v59  ;;  %v4861_v35 = vmul.f32 %v8465_v63, %v4739_v33  ;;  %v4741_v11 = vpop.f32.mrb[31].mxu1  ;;  %v5159_v14 = vsel %vm8458_vm13, %v5154_v2, %v5158_v23  ;;  %v5177_v59 = vor.u32 %v5176_v60, %v5172_v37 }
 0x517   : > { %v5187_v11 = vrot.slane %v5185_v61, 4  ;;  %v5190_v40 = vrot.slane %v5188_v12, 5  ;;  %v5355_v26 = vunpack.c.l.bf16 %v5159_v14  ;;  %v6604_v14 = vld [vmem:[%s6784_s21 + $0xa4] sm:$0x1] }
 0x518   : > { %v5382_v36 = vadd.f32 %v5350_v8, %v4899_v13  ;;  %v4900_v19 = vadd.f32 %v8475_v53, %v4861_v35  ;;  %v6599_v8 = vld [vmem:[%s6784_s21 + $0x94] sm:$0xf] }
 0x519   : > { %v5194_v47 = vshll.u32 %v6599_v8, 16  ;;  %v5198_v33 = vshrl.u32 %v6599_v8, 16  ;;  %v5191_v20 = vor.u32 %v5190_v40, %v5187_v11 }
 0x51a   : > { %v5414_v32 = vmax.f32 %v5382_v36, 0.0  ;;  %v5383_v25 = vadd.f32 %v5351_v39, %v4900_v19  ;;  %v5168_v39 = vrot.slane %v5167_v55, 4  ;;  %v5178_v19 = vrot.slane %v5177_v59, 4 }
 0x51b   : > { %v4744_v46 = vpop.f32.mrb[32].mxu1  ;;  %v5196_v17 = vrot.slane %v5194_v47, 5  ;;  %v5200_v43 = vrot.slane %v5198_v33, 4  ;;  %v5228_v59 = vshll.u32 %v6604_v14, 16 }
 0x51c   : > { %5446 = vst.msk [vmem:[%s8493_s17 + $0x70] sm:$0xff] %vm734_vm2, %v5414_v32  ;;  %v5415_v57 = vmax.f32 %v5383_v25, 0.0  ;;  %v4862_v49 = vmul.f32 %v8465_v63, %v4744_v46  ;;  %v4746_v3 = vpop.f32.mrb[33].mxu1  ;;  %v5173_v31 = vsel %vm8458_vm13, %v5168_v39, %v5172_v37  ;;  %v6600_v32 = vld [vmem:[%s6784_s21 + $0x9c] sm:$0xf] }
 0x51d   : > { %v4747_v18 = vpop.f32.mrb[34].mxu1  ;;  %v5209_v25 = vshrl.u32 %v6600_v32, 16  ;;  %v5212_v46 = vshll.u32 %v6600_v32, 16  ;;  %v5356_v41 = vunpack.c.l.bf16 %v5173_v31  ;;  %v5230_v31 = vrot.slane %v5228_v59, 5 }
 0x51e   : > { %5447 = vst.msk [vmem:[%s8493_s17 + $0x78] sm:$0xff] %vm734_vm2, %v5415_v57  ;;  %v4901_v50 = vadd.f32 %v8475_v53, %v4862_v49  ;;  %v4863_v1 = vmul.f32 %v8465_v63, %v4747_v18  ;;  %v4749_v22 = vpop.f32.mrb[35].mxu1  ;;  %v5183_v57 = vsel %vm8458_vm13, %v5178_v19, %v5182_v51  ;;  %v5201_v49 = vor.u32 %v5200_v43, %v5196_v17 }
 0x51f   : > { %v5211_v22 = vrot.slane %v5209_v25, 4  ;;  %v5214_v2 = vrot.slane %v5212_v46, 5  ;;  %v5357_v60 = vunpack.c.l.bf16 %v5183_v57  ;;  %v6607_v57 = vld [vmem:[%s6784_s21 + $0xb0] sm:$0x1] }
 0x520   : > { %v5384_v27 = vadd.f32 %v5352_v44, %v4901_v50  ;;  %v4902_v29 = vadd.f32 %v8475_v53, %v4863_v1  ;;  %v6602_v44 = vld [vmem:[%s6784_s21 + $0xa0] sm:$0xf] }
 0x521   : > { %v5218_v3 = vshll.u32 %v6602_v44, 16  ;;  %v5222_v18 = vshrl.u32 %v6602_v44, 16  ;;  %v5215_v7 = vor.u32 %v5214_v2, %v5211_v22 }
 0x522   : > { %v5416_v48 = vmax.f32 %v5384_v27, 0.0  ;;  %v5385_v62 = vadd.f32 %v5353_v28, %v4902_v29  ;;  %v5192_v28 = vrot.slane %v5191_v20, 4  ;;  %v5202_v29 = vrot.slane %v5201_v49, 4 }
 0x523   : > { %v4752_v58 = vpop.f32.mrb[36].mxu1  ;;  %v5220_v55 = vrot.slane %v5218_v3, 5  ;;  %v5224_v24 = vrot.slane %v5222_v18, 4  ;;  %v5252_v49 = vshll.u32 %v6607_v57, 16 }
 0x524   : > { %5448 = vst.msk [vmem:[%s8493_s17 + $0x80] sm:$0xff] %vm734_vm2, %v5416_v48  ;;  %v5417_v56 = vmax.f32 %v5385_v62, 0.0  ;;  %v4864_v38 = vmul.f32 %v8465_v63, %v4752_v58  ;;  %v4754_v13 = vpop.f32.mrb[37].mxu1  ;;  %v5197_v9 = vsel %vm8458_vm13, %v5192_v28, %v5196_v17  ;;  %v6603_v48 = vld [vmem:[%s6784_s21 + $0xa8] sm:$0xf] }
 0x525   : > { %v4755_v35 = vpop.f32.mrb[38].mxu1  ;;  %v5233_v62 = vshrl.u32 %v6603_v48, 16  ;;  %v5236_v58 = vshll.u32 %v6603_v48, 16  ;;  %v5358_v40 = vunpack.c.l.bf16 %v5197_v9  ;;  %v5254_v9 = vrot.slane %v5252_v49, 5 }
 0x526   : > { %5449 = vst.msk [vmem:[%s8493_s17 + $0x88] sm:$0xff] %vm734_vm2, %v5417_v56  ;;  %v4903_v5 = vadd.f32 %v8475_v53, %v4864_v38  ;;  %v4865_v42 = vmul.f32 %v8465_v63, %v4755_v35  ;;  %v4757_v36 = vpop.f32.mrb[39].mxu1  ;;  %v5207_v56 = vsel %vm8458_vm13, %v5202_v29, %v5206_v54  ;;  %v5225_v38 = vor.u32 %v5224_v24, %v5220_v55 }
 0x527   : > { %v5235_v36 = vrot.slane %v5233_v62, 4  ;;  %v5238_v19 = vrot.slane %v5236_v58, 5  ;;  %v5359_v43 = vunpack.c.l.bf16 %v5207_v56  ;;  %v6610_v56 = vld [vmem:[%s6784_s21 + $0xbc] sm:$0x1] }
 0x528   : > { %v5386_v4 = vadd.f32 %v5354_v30, %v4903_v5  ;;  %v4904_v15 = vadd.f32 %v8475_v53, %v4865_v42  ;;  %v6605_v30 = vld [vmem:[%s6784_s21 + $0xac] sm:$0xf] }
 0x529   : > { %v5242_v13 = vshll.u32 %v6605_v30, 16  ;;  %v5246_v35 = vshrl.u32 %v6605_v30, 16  ;;  %v5239_v0 = vor.u32 %v5238_v19, %v5235_v36 }
 0x52a   : > { %v5418_v6 = vmax.f32 %v5386_v4, 0.0  ;;  %v5387_v52 = vadd.f32 %v5355_v26, %v4904_v15  ;;  %v5216_v26 = vrot.slane %v5215_v7, 4  ;;  %v5226_v15 = vrot.slane %v5225_v38, 4 }
 0x52b   : > { %v4760_v10 = vpop.f32.mrb[40].mxu1  ;;  %v5244_v20 = vrot.slane %v5242_v13, 5  ;;  %v5248_v32 = vrot.slane %v5246_v35, 4  ;;  %v5276_v38 = vshll.u32 %v6610_v56, 16 }
 0x52c   : > { %5450 = vst.msk [vmem:[%s8493_s17 + $0x90] sm:$0xff] %vm734_vm2, %v5418_v6  ;;  %v5419_v16 = vmax.f32 %v5387_v52, 0.0  ;;  %v4866_v34 = vmul.f32 %v8465_v63, %v4760_v10  ;;  %v4762_v50 = vpop.f32.mrb[41].mxu1  ;;  %v5221_v21 = vsel %vm8458_vm13, %v5216_v26, %v5220_v55  ;;  %v6606_v6 = vld [vmem:[%s6784_s21 + $0xb4] sm:$0xf] }
 0x52d   : > { %v4763_v1 = vpop.f32.mrb[42].mxu1  ;;  %v5257_v52 = vshrl.u32 %v6606_v6, 16  ;;  %v5260_v10 = vshll.u32 %v6606_v6, 16  ;;  %v5360_v2 = vunpack.c.l.bf16 %v5221_v21  ;;  %v5278_v21 = vrot.slane %v5276_v38, 5 }
 0x52e   : > { %5451 = vst.msk [vmem:[%s8493_s17 + $0x98] sm:$0xff] %vm734_vm2, %v5419_v16  ;;  %v4905_v23 = vadd.f32 %v8475_v53, %v4866_v34  ;;  %v4867_v37 = vmul.f32 %v8465_v63, %v4763_v1  ;;  %v4765_v27 = vpop.f32.mrb[43].mxu1  ;;  %v5231_v16 = vsel %vm8458_vm13, %v5226_v15, %v5230_v31  ;;  %v5249_v34 = vor.u32 %v5248_v32, %v5244_v20 }
 0x52f   : > { %v5259_v27 = vrot.slane %v5257_v52, 4  ;;  %v5262_v29 = vrot.slane %v5260_v10, 5  ;;  %v5361_v24 = vunpack.c.l.bf16 %v5231_v16 }
 0x530   : > { %v5388_v61 = vadd.f32 %v5356_v41, %v4905_v23  ;;  %v4906_v12 = vadd.f32 %v8475_v53, %v4867_v37  ;;  %v6608_v41 = vld [vmem:[%s6784_s21 + $0xb8] sm:$0xf] }
 0x531   : > { %v5266_v50 = vshll.u32 %v6608_v41, 16  ;;  %v5270_v1 = vshrl.u32 %v6608_v41, 16  ;;  %v5263_v59 = vor.u32 %v5262_v29, %v5259_v27 }
 0x532   : > { %v5420_v8 = vmax.f32 %v5388_v61, 0.0  ;;  %v5389_v47 = vadd.f32 %v5357_v60, %v4906_v12  ;;  %v5240_v60 = vrot.slane %v5239_v0, 4  ;;  %v5250_v12 = vrot.slane %v5249_v34, 4 }
 0x533   : > { %v4768_v33 = vpop.f32.mrb[44].mxu1  ;;  %v5268_v7 = vrot.slane %v5266_v50, 5  ;;  %v5272_v48 = vrot.slane %v5270_v1, 4 }
 0x534   : > { %5452 = vst.msk [vmem:[%s8493_s17 + $0xa0] sm:$0xff] %vm734_vm2, %v5420_v8  ;;  %v5421_v39 = vmax.f32 %v5389_v47, 0.0  ;;  %v4868_v11 = vmul.f32 %v8465_v63, %v4768_v33  ;;  %v4770_v5 = vpop.f32.mrb[45].mxu1  ;;  %v5245_v14 = vsel %vm8458_vm13, %v5240_v60, %v5244_v20  ;;  %v6609_v8 = vld [vmem:[%s6784_s21 + $0xc0] sm:$0xf] }
 0x535   : > { %v4771_v42 = vpop.f32.mrb[46].mxu1  ;;  %v5281_v47 = vshrl.u32 %v6609_v8, 16  ;;  %v5284_v33 = vshll.u32 %v6609_v8, 16  ;;  %v5362_v19 = vunpack.c.l.bf16 %v5245_v14 }
 0x536   : > { %5453 = vst.msk [vmem:[%s8493_s17 + $0xa8] sm:$0xff] %vm734_vm2, %v5421_v39  ;;  %v4907_v51 = vadd.f32 %v8475_v53, %v4868_v11  ;;  %v4869_v17 = vmul.f32 %v8465_v63, %v4771_v42  ;;  %v4773_v4 = vpop.f32.mrb[47].mxu1  ;;  %v5255_v39 = vsel %vm8458_vm13, %v5250_v12, %v5254_v9  ;;  %v5273_v11 = vor.u32 %v5272_v48, %v5268_v7 }
 0x537   : > { %v5283_v4 = vrot.slane %v5281_v47, 4  ;;  %v5286_v15 = vrot.slane %v5284_v33, 5  ;;  %v5363_v32 = vunpack.c.l.bf16 %v5255_v39 }
 0x538   : > { %v5390_v25 = vadd.f32 %v5358_v40, %v4907_v51  ;;  %v4908_v46 = vadd.f32 %v8475_v53, %v4869_v17  ;;  %v6611_v40 = vld [vmem:[%s6784_s21 + $0xc4] sm:$0xf] }
 0x539   : > { %v5290_v5 = vshll.u32 %v6611_v40, 16  ;;  %v5294_v42 = vshrl.u32 %v6611_v40, 16  ;;  %v5287_v49 = vor.u32 %v5286_v15, %v5283_v4 }
 0x53a   : > { %v5422_v44 = vmax.f32 %v5390_v25, 0.0  ;;  %v5391_v3 = vadd.f32 %v5359_v43, %v4908_v46  ;;  %v5264_v43 = vrot.slane %v5263_v59, 4  ;;  %v5274_v46 = vrot.slane %v5273_v11, 4 }
 0x53b   : > { %v4776_v18 = vpop.f32.mrb[48].mxu1  ;;  %v5292_v0 = vrot.slane %v5290_v5, 5  ;;  %v5296_v6 = vrot.slane %v5294_v42, 4 }
 0x53c   : > { %5454 = vst.msk [vmem:[%s8493_s17 + $0xb0] sm:$0xff] %vm734_vm2, %v5422_v44  ;;  %v5423_v28 = vmax.f32 %v5391_v3, 0.0  ;;  %v4870_v22 = vmul.f32 %v8465_v63, %v4776_v18  ;;  %v4778_v23 = vpop.f32.mrb[49].mxu1  ;;  %v5269_v57 = vsel %vm8458_vm13, %v5264_v43, %v5268_v7  ;;  %v6612_v18 = vld [vmem:[%s6784_s21 + $0xc8] sm:$0x1]  ;;  %v5279_v41 = vsel %vm8458_vm13, %v5274_v46, %v5278_v21  ;;  %s6015_s21 = sshll.u32 %s6743_s28, 12 }
 0x53d   : > { %v4779_v37 = vpop.f32.mrb[50].mxu1  ;;  %v5300_v16 = vshll.u32 %v6612_v18, 16  ;;  %v5297_v50 = vor.u32 %v5296_v6, %v5292_v0  ;;  %v5365_v29 = vunpack.c.l.bf16 %v5279_v41  ;;  %s8713_s22 = scalar_lea.hbm %s8771_s7, %s6015_s21  ;;  %s8723_s28 = scalar_lea.sflag [#allocation4], %s269_s9 }
 0x53e   : > { %5455 = vst.msk [vmem:[%s8493_s17 + $0xb8] sm:$0xff] %vm734_vm2, %v5423_v28  ;;  %v4909_v54 = vadd.f32 %v8475_v53, %v4870_v22  ;;  %v4871_v55 = vmul.f32 %v8465_v63, %v4779_v37  ;;  %v4781_v61 = vpop.f32.mrb[51].mxu1  ;;  %v5364_v22 = vunpack.c.l.bf16 %v5269_v57  ;;  %v5288_v37 = vrot.slane %v5287_v49, 4 }
 0x540   : > { %v5392_v62 = vadd.f32 %v5360_v2, %v4909_v54  ;;  %v4910_v58 = vadd.f32 %v8475_v53, %v4871_v55  ;;  %v5298_v55 = vrot.slane %v5297_v50, 4  ;;  %v5293_v9 = vsel %vm8458_vm13, %v5288_v37, %v5292_v0 }
 0x541   : > { %v5366_v8 = vunpack.c.l.bf16 %v5293_v9 }
 0x542   : > { %v5424_v30 = vmax.f32 %v5392_v62, 0.0  ;;  %v5393_v13 = vadd.f32 %v5361_v24, %v4910_v58  ;;  %v5302_v24 = vrot.slane %v5300_v16, 5 }
 0x543   : > { %v4784_v35 = vpop.f32.mrb[52].mxu1 }
 0x544   : > { %5456 = vst.msk [vmem:[%s8493_s17 + $0xc0] sm:$0xff] %vm734_vm2, %v5424_v30  ;;  %v5425_v26 = vmax.f32 %v5393_v13, 0.0  ;;  %v4872_v36 = vmul.f32 %v8465_v63, %v4784_v35  ;;  %v4786_v51 = vpop.f32.mrb[53].mxu1  ;;  %v5303_v58 = vsel %vm8458_vm13, %v5298_v55, %v5302_v24 }
 0x545   : > { %v4787_v17 = vpop.f32.mrb[54].mxu1  ;;  %v5367_v45 = vunpack.c.l.bf16 %v5303_v58 }
 0x546   : > { %5457 = vst.msk [vmem:[%s8493_s17 + $0xc8] sm:$0xff] %vm734_vm2, %v5425_v26  ;;  %v4911_v31 = vadd.f32 %v8475_v53, %v4872_v36  ;;  %v4873_v20 = vmul.f32 %v8465_v63, %v4787_v17  ;;  %v4789_v25 = vpop.f32.mrb[55].mxu1 }
 0x548   : > { %v5394_v52 = vadd.f32 %v5362_v19, %v4911_v31  ;;  %v4912_v10 = vadd.f32 %v8475_v53, %v4873_v20 }
 0x54a   : > { %v5426_v44 = vmax.f32 %v5394_v52, 0.0  ;;  %v5395_v3 = vadd.f32 %v5363_v32, %v4912_v10 }
 0x54b   : > { %v4792_v34 = vpop.f32.mrb[56].mxu1 }
 0x54c   : > { %5458 = vst.msk [vmem:[%s8493_s17 + $0xd0] sm:$0xff] %vm734_vm2, %v5426_v44  ;;  %v5427_v1 = vmax.f32 %v5395_v3, 0.0  ;;  %v4874_v28 = vmul.f32 %v8465_v63, %v4792_v34  ;;  %v4794_v2 = vpop.f32.mrb[57].mxu1 }
 0x54d   : > { %v4795_v23 = vpop.f32.mrb[58].mxu1 }
 0x54e   : > { %5459 = vst.msk [vmem:[%s8493_s17 + $0xd8] sm:$0xff] %vm734_vm2, %v5427_v1  ;;  %v4913_v60 = vadd.f32 %v8475_v53, %v4874_v28  ;;  %v4875_v27 = vmul.f32 %v8465_v63, %v4795_v23  ;;  %v4797_v54 = vpop.f32.mrb[59].mxu1 }
 0x550   : > { %v5396_v61 = vadd.f32 %v5364_v22, %v4913_v60  ;;  %v4914_v12 = vadd.f32 %v8475_v53, %v4875_v27 }
 0x552   : > { %v5428_v7 = vmax.f32 %v5396_v61, 0.0  ;;  %v5397_v48 = vadd.f32 %v5365_v29, %v4914_v12 }
 0x553   : > { %v4800_v62 = vpop.f32.mrb[60].mxu1 }
 0x554   : > { %5460 = vst.msk [vmem:[%s8493_s17 + $0xe0] sm:$0xff] %vm734_vm2, %v5428_v7  ;;  %v5429_v14 = vmax.f32 %v5397_v48, 0.0  ;;  %v4876_v59 = vmul.f32 %v8465_v63, %v4800_v62  ;;  %v4802_v47 = vpop.f32.mrb[61].mxu1 }
 0x555   : > { %v4803_v33 = vpop.f32.mrb[62].mxu1 }
 0x556   : > { %5461 = vst.msk [vmem:[%s8493_s17 + $0xe8] sm:$0xff] %vm734_vm2, %v5429_v14  ;;  %v4915_v56 = vadd.f32 %v8475_v53, %v4876_v59  ;;  %v4877_v38 = vmul.f32 %v8465_v63, %v4803_v33  ;;  %v4805_v30 = vpop.f32.mrb[63].mxu1 }
 0x558   : > { %v5398_v13 = vadd.f32 %v5366_v8, %v4915_v56  ;;  %v4916_v35 = vadd.f32 %v8475_v53, %v4877_v38 }
 0x55a   : > { %v5430_v39 = vmax.f32 %v5398_v13, 0.0  ;;  %v5399_v11 = vadd.f32 %v5367_v45, %v4916_v35 }
 0x55c   : > { %5462 = vst.msk [vmem:[%s8493_s17 + $0xf0] sm:$0xff] %vm734_vm2, %v5430_v39  ;;  %v5431_v63 = vmax.f32 %v5399_v11, 0.0 }
 0x55e   : > { %5463 = vst.msk [vmem:[%s8493_s17 + $0xf8] sm:$0xff] %vm734_vm2, %v5431_v63 }
 0x55f   : > { %6626 = shalt.err (!%p6623_p3)
}
 0x560   : > { %s6627_s9 = scalar_lea.hbm %s8713_s22, 4096  ;;  %s6631_s16 = scalar_lea.hbm %s8771_s7, 8192 }
 0x561   : > { %p6628_p4 = scmp.ne.s32.totalorder %s8713_s22, %s6627_s9  ;;  %p6632_p9 = scmp.lt.u32.totalorder %s8713_s22, %s8771_s7 }
 0x562   : > { %p6633_p10 = scmp.lt.u32.totalorder %s6631_s16, %s6627_s9  ;;  %p6635_p12 = scmp.lt.u32.totalorder %s6627_s9, %s8713_s22 }
 0x563   : > { %p6629_p7 = pnand %p6628_p4, %p6760_p5 }
 0x564   : > { %p6634_p11 = por %p6633_p10, %p6632_p9 }
 0x565   : > { %p6630_p8 = pneg %p6629_p7 }
 0x566   : > { %p6636_p13 = por %p6635_p12, %p6634_p11 }
 0x568   : > { %p6637_p0 = pnand %p6636_p13, %p6630_p8 }
 0x56a   : > { %6640 = shalt.err (!%p6637_p0)
}
 0x56b   : > { %s6680_s19 = smov 128   ;;  %s6681_s20 = smov 8  }
 0x56c   : > { %6273 = dma.vmem_to_hbm [thread:$0]  (%p6760_p5), %s8715_s18, 4096, %s8713_s22, %s8723_s28, %s6680_s19, %s6680_s19, %s6681_s20  }
 0x56d PF: > { %p6279_p1 = scmp.ge.s32.totalorder %s6675_s27, 2  ;;  %s5493_s23 = sand.u32 1, %s6663_s24  }
 0x56e   : > { %s5494_s14 = scalar_lea.sflag [#allocation4], %s5493_s23 }
 0x56f   : > { %p6276_p2 = pnand %p6279_p1, %p6764_p6 }
 0x571   : > { %6658 = dma.done.wait (!%p6276_p2), %s5494_s14, 4096  }
 0x572   : > { %6660 = vsyncadd (!%p6276_p2), %s5494_s14, 4294963200  ;;  %p17_p3 = scmp.ge.s32.totalorder %s6747_s30, 4   ;;  %s8844_s24 = smov %s6667_s25 }
 0x573   : > { %s8845_s25 = smov %s6671_s26  ;;  %s8846_s26 = smov %s6758_s10 }
 0x574   : > { %s8847_s27 = smov %s6747_s30  ;;  %19 = sbr.rel (!%p17_p3) target bundleno = 3 (0x3), region = 89 }
 0x57b   :  { %5499 = vsyncpa [#allocation4], 1 }
 0x57c   :  { %5501 = vsyncpa [#allocation4 + $0x1], 1 }

</bundles_post_ra>
